<compile_context>
chip_gen: v7x
topology: tpu7x:2x2x1
jax: 0.10.0
libtpu: 0.0.40
codegen_flags: <defaults>
</compile_context>

<pallas_src>
from functools import partial

import jax
import jax.numpy as jnp
from jax.experimental import pallas as pl
from jax.experimental.pallas import tpu as pltpu


# ----------------------------------------------------------------------------
# Fused kernel: LayerNorm x3 + cross-attention + proj + residual (one batch).
# ----------------------------------------------------------------------------
def _cross_attn_kernel(
    xq_ref, xk_ref, xv_ref, res_ref,                       # (1, N, C) activation tiles
    gq_ref, bq_ref, gk_ref, bk_ref, gv_ref, bv_ref,        # (1, C) LayerNorm params (f32)
    wq_ref, wk_ref, wv_ref, wp_ref,                        # (C, C) bf16 weights (x @ W layout)
    bp_ref,                                                # (1, C) proj bias (f32)
    o_ref,                                                 # (1, N, C) output tile
    attn_scr,                                              # (N, C) bf16 VMEM scratch
    *, num_heads,
):
    eps = 1e-5

    def layer_norm(x, gamma, beta):
        mu = jnp.mean(x, axis=-1, keepdims=True)
        xc = x - mu
        var = jnp.mean(xc * xc, axis=-1, keepdims=True)
        return xc * jax.lax.rsqrt(var + eps) * gamma + beta

    # LayerNorm math stays in f32.
    xq = layer_norm(xq_ref[0].astype(jnp.float32), gq_ref[...], bq_ref[...])   # (N, C)
    xk = layer_norm(xk_ref[0].astype(jnp.float32), gk_ref[...], bk_ref[...])   # (N, C)
    xv = layer_norm(xv_ref[0].astype(jnp.float32), gv_ref[...], bv_ref[...])   # (N, C)

    # q/k/v projections (qkv_bias=False): bf16 on the MXU, f32 accumulation.
    # The qk scale is already folded into wq on the host.
    q = jnp.dot(xq.astype(jnp.bfloat16), wq_ref[...], preferred_element_type=jnp.float32)
    k = jnp.dot(xk.astype(jnp.bfloat16), wk_ref[...], preferred_element_type=jnp.float32)
    v = jnp.dot(xv.astype(jnp.bfloat16), wv_ref[...], preferred_element_type=jnp.float32)

    n, c = q.shape
    head_dim = c // num_heads

    q_b = q.astype(jnp.bfloat16)
    k_b = k.astype(jnp.bfloat16)
    v_b = v.astype(jnp.bfloat16)

    # Per-head attention, static head loop.  QK^T contracts the last dim of
    # both operands directly (no explicit transpose); each head's output is
    # written straight into the VMEM scratch slab (no concatenate).
    qk_dims = (((1,), (1,)), ((), ()))
    for h in range(num_heads):
        lo = h * head_dim
        qh = q_b[:, lo:lo + head_dim]                                          # (N, D) bf16
        kh = k_b[:, lo:lo + head_dim]                                          # (N, D) bf16
        vh = v_b[:, lo:lo + head_dim]                                          # (N, D) bf16

        s = jax.lax.dot_general(qh, kh, qk_dims,
                                preferred_element_type=jnp.float32)            # (N, N) f32
        s = s - jnp.max(s, axis=-1, keepdims=True)
        p = jnp.exp(s)
        inv = pl.reciprocal(jnp.sum(p, axis=-1, keepdims=True), approx=True)   # EUP slot
        p = (p * inv).astype(jnp.bfloat16)                                     # softmax, bf16 for MXU

        oh = jnp.dot(p, vh, preferred_element_type=jnp.float32)                # (N, D) f32
        attn_scr[:, lo:lo + head_dim] = oh.astype(jnp.bfloat16)

    # Output projection (with bias) + residual add, f32 accumulation / add.
    proj = jnp.dot(attn_scr[...], wp_ref[...],
                   preferred_element_type=jnp.float32) + bp_ref[...]
    o_ref[0] = (res_ref[0].astype(jnp.float32) + proj).astype(o_ref.dtype)


def cross_attention_residual(x_q, x_k, x_v, residual, ln_q, ln_k, ln_v, attn, num_heads):
    """residual + CrossAttention(LN(x_q), LN(x_k), LN(x_v)).  All inputs (B, N, C)."""
    B, N, C = x_q.shape
    assert C % num_heads == 0, "C must be divisible by num_heads"
    head_dim = C // num_heads
    scale = float(head_dim ** (-0.5))

    # Host-side weight prep: fold the qk scale into Wq (in f32, then cast),
    # cast all matmul weights to bf16 for the MXU.
    wq = (attn["wq"] * scale).astype(jnp.bfloat16)
    wk = attn["wk"].astype(jnp.bfloat16)
    wv = attn["wv"].astype(jnp.bfloat16)
    wp = attn["wp"].astype(jnp.bfloat16)

    kernel = partial(_cross_attn_kernel, num_heads=num_heads)

    spec_x = pl.BlockSpec((1, N, C), lambda b: (b, 0, 0))
    spec_vec = pl.BlockSpec((1, C), lambda b: (0, 0))
    spec_mat = pl.BlockSpec((C, C), lambda b: (0, 0))

    return pl.pallas_call(
        kernel,
        out_shape=jax.ShapeDtypeStruct((B, N, C), x_q.dtype),
        grid=(B,),
        in_specs=[spec_x, spec_x, spec_x, spec_x,
                  spec_vec, spec_vec, spec_vec, spec_vec, spec_vec, spec_vec,
                  spec_mat, spec_mat, spec_mat, spec_mat,
                  spec_vec],
        out_specs=spec_x,
        scratch_shapes=[pltpu.VMEM((N, C), jnp.bfloat16)],
        # Residual input (index 3) aliases the output buffer: no extra HBM alloc.
        input_output_aliases={3: 0},
        compiler_params=pltpu.CompilerParams(
            dimension_semantics=("parallel",),
            vmem_limit_bytes=64 * 1024 * 1024,
        ),
    )(
        x_q, x_k, x_v, residual,
        ln_q["gamma"], ln_q["beta"],
        ln_k["gamma"], ln_k["beta"],
        ln_v["gamma"], ln_v["beta"],
        wq, wk, wv, wp,
        attn["bp"],
    )


# ----------------------------------------------------------------------------
# MCLF_Block forward (three sequential fused cross-attention kernels).
# ----------------------------------------------------------------------------
def mclf_block_forward(x_1, x_2, x_3, params, num_heads):
    p = params
    # x_1 = x_1 + attn_1(LN11(x_2), LN12(x_3), LN13(x_1))
    x_1 = cross_attention_residual(x_2, x_3, x_1, x_1,
                                   p["norm3_11"], p["norm3_12"], p["norm3_13"],
                                   p["attn_1"], num_heads)
    # x_2 = x_2 + attn_2(LN21(x_1), LN22(x_3), LN23(x_2))   (uses updated x_1)
    x_2 = cross_attention_residual(x_1, x_3, x_2, x_2,
                                   p["norm3_21"], p["norm3_22"], p["norm3_23"],
                                   p["attn_2"], num_heads)
    # x_3 = x_3 + attn_3(LN31(x_1), LN32(x_2), LN33(x_3))   (uses updated x_1, x_2)
    x_3 = cross_attention_residual(x_1, x_2, x_3, x_3,
                                   p["norm3_31"], p["norm3_32"], p["norm3_33"],
                                   p["attn_3"], num_heads)
    return x_1, x_2, x_3


# ----------------------------------------------------------------------------
# Pure-JAX f32 reference (mirrors the PyTorch forward) for correctness check.
# ----------------------------------------------------------------------------
def _ref_cross_attn(x_q, x_k, x_v, residual, ln_q, ln_k, ln_v, attn, num_heads):
    def ln(x, p):
        mu = jnp.mean(x, axis=-1, keepdims=True)
        var = jnp.mean((x - mu) ** 2, axis=-1, keepdims=True)
        return (x - mu) / jnp.sqrt(var + 1e-5) * p["gamma"] + p["beta"]

    B, N, C = x_q.shape
    D = C // num_heads
    scale = D ** (-0.5)
    q = ln(x_q, ln_q) @ attn["wq"]
    k = ln(x_k, ln_k) @ attn["wk"]
    v = ln(x_v, ln_v) @ attn["wv"]
    q = q.reshape(B, N, num_heads, D).transpose(0, 2, 1, 3)
    k = k.reshape(B, N, num_heads, D).transpose(0, 2, 1, 3)
    v = v.reshape(B, N, num_heads, D).transpose(0, 2, 1, 3)
    s = jnp.einsum("bhnd,bhmd->bhnm", q, k) * scale
    p = jax.nn.softmax(s, axis=-1)
    o = jnp.einsum("bhnm,bhmd->bhnd", p, v)
    o = o.transpose(0, 2, 1, 3).reshape(B, N, C)
    return residual + o @ attn["wp"] + attn["bp"]


def _ref_block(x_1, x_2, x_3, params, num_heads):
    p = params
    x_1 = _ref_cross_attn(x_2, x_3, x_1, x_1, p["norm3_11"], p["norm3_12"], p["norm3_13"], p["attn_1"], num_heads)
    x_2 = _ref_cross_attn(x_1, x_3, x_2, x_2, p["norm3_21"], p["norm3_22"], p["norm3_23"], p["attn_2"], num_heads)
    x_3 = _ref_cross_attn(x_1, x_2, x_3, x_3, p["norm3_31"], p["norm3_32"], p["norm3_33"], p["attn_3"], num_heads)
    return x_1, x_2, x_3


# ----------------------------------------------------------------------------
# Deterministic parameter init (synthetic; matches shapes of the PyTorch module).
# ----------------------------------------------------------------------------
def init_params(key, dim):
    def ln_params(k):
        k1, k2 = jax.random.split(k)
        return {
            "gamma": (1.0 + 0.05 * jax.random.normal(k1, (1, dim))).astype(jnp.float32),
            "beta": (0.05 * jax.random.normal(k2, (1, dim))).astype(jnp.float32),
        }

    def attn_params(k):
        k1, k2, k3, k4, k5 = jax.random.split(k, 5)
        s = 0.02
        return {
            # stored as (in, out) so the kernel computes  y = x @ W  (== x @ W_torch.T)
            "wq": (s * jax.random.normal(k1, (dim, dim))).astype(jnp.float32),
            "wk": (s * jax.random.normal(k2, (dim, dim))).astype(jnp.float32),
            "wv": (s * jax.random.normal(k3, (dim, dim))).astype(jnp.float32),
            "wp": (s * jax.random.normal(k4, (dim, dim))).astype(jnp.float32),
            "bp": (s * jax.random.normal(k5, (1, dim))).astype(jnp.float32),
        }

    keys = jax.random.split(key, 12)
    params = {
        "norm3_11": ln_params(keys[0]), "norm3_12": ln_params(keys[1]), "norm3_13": ln_params(keys[2]),
        "norm3_21": ln_params(keys[3]), "norm3_22": ln_params(keys[4]), "norm3_23": ln_params(keys[5]),
        "norm3_31": ln_params(keys[6]), "norm3_32": ln_params(keys[7]), "norm3_33": ln_params(keys[8]),
        "attn_1": attn_params(keys[9]),
        "attn_2": attn_params(keys[10]),
        "attn_3": attn_params(keys[11]),
    }
    # norm2 / mlp exist in __init__ but are unused in MCLF_Block.forward -> not needed.
    return params


if __name__ == "__main__":
    # Lane-dense small shapes: C and N multiples of 128 (head_dim = 32).
    B, N, C = 2, 128, 128
    num_heads = 4

    key = jax.random.PRNGKey(0)
    k_p, k1, k2, k3 = jax.random.split(key, 4)

    params = init_params(k_p, C)
    x_1 = jax.random.normal(k1, (B, N, C), dtype=jnp.float32)
    x_2 = jax.random.normal(k2, (B, N, C), dtype=jnp.float32)
    x_3 = jax.random.normal(k3, (B, N, C), dtype=jnp.float32)

    y_1, y_2, y_3 = mclf_block_forward(x_1, x_2, x_3, params, num_heads)
    jax.block_until_ready((y_1, y_2, y_3))

    assert y_1.shape == (B, N, C) and y_2.shape == (B, N, C) and y_3.shape == (B, N, C)

    # Correctness vs. f32 reference (bf16 MXU + approx reciprocal -> loose tol).
    r_1, r_2, r_3 = _ref_block(x_1, x_2, x_3, params, num_heads)
    max_err = max(float(jnp.max(jnp.abs(y - r))) for y, r in ((y_1, r_1), (y_2, r_2), (y_3, r_3)))
    assert max_err < 3e-2, f"max abs error too large: {max_err}"

    print("KERNEL_OK")
</pallas_src>

<mosaic_0001>
module attributes {stable_mosaic.version = 11 : i64} {
  func.func @_cross_attn_kernel(%arg0: i32, %arg1: memref<1x128x128xf32, #tpu.memory_space<vmem>>, %arg2: memref<1x128x128xf32, #tpu.memory_space<vmem>>, %arg3: memref<1x128x128xf32, #tpu.memory_space<vmem>>, %arg4: memref<1x128x128xf32, #tpu.memory_space<vmem>>, %arg5: memref<1x128xf32, #tpu.memory_space<vmem>>, %arg6: memref<1x128xf32, #tpu.memory_space<vmem>>, %arg7: memref<1x128xf32, #tpu.memory_space<vmem>>, %arg8: memref<1x128xf32, #tpu.memory_space<vmem>>, %arg9: memref<1x128xf32, #tpu.memory_space<vmem>>, %arg10: memref<1x128xf32, #tpu.memory_space<vmem>>, %arg11: memref<128x128xbf16, #tpu.memory_space<vmem>>, %arg12: memref<128x128xbf16, #tpu.memory_space<vmem>>, %arg13: memref<128x128xbf16, #tpu.memory_space<vmem>>, %arg14: memref<128x128xbf16, #tpu.memory_space<vmem>>, %arg15: memref<1x128xf32, #tpu.memory_space<vmem>>, %arg16: memref<1x128x128xf32, #tpu.memory_space<vmem>>, %arg17: memref<128x128xbf16, #tpu.memory_space<vmem>>) attributes {dimension_semantics = [#tpu.dimension_semantics<parallel>], iteration_bounds = array<i64: 2>, scalar_prefetch = 0 : i64, scratch_operands = 1 : i64, tpu.core_type = #tpu.core_type<tc>, window_params = [{transform_indices = @transform_0, window_bounds = array<i64: 1, 128, 128>}, {transform_indices = @transform_1, window_bounds = array<i64: 1, 128, 128>}, {transform_indices = @transform_2, window_bounds = array<i64: 1, 128, 128>}, {transform_indices = @transform_3, window_bounds = array<i64: 1, 128, 128>}, {pipeline_mode = #tpu.pipeline_mode<synchronous>, transform_indices = @transform_4, window_bounds = array<i64: 1, 128>}, {pipeline_mode = #tpu.pipeline_mode<synchronous>, transform_indices = @transform_5, window_bounds = array<i64: 1, 128>}, {pipeline_mode = #tpu.pipeline_mode<synchronous>, transform_indices = @transform_6, window_bounds = array<i64: 1, 128>}, {pipeline_mode = #tpu.pipeline_mode<synchronous>, transform_indices = @transform_7, window_bounds = array<i64: 1, 128>}, {pipeline_mode = #tpu.pipeline_mode<synchronous>, transform_indices = @transform_8, window_bounds = array<i64: 1, 128>}, {pipeline_mode = #tpu.pipeline_mode<synchronous>, transform_indices = @transform_9, window_bounds = array<i64: 1, 128>}, {pipeline_mode = #tpu.pipeline_mode<synchronous>, transform_indices = @transform_10, window_bounds = array<i64: 128, 128>}, {pipeline_mode = #tpu.pipeline_mode<synchronous>, transform_indices = @transform_11, window_bounds = array<i64: 128, 128>}, {pipeline_mode = #tpu.pipeline_mode<synchronous>, transform_indices = @transform_12, window_bounds = array<i64: 128, 128>}, {pipeline_mode = #tpu.pipeline_mode<synchronous>, transform_indices = @transform_13, window_bounds = array<i64: 128, 128>}, {pipeline_mode = #tpu.pipeline_mode<synchronous>, transform_indices = @transform_14, window_bounds = array<i64: 1, 128>}, {transform_indices = @transform_15, window_bounds = array<i64: 1, 128, 128>}]} {
    %c0 = arith.constant 0 : index
    %c0_0 = arith.constant 0 : index
    %c0_1 = arith.constant 0 : index
    %0 = vector.load %arg1[%c0, %c0_0, %c0_1] : memref<1x128x128xf32, #tpu.memory_space<vmem>>, vector<1x128x128xf32>
    %1 = vector.shape_cast %0 : vector<1x128x128xf32> to vector<128x128xf32>
    %c0_2 = arith.constant 0 : index
    %c0_3 = arith.constant 0 : index
    %2 = vector.load %arg5[%c0_2, %c0_3] : memref<1x128xf32, #tpu.memory_space<vmem>>, vector<1x128xf32>
    %c0_4 = arith.constant 0 : index
    %c0_5 = arith.constant 0 : index
    %3 = vector.load %arg6[%c0_4, %c0_5] : memref<1x128xf32, #tpu.memory_space<vmem>>, vector<1x128xf32>
    %cst = arith.constant dense<0.000000e+00> : vector<128xf32>
    %4 = vector.multi_reduction <add>, %1, %cst [1] : vector<128x128xf32> to vector<128xf32>
    %5 = vector.shape_cast %4 : vector<128xf32> to vector<128x1xf32>
    %cst_6 = arith.constant 1.280000e+02 : f32
    %6 = vector.broadcast %cst_6 : f32 to vector<128x1xf32>
    %7 = arith.divf %5, %6 : vector<128x1xf32>
    %8 = vector.broadcast %7 : vector<128x1xf32> to vector<128x128xf32>
    %9 = arith.subf %1, %8 : vector<128x128xf32>
    %10 = arith.mulf %9, %9 : vector<128x128xf32>
    %cst_7 = arith.constant dense<0.000000e+00> : vector<128xf32>
    %11 = vector.multi_reduction <add>, %10, %cst_7 [1] : vector<128x128xf32> to vector<128xf32>
    %12 = vector.shape_cast %11 : vector<128xf32> to vector<128x1xf32>
    %cst_8 = arith.constant 1.280000e+02 : f32
    %13 = vector.broadcast %cst_8 : f32 to vector<128x1xf32>
    %14 = arith.divf %12, %13 : vector<128x1xf32>
    %cst_9 = arith.constant 9.99999974E-6 : f32
    %15 = vector.broadcast %cst_9 : f32 to vector<128x1xf32>
    %16 = arith.addf %14, %15 : vector<128x1xf32>
    %17 = math.rsqrt %16 : vector<128x1xf32>
    %18 = vector.broadcast %17 : vector<128x1xf32> to vector<128x128xf32>
    %19 = arith.mulf %9, %18 : vector<128x128xf32>
    %20 = vector.broadcast %2 : vector<1x128xf32> to vector<128x128xf32>
    %21 = arith.mulf %19, %20 : vector<128x128xf32>
    %22 = vector.broadcast %3 : vector<1x128xf32> to vector<128x128xf32>
    %23 = arith.addf %21, %22 : vector<128x128xf32>
    %c0_10 = arith.constant 0 : index
    %c0_11 = arith.constant 0 : index
    %c0_12 = arith.constant 0 : index
    %24 = vector.load %arg2[%c0_10, %c0_11, %c0_12] : memref<1x128x128xf32, #tpu.memory_space<vmem>>, vector<1x128x128xf32>
    %25 = vector.shape_cast %24 : vector<1x128x128xf32> to vector<128x128xf32>
    %c0_13 = arith.constant 0 : index
    %c0_14 = arith.constant 0 : index
    %26 = vector.load %arg7[%c0_13, %c0_14] : memref<1x128xf32, #tpu.memory_space<vmem>>, vector<1x128xf32>
    %c0_15 = arith.constant 0 : index
    %c0_16 = arith.constant 0 : index
    %27 = vector.load %arg8[%c0_15, %c0_16] : memref<1x128xf32, #tpu.memory_space<vmem>>, vector<1x128xf32>
    %cst_17 = arith.constant dense<0.000000e+00> : vector<128xf32>
    %28 = vector.multi_reduction <add>, %25, %cst_17 [1] : vector<128x128xf32> to vector<128xf32>
    %29 = vector.shape_cast %28 : vector<128xf32> to vector<128x1xf32>
    %cst_18 = arith.constant 1.280000e+02 : f32
    %30 = vector.broadcast %cst_18 : f32 to vector<128x1xf32>
    %31 = arith.divf %29, %30 : vector<128x1xf32>
    %32 = vector.broadcast %31 : vector<128x1xf32> to vector<128x128xf32>
    %33 = arith.subf %25, %32 : vector<128x128xf32>
    %34 = arith.mulf %33, %33 : vector<128x128xf32>
    %cst_19 = arith.constant dense<0.000000e+00> : vector<128xf32>
    %35 = vector.multi_reduction <add>, %34, %cst_19 [1] : vector<128x128xf32> to vector<128xf32>
    %36 = vector.shape_cast %35 : vector<128xf32> to vector<128x1xf32>
    %cst_20 = arith.constant 1.280000e+02 : f32
    %37 = vector.broadcast %cst_20 : f32 to vector<128x1xf32>
    %38 = arith.divf %36, %37 : vector<128x1xf32>
    %cst_21 = arith.constant 9.99999974E-6 : f32
    %39 = vector.broadcast %cst_21 : f32 to vector<128x1xf32>
    %40 = arith.addf %38, %39 : vector<128x1xf32>
    %41 = math.rsqrt %40 : vector<128x1xf32>
    %42 = vector.broadcast %41 : vector<128x1xf32> to vector<128x128xf32>
    %43 = arith.mulf %33, %42 : vector<128x128xf32>
    %44 = vector.broadcast %26 : vector<1x128xf32> to vector<128x128xf32>
    %45 = arith.mulf %43, %44 : vector<128x128xf32>
    %46 = vector.broadcast %27 : vector<1x128xf32> to vector<128x128xf32>
    %47 = arith.addf %45, %46 : vector<128x128xf32>
    %c0_22 = arith.constant 0 : index
    %c0_23 = arith.constant 0 : index
    %c0_24 = arith.constant 0 : index
    %48 = vector.load %arg3[%c0_22, %c0_23, %c0_24] : memref<1x128x128xf32, #tpu.memory_space<vmem>>, vector<1x128x128xf32>
    %49 = vector.shape_cast %48 : vector<1x128x128xf32> to vector<128x128xf32>
    %c0_25 = arith.constant 0 : index
    %c0_26 = arith.constant 0 : index
    %50 = vector.load %arg9[%c0_25, %c0_26] : memref<1x128xf32, #tpu.memory_space<vmem>>, vector<1x128xf32>
    %c0_27 = arith.constant 0 : index
    %c0_28 = arith.constant 0 : index
    %51 = vector.load %arg10[%c0_27, %c0_28] : memref<1x128xf32, #tpu.memory_space<vmem>>, vector<1x128xf32>
    %cst_29 = arith.constant dense<0.000000e+00> : vector<128xf32>
    %52 = vector.multi_reduction <add>, %49, %cst_29 [1] : vector<128x128xf32> to vector<128xf32>
    %53 = vector.shape_cast %52 : vector<128xf32> to vector<128x1xf32>
    %cst_30 = arith.constant 1.280000e+02 : f32
    %54 = vector.broadcast %cst_30 : f32 to vector<128x1xf32>
    %55 = arith.divf %53, %54 : vector<128x1xf32>
    %56 = vector.broadcast %55 : vector<128x1xf32> to vector<128x128xf32>
    %57 = arith.subf %49, %56 : vector<128x128xf32>
    %58 = arith.mulf %57, %57 : vector<128x128xf32>
    %cst_31 = arith.constant dense<0.000000e+00> : vector<128xf32>
    %59 = vector.multi_reduction <add>, %58, %cst_31 [1] : vector<128x128xf32> to vector<128xf32>
    %60 = vector.shape_cast %59 : vector<128xf32> to vector<128x1xf32>
    %cst_32 = arith.constant 1.280000e+02 : f32
    %61 = vector.broadcast %cst_32 : f32 to vector<128x1xf32>
    %62 = arith.divf %60, %61 : vector<128x1xf32>
    %cst_33 = arith.constant 9.99999974E-6 : f32
    %63 = vector.broadcast %cst_33 : f32 to vector<128x1xf32>
    %64 = arith.addf %62, %63 : vector<128x1xf32>
    %65 = math.rsqrt %64 : vector<128x1xf32>
    %66 = vector.broadcast %65 : vector<128x1xf32> to vector<128x128xf32>
    %67 = arith.mulf %57, %66 : vector<128x128xf32>
    %68 = vector.broadcast %50 : vector<1x128xf32> to vector<128x128xf32>
    %69 = arith.mulf %67, %68 : vector<128x128xf32>
    %70 = vector.broadcast %51 : vector<1x128xf32> to vector<128x128xf32>
    %71 = arith.addf %69, %70 : vector<128x128xf32>
    %72 = arith.truncf %23 : vector<128x128xf32> to vector<128x128xbf16>
    %c0_34 = arith.constant 0 : index
    %c0_35 = arith.constant 0 : index
    %73 = vector.load %arg11[%c0_34, %c0_35] : memref<128x128xbf16, #tpu.memory_space<vmem>>, vector<128x128xbf16>
    %cst_36 = arith.constant dense<0.000000e+00> : vector<128x128xf32>
    %74 = tpu.matmul %72, %73, %cst_36 {dimension_numbers = #tpu.dot_dimension_numbers<[1], [0], [0], [1], [0, 0, 1, 1], [], []>} : vector<128x128xbf16>, vector<128x128xbf16>, vector<128x128xf32> -> vector<128x128xf32>
    %75 = arith.truncf %47 : vector<128x128xf32> to vector<128x128xbf16>
    %c0_37 = arith.constant 0 : index
    %c0_38 = arith.constant 0 : index
    %76 = vector.load %arg12[%c0_37, %c0_38] : memref<128x128xbf16, #tpu.memory_space<vmem>>, vector<128x128xbf16>
    %cst_39 = arith.constant dense<0.000000e+00> : vector<128x128xf32>
    %77 = tpu.matmul %75, %76, %cst_39 {dimension_numbers = #tpu.dot_dimension_numbers<[1], [0], [0], [1], [0, 0, 1, 1], [], []>} : vector<128x128xbf16>, vector<128x128xbf16>, vector<128x128xf32> -> vector<128x128xf32>
    %78 = arith.truncf %71 : vector<128x128xf32> to vector<128x128xbf16>
    %c0_40 = arith.constant 0 : index
    %c0_41 = arith.constant 0 : index
    %79 = vector.load %arg13[%c0_40, %c0_41] : memref<128x128xbf16, #tpu.memory_space<vmem>>, vector<128x128xbf16>
    %cst_42 = arith.constant dense<0.000000e+00> : vector<128x128xf32>
    %80 = tpu.matmul %78, %79, %cst_42 {dimension_numbers = #tpu.dot_dimension_numbers<[1], [0], [0], [1], [0, 0, 1, 1], [], []>} : vector<128x128xbf16>, vector<128x128xbf16>, vector<128x128xf32> -> vector<128x128xf32>
    %81 = arith.truncf %74 : vector<128x128xf32> to vector<128x128xbf16>
    %82 = arith.truncf %77 : vector<128x128xf32> to vector<128x128xbf16>
    %83 = arith.truncf %80 : vector<128x128xf32> to vector<128x128xbf16>
    %84 = vector.extract_strided_slice %81 {offsets = [0, 0], sizes = [128, 32], strides = [1, 1]} : vector<128x128xbf16> to vector<128x32xbf16>
    %85 = vector.extract_strided_slice %82 {offsets = [0, 0], sizes = [128, 32], strides = [1, 1]} : vector<128x128xbf16> to vector<128x32xbf16>
    %86 = vector.extract_strided_slice %83 {offsets = [0, 0], sizes = [128, 32], strides = [1, 1]} : vector<128x128xbf16> to vector<128x32xbf16>
    %cst_43 = arith.constant dense<0.000000e+00> : vector<128x128xf32>
    %87 = tpu.matmul %84, %85, %cst_43 {dimension_numbers = #tpu.dot_dimension_numbers<[1], [1], [0], [0], [0, 0, 1, 0], [], []>} : vector<128x32xbf16>, vector<128x32xbf16>, vector<128x128xf32> -> vector<128x128xf32>
    %cst_44 = arith.constant dense<0xFF800000> : vector<128xf32>
    %88 = vector.multi_reduction <maximumf>, %87, %cst_44 [1] : vector<128x128xf32> to vector<128xf32>
    %89 = vector.shape_cast %88 : vector<128xf32> to vector<128x1xf32>
    %90 = vector.broadcast %89 : vector<128x1xf32> to vector<128x128xf32>
    %91 = arith.subf %87, %90 : vector<128x128xf32>
    %92 = math.exp %91 : vector<128x128xf32>
    %cst_45 = arith.constant dense<0.000000e+00> : vector<128xf32>
    %93 = vector.multi_reduction <add>, %92, %cst_45 [1] : vector<128x128xf32> to vector<128xf32>
    %94 = vector.shape_cast %93 : vector<128xf32> to vector<128x1xf32>
    %95 = tpu.reciprocal %94 {approx = true} : vector<128x1xf32> -> vector<128x1xf32>
    %96 = vector.broadcast %95 : vector<128x1xf32> to vector<128x128xf32>
    %97 = arith.mulf %92, %96 : vector<128x128xf32>
    %98 = arith.truncf %97 : vector<128x128xf32> to vector<128x128xbf16>
    %cst_46 = arith.constant dense<0.000000e+00> : vector<128x32xf32>
    %99 = tpu.matmul %98, %86, %cst_46 {dimension_numbers = #tpu.dot_dimension_numbers<[1], [0], [0], [1], [0, 0, 1, 1], [], []>} : vector<128x128xbf16>, vector<128x32xbf16>, vector<128x32xf32> -> vector<128x32xf32>
    %100 = arith.truncf %99 : vector<128x32xf32> to vector<128x32xbf16>
    %c0_47 = arith.constant 0 : index
    %c0_48 = arith.constant 0 : index
    %101 = vector.load %arg17[%c0_47, %c0_48] : memref<128x128xbf16, #tpu.memory_space<vmem>>, vector<128x32xbf16>
    tpu.vector_store %arg17[%c0_47, %c0_48], %100 {strides = array<i32>} : memref<128x128xbf16, #tpu.memory_space<vmem>>, vector<128x32xbf16>,
    %102 = vector.extract_strided_slice %81 {offsets = [0, 32], sizes = [128, 32], strides = [1, 1]} : vector<128x128xbf16> to vector<128x32xbf16>
    %103 = vector.extract_strided_slice %82 {offsets = [0, 32], sizes = [128, 32], strides = [1, 1]} : vector<128x128xbf16> to vector<128x32xbf16>
    %104 = vector.extract_strided_slice %83 {offsets = [0, 32], sizes = [128, 32], strides = [1, 1]} : vector<128x128xbf16> to vector<128x32xbf16>
    %cst_49 = arith.constant dense<0.000000e+00> : vector<128x128xf32>
    %105 = tpu.matmul %102, %103, %cst_49 {dimension_numbers = #tpu.dot_dimension_numbers<[1], [1], [0], [0], [0, 0, 1, 0], [], []>} : vector<128x32xbf16>, vector<128x32xbf16>, vector<128x128xf32> -> vector<128x128xf32>
    %cst_50 = arith.constant dense<0xFF800000> : vector<128xf32>
    %106 = vector.multi_reduction <maximumf>, %105, %cst_50 [1] : vector<128x128xf32> to vector<128xf32>
    %107 = vector.shape_cast %106 : vector<128xf32> to vector<128x1xf32>
    %108 = vector.broadcast %107 : vector<128x1xf32> to vector<128x128xf32>
    %109 = arith.subf %105, %108 : vector<128x128xf32>
    %110 = math.exp %109 : vector<128x128xf32>
    %cst_51 = arith.constant dense<0.000000e+00> : vector<128xf32>
    %111 = vector.multi_reduction <add>, %110, %cst_51 [1] : vector<128x128xf32> to vector<128xf32>
    %112 = vector.shape_cast %111 : vector<128xf32> to vector<128x1xf32>
    %113 = tpu.reciprocal %112 {approx = true} : vector<128x1xf32> -> vector<128x1xf32>
    %114 = vector.broadcast %113 : vector<128x1xf32> to vector<128x128xf32>
    %115 = arith.mulf %110, %114 : vector<128x128xf32>
    %116 = arith.truncf %115 : vector<128x128xf32> to vector<128x128xbf16>
    %cst_52 = arith.constant dense<0.000000e+00> : vector<128x32xf32>
    %117 = tpu.matmul %116, %104, %cst_52 {dimension_numbers = #tpu.dot_dimension_numbers<[1], [0], [0], [1], [0, 0, 1, 1], [], []>} : vector<128x128xbf16>, vector<128x32xbf16>, vector<128x32xf32> -> vector<128x32xf32>
    %118 = arith.truncf %117 : vector<128x32xf32> to vector<128x32xbf16>
    %c0_53 = arith.constant 0 : index
    %c32 = arith.constant 32 : index
    %119 = vector.load %arg17[%c0_53, %c32] : memref<128x128xbf16, #tpu.memory_space<vmem>>, vector<128x32xbf16>
    tpu.vector_store %arg17[%c0_53, %c32], %118 {strides = array<i32>} : memref<128x128xbf16, #tpu.memory_space<vmem>>, vector<128x32xbf16>,
    %120 = vector.extract_strided_slice %81 {offsets = [0, 64], sizes = [128, 32], strides = [1, 1]} : vector<128x128xbf16> to vector<128x32xbf16>
    %121 = vector.extract_strided_slice %82 {offsets = [0, 64], sizes = [128, 32], strides = [1, 1]} : vector<128x128xbf16> to vector<128x32xbf16>
    %122 = vector.extract_strided_slice %83 {offsets = [0, 64], sizes = [128, 32], strides = [1, 1]} : vector<128x128xbf16> to vector<128x32xbf16>
    %cst_54 = arith.constant dense<0.000000e+00> : vector<128x128xf32>
    %123 = tpu.matmul %120, %121, %cst_54 {dimension_numbers = #tpu.dot_dimension_numbers<[1], [1], [0], [0], [0, 0, 1, 0], [], []>} : vector<128x32xbf16>, vector<128x32xbf16>, vector<128x128xf32> -> vector<128x128xf32>
    %cst_55 = arith.constant dense<0xFF800000> : vector<128xf32>
    %124 = vector.multi_reduction <maximumf>, %123, %cst_55 [1] : vector<128x128xf32> to vector<128xf32>
    %125 = vector.shape_cast %124 : vector<128xf32> to vector<128x1xf32>
    %126 = vector.broadcast %125 : vector<128x1xf32> to vector<128x128xf32>
    %127 = arith.subf %123, %126 : vector<128x128xf32>
    %128 = math.exp %127 : vector<128x128xf32>
    %cst_56 = arith.constant dense<0.000000e+00> : vector<128xf32>
    %129 = vector.multi_reduction <add>, %128, %cst_56 [1] : vector<128x128xf32> to vector<128xf32>
    %130 = vector.shape_cast %129 : vector<128xf32> to vector<128x1xf32>
    %131 = tpu.reciprocal %130 {approx = true} : vector<128x1xf32> -> vector<128x1xf32>
    %132 = vector.broadcast %131 : vector<128x1xf32> to vector<128x128xf32>
    %133 = arith.mulf %128, %132 : vector<128x128xf32>
    %134 = arith.truncf %133 : vector<128x128xf32> to vector<128x128xbf16>
    %cst_57 = arith.constant dense<0.000000e+00> : vector<128x32xf32>
    %135 = tpu.matmul %134, %122, %cst_57 {dimension_numbers = #tpu.dot_dimension_numbers<[1], [0], [0], [1], [0, 0, 1, 1], [], []>} : vector<128x128xbf16>, vector<128x32xbf16>, vector<128x32xf32> -> vector<128x32xf32>
    %136 = arith.truncf %135 : vector<128x32xf32> to vector<128x32xbf16>
    %c0_58 = arith.constant 0 : index
    %c64 = arith.constant 64 : index
    %137 = vector.load %arg17[%c0_58, %c64] : memref<128x128xbf16, #tpu.memory_space<vmem>>, vector<128x32xbf16>
    tpu.vector_store %arg17[%c0_58, %c64], %136 {strides = array<i32>} : memref<128x128xbf16, #tpu.memory_space<vmem>>, vector<128x32xbf16>,
    %138 = vector.extract_strided_slice %81 {offsets = [0, 96], sizes = [128, 32], strides = [1, 1]} : vector<128x128xbf16> to vector<128x32xbf16>
    %139 = vector.extract_strided_slice %82 {offsets = [0, 96], sizes = [128, 32], strides = [1, 1]} : vector<128x128xbf16> to vector<128x32xbf16>
    %140 = vector.extract_strided_slice %83 {offsets = [0, 96], sizes = [128, 32], strides = [1, 1]} : vector<128x128xbf16> to vector<128x32xbf16>
    %cst_59 = arith.constant dense<0.000000e+00> : vector<128x128xf32>
    %141 = tpu.matmul %138, %139, %cst_59 {dimension_numbers = #tpu.dot_dimension_numbers<[1], [1], [0], [0], [0, 0, 1, 0], [], []>} : vector<128x32xbf16>, vector<128x32xbf16>, vector<128x128xf32> -> vector<128x128xf32>
    %cst_60 = arith.constant dense<0xFF800000> : vector<128xf32>
    %142 = vector.multi_reduction <maximumf>, %141, %cst_60 [1] : vector<128x128xf32> to vector<128xf32>
    %143 = vector.shape_cast %142 : vector<128xf32> to vector<128x1xf32>
    %144 = vector.broadcast %143 : vector<128x1xf32> to vector<128x128xf32>
    %145 = arith.subf %141, %144 : vector<128x128xf32>
    %146 = math.exp %145 : vector<128x128xf32>
    %cst_61 = arith.constant dense<0.000000e+00> : vector<128xf32>
    %147 = vector.multi_reduction <add>, %146, %cst_61 [1] : vector<128x128xf32> to vector<128xf32>
    %148 = vector.shape_cast %147 : vector<128xf32> to vector<128x1xf32>
    %149 = tpu.reciprocal %148 {approx = true} : vector<128x1xf32> -> vector<128x1xf32>
    %150 = vector.broadcast %149 : vector<128x1xf32> to vector<128x128xf32>
    %151 = arith.mulf %146, %150 : vector<128x128xf32>
    %152 = arith.truncf %151 : vector<128x128xf32> to vector<128x128xbf16>
    %cst_62 = arith.constant dense<0.000000e+00> : vector<128x32xf32>
    %153 = tpu.matmul %152, %140, %cst_62 {dimension_numbers = #tpu.dot_dimension_numbers<[1], [0], [0], [1], [0, 0, 1, 1], [], []>} : vector<128x128xbf16>, vector<128x32xbf16>, vector<128x32xf32> -> vector<128x32xf32>
    %154 = arith.truncf %153 : vector<128x32xf32> to vector<128x32xbf16>
    %c0_63 = arith.constant 0 : index
    %c96 = arith.constant 96 : index
    %155 = vector.load %arg17[%c0_63, %c96] : memref<128x128xbf16, #tpu.memory_space<vmem>>, vector<128x32xbf16>
    tpu.vector_store %arg17[%c0_63, %c96], %154 {strides = array<i32>} : memref<128x128xbf16, #tpu.memory_space<vmem>>, vector<128x32xbf16>,
    %c0_64 = arith.constant 0 : index
    %c0_65 = arith.constant 0 : index
    %156 = vector.load %arg17[%c0_64, %c0_65] : memref<128x128xbf16, #tpu.memory_space<vmem>>, vector<128x128xbf16>
    %c0_66 = arith.constant 0 : index
    %c0_67 = arith.constant 0 : index
    %157 = vector.load %arg14[%c0_66, %c0_67] : memref<128x128xbf16, #tpu.memory_space<vmem>>, vector<128x128xbf16>
    %cst_68 = arith.constant dense<0.000000e+00> : vector<128x128xf32>
    %158 = tpu.matmul %156, %157, %cst_68 {dimension_numbers = #tpu.dot_dimension_numbers<[1], [0], [0], [1], [0, 0, 1, 1], [], []>} : vector<128x128xbf16>, vector<128x128xbf16>, vector<128x128xf32> -> vector<128x128xf32>
    %c0_69 = arith.constant 0 : index
    %c0_70 = arith.constant 0 : index
    %159 = vector.load %arg15[%c0_69, %c0_70] : memref<1x128xf32, #tpu.memory_space<vmem>>, vector<1x128xf32>
    %160 = vector.broadcast %159 : vector<1x128xf32> to vector<128x128xf32>
    %161 = arith.addf %158, %160 : vector<128x128xf32>
    %c0_71 = arith.constant 0 : index
    %c0_72 = arith.constant 0 : index
    %c0_73 = arith.constant 0 : index
    %162 = vector.load %arg4[%c0_71, %c0_72, %c0_73] : memref<1x128x128xf32, #tpu.memory_space<vmem>>, vector<1x128x128xf32>
    %163 = vector.shape_cast %162 : vector<1x128x128xf32> to vector<128x128xf32>
    %164 = arith.addf %163, %161 : vector<128x128xf32>
    %c0_74 = arith.constant 0 : index
    %c0_75 = arith.constant 0 : index
    %c0_76 = arith.constant 0 : index
    %165 = vector.load %arg16[%c0_74, %c0_75, %c0_76] : memref<1x128x128xf32, #tpu.memory_space<vmem>>, vector<1x128x128xf32>
    %166 = vector.shape_cast %165 : vector<1x128x128xf32> to vector<128x128xf32>
    %167 = vector.shape_cast %164 : vector<128x128xf32> to vector<1x128x128xf32>
    tpu.vector_store %arg16[%c0_74, %c0_75, %c0_76], %167 {strides = array<i32>} : memref<1x128x128xf32, #tpu.memory_space<vmem>>, vector<1x128x128xf32>,
    return
  }
  func.func @transform_0(%arg0: i32) -> (i32, i32, i32) {
    %c0_i32 = arith.constant 0 : i32
    %c0_i32_0 = arith.constant 0 : i32
    %c0_i32_1 = arith.constant 0 : i32
    return %arg0, %c0_i32, %c0_i32_0 : i32, i32, i32
  }
  func.func @transform_1(%arg0: i32) -> (i32, i32, i32) {
    %c0_i32 = arith.constant 0 : i32
    %c0_i32_0 = arith.constant 0 : i32
    %c0_i32_1 = arith.constant 0 : i32
    return %arg0, %c0_i32, %c0_i32_0 : i32, i32, i32
  }
  func.func @transform_2(%arg0: i32) -> (i32, i32, i32) {
    %c0_i32 = arith.constant 0 : i32
    %c0_i32_0 = arith.constant 0 : i32
    %c0_i32_1 = arith.constant 0 : i32
    return %arg0, %c0_i32, %c0_i32_0 : i32, i32, i32
  }
  func.func @transform_3(%arg0: i32) -> (i32, i32, i32) {
    %c0_i32 = arith.constant 0 : i32
    %c0_i32_0 = arith.constant 0 : i32
    %c0_i32_1 = arith.constant 0 : i32
    return %arg0, %c0_i32, %c0_i32_0 : i32, i32, i32
  }
  func.func @transform_4(%arg0: i32) -> (i32, i32) {
    %c0_i32 = arith.constant 0 : i32
    %c0_i32_0 = arith.constant 0 : i32
    %c0_i32_1 = arith.constant 0 : i32
    return %c0_i32, %c0_i32_0 : i32, i32
  }
  func.func @transform_5(%arg0: i32) -> (i32, i32) {
    %c0_i32 = arith.constant 0 : i32
    %c0_i32_0 = arith.constant 0 : i32
    %c0_i32_1 = arith.constant 0 : i32
    return %c0_i32, %c0_i32_0 : i32, i32
  }
  func.func @transform_6(%arg0: i32) -> (i32, i32) {
    %c0_i32 = arith.constant 0 : i32
    %c0_i32_0 = arith.constant 0 : i32
    %c0_i32_1 = arith.constant 0 : i32
    return %c0_i32, %c0_i32_0 : i32, i32
  }
  func.func @transform_7(%arg0: i32) -> (i32, i32) {
    %c0_i32 = arith.constant 0 : i32
    %c0_i32_0 = arith.constant 0 : i32
    %c0_i32_1 = arith.constant 0 : i32
    return %c0_i32, %c0_i32_0 : i32, i32
  }
  func.func @transform_8(%arg0: i32) -> (i32, i32) {
    %c0_i32 = arith.constant 0 : i32
    %c0_i32_0 = arith.constant 0 : i32
    %c0_i32_1 = arith.constant 0 : i32
    return %c0_i32, %c0_i32_0 : i32, i32
  }
  func.func @transform_9(%arg0: i32) -> (i32, i32) {
    %c0_i32 = arith.constant 0 : i32
    %c0_i32_0 = arith.constant 0 : i32
    %c0_i32_1 = arith.constant 0 : i32
    return %c0_i32, %c0_i32_0 : i32, i32
  }
  func.func @transform_10(%arg0: i32) -> (i32, i32) {
    %c0_i32 = arith.constant 0 : i32
    %c0_i32_0 = arith.constant 0 : i32
    %c0_i32_1 = arith.constant 0 : i32
    return %c0_i32, %c0_i32_0 : i32, i32
  }
  func.func @transform_11(%arg0: i32) -> (i32, i32) {
    %c0_i32 = arith.constant 0 : i32
    %c0_i32_0 = arith.constant 0 : i32
    %c0_i32_1 = arith.constant 0 : i32
    return %c0_i32, %c0_i32_0 : i32, i32
  }
  func.func @transform_12(%arg0: i32) -> (i32, i32) {
    %c0_i32 = arith.constant 0 : i32
    %c0_i32_0 = arith.constant 0 : i32
    %c0_i32_1 = arith.constant 0 : i32
    return %c0_i32, %c0_i32_0 : i32, i32
  }
  func.func @transform_13(%arg0: i32) -> (i32, i32) {
    %c0_i32 = arith.constant 0 : i32
    %c0_i32_0 = arith.constant 0 : i32
    %c0_i32_1 = arith.constant 0 : i32
    return %c0_i32, %c0_i32_0 : i32, i32
  }
  func.func @transform_14(%arg0: i32) -> (i32, i32) {
    %c0_i32 = arith.constant 0 : i32
    %c0_i32_0 = arith.constant 0 : i32
    %c0_i32_1 = arith.constant 0 : i32
    return %c0_i32, %c0_i32_0 : i32, i32
  }
  func.func @transform_15(%arg0: i32) -> (i32, i32, i32) {
    %c0_i32 = arith.constant 0 : i32
    %c0_i32_0 = arith.constant 0 : i32
    %c0_i32_1 = arith.constant 0 : i32
    return %arg0, %c0_i32, %c0_i32_0 : i32, i32, i32
  }
}

</mosaic_0001>

<bundles_post_ra>
// kernel: tpu_custom_call.1
= control target key start
LH: loop header
LB: loop body
LE: loop exit
PB: predicated region body
PF: predicated region fallthrough
CT: control target
= control target key end

     0   :  { %s8578_s0 = inlined_call_operand.hbm [shape: f32[2,128,128], index: 0, kind: input, shape index: {}]   ;;  %s8579_s1 = inlined_call_operand.hbm [shape: f32[2,128,128], index: 1, kind: input, shape index: {}]   ;;  %s8580_s2 = inlined_call_operand.hbm [shape: f32[2,128,128], index: 2, kind: input, shape index: {}]   ;;  %s8581_s3 = inlined_call_operand.hbm [shape: f32[2,128,128], index: 3, kind: input, shape index: {}, may-alias: {3,15}]   ;;  %s8582_s4 = inlined_call_operand.hbm [shape: f32[1,128], index: 4, kind: input, shape index: {}]   ;;  %s8583_s5 = inlined_call_operand.hbm [shape: f32[1,128], index: 5, kind: input, shape index: {}]   ;;  %s8584_s6 = inlined_call_operand.hbm [shape: f32[1,128], index: 6, kind: input, shape index: {}]   ;;  %s8585_s7 = inlined_call_operand.hbm [shape: f32[1,128], index: 7, kind: input, shape index: {}]   ;;  %s8586_s8 = inlined_call_operand.hbm [shape: f32[1,128], index: 8, kind: input, shape index: {}]   ;;  %s8587_s9 = inlined_call_operand.hbm [shape: f32[1,128], index: 9, kind: input, shape index: {}]   ;;  %s8588_s10 = inlined_call_operand.hbm [shape: bf16[128,128], index: 10, kind: input, shape index: {}]   ;;  %s8589_s11 = inlined_call_operand.hbm [shape: bf16[128,128], index: 11, kind: input, shape index: {}]   ;;  %s8590_s12 = inlined_call_operand.hbm [shape: bf16[128,128], index: 12, kind: input, shape index: {}]   ;;  %s8591_s13 = inlined_call_operand.hbm [shape: bf16[128,128], index: 13, kind: input, shape index: {}]   ;;  %s8592_s14 = inlined_call_operand.hbm [shape: f32[1,128], index: 14, kind: input, shape index: {}]   ;;  %s8593_s15 = inlined_call_operand.hbm [shape: f32[2,128,128], index: 15, kind: output, shape index: {}, may-alias: {3,15}]  }
   0x1   :  { %8634 = sst [smem:[#allocation50_spill]] %s8578_s0 }
   0x2   :  { %8635 = sst [smem:[#allocation51_spill]] %s8579_s1 }
   0x3   :  { %8636 = sst [smem:[#allocation52_spill]] %s8580_s2 }
   0x4   :  { %8637 = sst [smem:[#allocation53_spill]] %s8581_s3 }
   0x5   :  { %8638 = sst [smem:[#allocation54_spill]] %s8582_s4 }
   0x6   :  { %8639 = sst [smem:[#allocation55_spill]] %s8583_s5 }
   0x7   :  { %8640 = sst [smem:[#allocation56_spill]] %s8585_s7 }
   0x8   :  { %8641 = sst [smem:[#allocation57_spill]] %s8587_s9 }
   0x9   :  { %8642 = sst [smem:[#allocation58_spill]] %s8589_s11 }
   0xa   :  { %8643 = sst [smem:[#allocation59_spill]] %s8591_s13 }
   0xb   :  { %8644 = sst [smem:[#allocation60_spill]] %s8592_s14 }
   0xc   :  { %8645 = sst [smem:[#allocation61_spill]] %s8593_s15 }
   0xd   :  { %20 = vsyncpa [#allocation4], 0 }
   0xe   :  { %22 = vsyncpa [#allocation4 + $0x1], 0 }
   0xf   :  { %23 = vsyncpa [#allocation7], 0 }
  0x10   :  { %25 = vsyncpa [#allocation7 + $0x1], 0 }
  0x11   :  { %26 = vsyncpa [#allocation10], 0 }
  0x12   :  { %28 = vsyncpa [#allocation10 + $0x1], 0 }
  0x13   :  { %29 = vsyncpa [#allocation13], 0 }
  0x14   :  { %30 = vsyncpa [#allocation16], 0 }
  0x15   :  { %31 = vsyncpa [#allocation19], 0 }
  0x16   :  { %32 = vsyncpa [#allocation22], 0 }
  0x17   :  { %33 = vsyncpa [#allocation25], 0 }
  0x18   :  { %34 = vsyncpa [#allocation5], 0 }
  0x19   :  { %36 = vsyncpa [#allocation5 + $0x1], 0  ;;  %s6365_s18 = smov 0   ;;  %s6367_s19 = smov 0  }
  0x1a   :  { %s6369_s20 = smov 0   ;;  %s6371_s21 = smov 0  }
  0x1b LB: > { %8646 = sst [smem:[#allocation38_spill]] %s6246_s18  ;;  %s6260_s22 = smov [#allocation11]   ;;  %s6258_s21 = sphi %s6371_s21, %s8729_s21   ;;  %s6254_s20 = sphi %s6369_s20, %s8733_s20   ;;  %s6250_s19 = sphi %s6367_s19, %s8732_s19   ;;  %s6246_s18 = sphi %s6365_s18, %s8731_s18  }
  0x1c   : > { %s421_s23 = sshll.u32 %s6260_s22, 4  ;;  %s6386_s24 = sadd.s32 4294967295, %s6258_s21   ;;  %s6391_s23 = int_to_ptr.vmem [resolvable:$true] %s421_s23 }
  0x1d   : > { %p4436_p0 = scmp.ge.s32.totalorder %s6258_s21, 1  ;;  %p8600_p1 = scmp.eq.s32.totalorder %s6386_s24, 0 }
  0x1e   : > { %p408_p2 = scmp.lt.s32.totalorder %s6258_s21, 3  ;;  %s6261_s26 = smov [#allocation12]  }
  0x1f   : > { %s432_s27 = sshll.u32 %s6261_s26, 4  ;;  %s6262_s28 = smov [#allocation15]   ;;  %s6400_s27 = int_to_ptr.vmem [resolvable:$true] %s432_s27 }
  0x20   : > { %p6393_p3 = pnand %p4436_p0, %p408_p2  ;;  %s454_s29 = sshll.u32 %s6262_s28, 4  ;;  %s6408_s29 = int_to_ptr.vmem [resolvable:$true] %s454_s29 }
  0x21   : > { %s6263_s16 = smov [#allocation18]   ;;  %s8650_s4 = sld [smem:[#allocation54_spill]] }
  0x22   : > { %s8647_s25 = scalar_select %p6393_p3, 1, 0 }
  0x23   : > { %p5221_p5 = pneg %p6393_p3  ;;  %s6410_s17 = sshll.u32 %s6263_s16, 4  ;;  %s477_s17 = int_to_ptr.vmem [resolvable:$true] %s6410_s17 }
  0x24   : > { %8648 = sst [smem:[#allocation39_spill]] %s8647_s25 }
  0x25   : > { %p6404_p6 = pnand %p5221_p5, %p8600_p1 }
  0x27   : > { %s8649_s30 = scalar_select %p6404_p6, 1, 0 }
  0x28   : > { %s5732_s25 = scalar_lea.hbm %s8650_s4, 16  ;;  %p6420_p8 = pneg %p6404_p6 }
  0x29   : > { %p5733_p7 = scmp.ne.s32.totalorder %s8650_s4, %s5732_s25  ;;  %p5739_p11 = scmp.lt.u32.totalorder %s5732_s25, %s8650_s4 }
  0x2a   : > { %s8651_s28 = scalar_select %p6420_p8, 1, 0 }
  0x2b   : > { %p5735_p9 = pnand %p6420_p8, %p5733_p7 }
  0x2d   : > { %p5736_p10 = pneg %p5735_p9 }
  0x2f   : > { %p5741_p12 = pnand %p5739_p11, %p5736_p10 }
  0x31   : > { %5744 = shalt.err (!%p5741_p12)
}
  0x32   : > { %s5745_s3 = scalar_lea.vmem %s6391_s23, 16  ;;  %s5752_s15 = scalar_lea.vmem %s6391_s23, 32 }
  0x33   : > { %p5746_p13 = scmp.ne.s32.totalorder %s6391_s23, %s5745_s3  ;;  %p5753_p5 = scmp.lt.s32.totalorder %s6391_s23, %s6391_s23 }
  0x34   : > { %p5754_p7 = scmp.lt.s32.totalorder %s5752_s15, %s5745_s3 }
  0x35   : > { %p5748_p0 = pnand %p5746_p13, %p6420_p8 }
  0x36   : > { %p5755_p9 = por %p5754_p7, %p5753_p5 }
  0x37   : > { %p5749_p2 = pneg %p5748_p0 }
  0x39   : > { %p5756_p4 = pnand %p5755_p9, %p5749_p2 }
  0x3b   : > { %5759 = shalt.err (!%p5756_p4)
}
  0x3c   : > { %5224 = dma.hbm_to_vmem [thread:$0]  (!%p6404_p6), %s8650_s4, 16, %s6391_s23, [#allocation10]  }
  0x3d   : > { %s8652_s5 = sld [smem:[#allocation55_spill]] }
  0x43   : > { %s5760_s16 = scalar_lea.hbm %s8652_s5, 16 }
  0x44   : > { %p5761_p10 = scmp.ne.s32.totalorder %s8652_s5, %s5760_s16  ;;  %p5767_p4 = scmp.lt.u32.totalorder %s5760_s16, %s8652_s5 }
  0x46   : > { %p5763_p11 = pnand %p5761_p10, %p6420_p8 }
  0x48   : > { %p5764_p12 = pneg %p5763_p11 }
  0x4a   : > { %p5769_p13 = pnand %p5767_p4, %p5764_p12 }
  0x4c   : > { %5772 = shalt.err (!%p5769_p13)
}
  0x4d   : > { %s5773_s23 = scalar_lea.vmem %s6400_s27, 16  ;;  %s5780_s0 = scalar_lea.vmem %s6400_s27, 32 }
  0x4e   : > { %p5774_p0 = scmp.ne.s32.totalorder %s6400_s27, %s5773_s23  ;;  %p5781_p7 = scmp.lt.s32.totalorder %s6400_s27, %s6400_s27 }
  0x4f   : > { %p5782_p9 = scmp.lt.s32.totalorder %s5780_s0, %s5773_s23 }
  0x50   : > { %p5776_p2 = pnand %p5774_p0, %p6420_p8 }
  0x51   : > { %p5783_p10 = por %p5782_p9, %p5781_p7 }
  0x52   : > { %p5777_p5 = pneg %p5776_p2 }
  0x54   : > { %p5784_p11 = pnand %p5783_p10, %p5777_p5 }
  0x56   : > { %5787 = shalt.err (!%p5784_p11)
}
  0x57   : > { %5227 = dma.hbm_to_vmem [thread:$0]  (!%p6404_p6), %s8652_s5, 16, %s6400_s27, [#allocation13]  }
  0x58   : > { %s8653_s7 = sld [smem:[#allocation56_spill]] }
  0x5e   : > { %s5788_s26 = scalar_lea.hbm %s8653_s7, 16 }
  0x5f   : > { %p5789_p12 = scmp.ne.s32.totalorder %s8653_s7, %s5788_s26  ;;  %p5795_p0 = scmp.lt.u32.totalorder %s5788_s26, %s8653_s7 }
  0x61   : > { %p5791_p4 = pnand %p5789_p12, %p6420_p8 }
  0x63   : > { %p5792_p13 = pneg %p5791_p4 }
  0x65   : > { %p5797_p2 = pnand %p5795_p0, %p5792_p13 }
  0x67   : > { %5800 = shalt.err (!%p5797_p2)
}
  0x68   : > { %s5801_s27 = scalar_lea.vmem %s6408_s29, 16  ;;  %s5808_s0 = scalar_lea.vmem %s6408_s29, 32 }
  0x69   : > { %p5802_p5 = scmp.ne.s32.totalorder %s6408_s29, %s5801_s27  ;;  %p5809_p10 = scmp.lt.s32.totalorder %s6408_s29, %s6408_s29 }
  0x6a   : > { %p5810_p11 = scmp.lt.s32.totalorder %s5808_s0, %s5801_s27 }
  0x6b   : > { %p5804_p7 = pnand %p5802_p5, %p6420_p8 }
  0x6c   : > { %p5811_p12 = por %p5810_p11, %p5809_p10 }
  0x6d   : > { %p5805_p9 = pneg %p5804_p7 }
  0x6f   : > { %p5812_p4 = pnand %p5811_p12, %p5805_p9 }
  0x71   : > { %5815 = shalt.err (!%p5812_p4)
}
  0x72   : > { %5233 = dma.hbm_to_vmem [thread:$0]  (!%p6404_p6), %s8653_s7, 16, %s6408_s29, [#allocation16]  }
  0x73   : > { %s8654_s9 = sld [smem:[#allocation57_spill]] }
  0x79   : > { %s5816_s26 = scalar_lea.hbm %s8654_s9, 16 }
  0x7a   : > { %p5817_p13 = scmp.ne.s32.totalorder %s8654_s9, %s5816_s26  ;;  %p5823_p5 = scmp.lt.u32.totalorder %s5816_s26, %s8654_s9 }
  0x7c   : > { %p5819_p0 = pnand %p5817_p13, %p6420_p8 }
  0x7e   : > { %p5820_p2 = pneg %p5819_p0 }
  0x80   : > { %p5825_p7 = pnand %p5823_p5, %p5820_p2 }
  0x82   : > { %5828 = shalt.err (!%p5825_p7)
}
  0x83   : > { %s5829_s27 = scalar_lea.vmem %s477_s17, 16  ;;  %s5836_s29 = scalar_lea.vmem %s477_s17, 32 }
  0x84   : > { %p5830_p9 = scmp.ne.s32.totalorder %s477_s17, %s5829_s27  ;;  %p5837_p12 = scmp.lt.s32.totalorder %s477_s17, %s477_s17 }
  0x85   : > { %p5838_p4 = scmp.lt.s32.totalorder %s5836_s29, %s5829_s27 }
  0x86   : > { %p5832_p10 = pnand %p5830_p9, %p6420_p8 }
  0x87   : > { %p5839_p1 = por %p5838_p4, %p5837_p12 }
  0x88   : > { %p5833_p11 = pneg %p5832_p10 }
  0x8a   : > { %p5840_p3 = pnand %p5839_p1, %p5833_p11 }
  0x8c   : > { %5843 = shalt.err (!%p5840_p3)
}
  0x8d   : > { %5239 = dma.hbm_to_vmem [thread:$0]  (!%p6404_p6), %s8654_s9, 16, %s477_s17, [#allocation19]  }
  0x8e   : > { %s6264_s2 = smov [#allocation21]   ;;  %s6265_s22 = smov [#allocation24]  }
  0x8f   : > { %s499_s25 = sshll.u32 %s6264_s2, 4  ;;  %s525_s26 = sshll.u32 %s6265_s22, 4  ;;  %s500_s25 = int_to_ptr.vmem [resolvable:$true] %s499_s25  ;;  %s6509_s26 = int_to_ptr.vmem [resolvable:$true] %s525_s26 }
  0x90   : > { %s8655_s11 = sld [smem:[#allocation58_spill]] }
  0x96   : > { %s5844_s15 = scalar_lea.hbm %s8655_s11, 1024 }
  0x97   : > { %p5845_p1 = scmp.ne.s32.totalorder %s8655_s11, %s5844_s15  ;;  %p5851_p0 = scmp.lt.u32.totalorder %s5844_s15, %s8655_s11 }
  0x99   : > { %p5847_p3 = pnand %p5845_p1, %p6420_p8 }
  0x9b   : > { %p5848_p13 = pneg %p5847_p3 }
  0x9d   : > { %p5853_p2 = pnand %p5851_p0, %p5848_p13 }
  0x9f   : > { %5856 = shalt.err (!%p5853_p2)
}
  0xa0   : > { %s5857_s0 = scalar_lea.vmem %s500_s25, 1024  ;;  %p5865_p10 = scmp.lt.s32.totalorder %s500_s25, %s500_s25 }
  0xa1   : > { %p5858_p5 = scmp.ne.s32.totalorder %s500_s25, %s5857_s0  ;;  %p5866_p11 = scmp.lt.s32.totalorder %s5857_s0, %s5857_s0 }
  0xa3   : > { %p5860_p7 = pnand %p5858_p5, %p6420_p8  ;;  %p5867_p12 = por %p5866_p11, %p5865_p10 }
  0xa5   : > { %p5861_p9 = pneg %p5860_p7 }
  0xa7   : > { %p5868_p4 = pnand %p5867_p12, %p5861_p9 }
  0xa9   : > { %5871 = shalt.err (!%p5868_p4)
}
  0xaa   : > { %s8602_s14 = smov 64   ;;  %s8604_s2 = smov 4  }
  0xab   : > { %5245 = dma.hbm_to_vmem [thread:$0]  (!%p6404_p6), %s8655_s11, 1024, %s500_s25, [#allocation22], %s8602_s14, %s8602_s14, %s8604_s2  }
  0xac   : > { %s8656_s13 = sld [smem:[#allocation59_spill]] }
  0xb2   : > { %s5872_s23 = scalar_lea.hbm %s8656_s13, 1024 }
  0xb3   : > { %p5873_p1 = scmp.ne.s32.totalorder %s8656_s13, %s5872_s23  ;;  %p5879_p0 = scmp.lt.u32.totalorder %s5872_s23, %s8656_s13 }
  0xb5   : > { %p5875_p3 = pnand %p5873_p1, %p6420_p8 }
  0xb7   : > { %p5876_p13 = pneg %p5875_p3 }
  0xb9   : > { %p5881_p2 = pnand %p5879_p0, %p5876_p13 }
  0xbb   : > { %5884 = shalt.err (!%p5881_p2)
}
  0xbc   : > { %s5885_s25 = scalar_lea.vmem %s6509_s26, 1024  ;;  %p5893_p10 = scmp.lt.s32.totalorder %s6509_s26, %s6509_s26 }
  0xbd   : > { %p5886_p5 = scmp.ne.s32.totalorder %s6509_s26, %s5885_s25  ;;  %p5894_p11 = scmp.lt.s32.totalorder %s5885_s25, %s5885_s25 }
  0xbf   : > { %p5888_p7 = pnand %p5886_p5, %p6420_p8  ;;  %p5895_p12 = por %p5894_p11, %p5893_p10 }
  0xc1   : > { %p5889_p9 = pneg %p5888_p7 }
  0xc3   : > { %p5896_p4 = pnand %p5895_p12, %p5889_p9 }
  0xc5   : > { %5899 = shalt.err (!%p5896_p4)
}
  0xc6   : > { %5251 = dma.hbm_to_vmem [thread:$0]  (!%p6404_p6), %s8656_s13, 1024, %s6509_s26, [#allocation25], %s8602_s14, %s8602_s14, %s8604_s2  }
  0xc7   : > { %s4435_s3 = sadd.s32 4294967294, %s6258_s21   ;;  %s6560_s15 = sadd.s32 1, %s6258_s21  }
  0xc8   : > { %8657 = sst [smem:[#allocation40_spill]] %s6560_s15  ;;  %s46_s23 = ssub.s32 %s6258_s21, %s6560_s15 }
  0xc9   : > { %s49_s27 = sadd.s32 1, %s6254_s20  ;;  %p47_p1 = scmp.eq.s32.totalorder %s46_s23, 0 }
  0xca   : > { %p56_p3 = scmp.ne.s32.totalorder %s6254_s20, %s6250_s19  ;;  %p57_p13 = scmp.eq.s32.totalorder %s6258_s21, 0 }
  0xcb   : > { %p62_p0 = scmp.ne.s32.totalorder %s6250_s19, %s6246_s18  ;;  %p8659_p5 = scmp.eq.s32.totalorder %s6386_s24, 0 }
  0xcc   : > { %s6571_s29 = scalar_select %p47_p1, %s6254_s20, %s49_s27  }
  0xcd   : > { %p58_p2 = por %p57_p13, %p56_p3  ;;  %p6575_p7 = por %p8659_p5, %p62_p0 }
  0xce   : > { %8658 = sst [smem:[#allocation41_spill]] %s6571_s29  ;;  %p395_p9 = scmp.eq.s32.totalorder %s6386_s24, 1 }
  0xcf   : > { %s8660_s26 = scalar_select %p6575_p7, 1, 0 }
  0xd0   : > { %p401_p10 = scmp.eq.s32.totalorder %s4435_s3, 1  ;;  %p5283_p11 = scmp.lt.s32.totalorder %s6258_s21, 2 }
  0xd1   : > { %s8606_s17 = sand.u32 1, %s6254_s20   ;;  %p6582_p12 = por %p395_p9, %p56_p3 }
  0xd2   : > { %p6586_p4 = por %p401_p10, %p62_p0  ;;  %s6592_s22 = sshll.u32 %s8606_s17, 7 }
  0xd3   : > { %s8661_s0 = scalar_select %p6582_p12, 1, 0 }
  0xd4   : > { %s8663_s25 = scalar_select %p6586_p4, 1, 0 }
  0xd5   : > { %8662 = sst [smem:[#allocation42_spill]] %s8661_s0  ;;  %s6595_s16 = sshll.u32 %s6258_s21, 11 }
  0xd6   : > { %8664 = sst [smem:[#allocation43_spill]] %s8663_s25  ;;  %p6597_p1 = pnand %p5283_p11, %p58_p2 }
  0xd7   : > { %s8608_s3 = sand.u32 1, %s6258_s21   ;;  %s8666_s1 = sld [smem:[#allocation51_spill]] }
  0xd8   : > { %s8665_s23 = scalar_select %p6597_p1, 1, 0 }
  0xd9   : > { %s575_s17 = scalar_lea.vmem [#allocation6], %s6592_s22  ;;  %s6613_s5 = scalar_lea.sflag [#allocation7], %s8608_s3 }
  0xda   : > { %s582_s4 = sshll.u32 %s575_s17, 4  ;;  %p6619_p13 = pneg %p6597_p1  ;;  %s6609_s4 = int_to_ptr.vmem [resolvable:$true] %s582_s4 }
  0xdc   : > { %s8667_s9 = scalar_select %p6619_p13, 1, 0 }
  0xdd   : > { %s6606_s2 = scalar_lea.hbm %s8666_s1, %s6595_s16  ;;  %s5905_s17 = scalar_lea.hbm %s8666_s1, 4096 }
  0xde   : > { %s5900_s7 = scalar_lea.hbm %s6606_s2, 2048  ;;  %p5906_p5 = scmp.lt.u32.totalorder %s6606_s2, %s8666_s1 }
  0xdf   : > { %p5901_p3 = scmp.ne.s32.totalorder %s6606_s2, %s5900_s7  ;;  %p5907_p9 = scmp.lt.u32.totalorder %s5905_s17, %s5900_s7 }
  0xe0   : > { %p5909_p11 = scmp.lt.u32.totalorder %s5900_s7, %s6606_s2 }
  0xe1   : > { %p5903_p0 = pnand %p6619_p13, %p5901_p3  ;;  %p5908_p10 = por %p5907_p9, %p5906_p5 }
  0xe3   : > { %p5904_p2 = pneg %p5903_p0  ;;  %p5910_p4 = por %p5909_p11, %p5908_p10 }
  0xe5   : > { %p5911_p12 = pnand %p5910_p4, %p5904_p2 }
  0xe7   : > { %5914 = shalt.err (!%p5911_p12)
}
  0xe8   : > { %s5915_s3 = scalar_lea.vmem %s6609_s4, 2048  ;;  %s6268_s14 = smov [#allocation6]  }
  0xe9   : > { %p5916_p3 = scmp.ne.s32.totalorder %s6609_s4, %s5915_s3  ;;  %s5920_s27 = sshll.u32 %s6268_s14, 4  ;;  %s5921_s27 = int_to_ptr.vmem [resolvable:$false] %s5920_s27 }
  0xea   : > { %s5922_s11 = scalar_lea.vmem %s5921_s27, 4096  ;;  %p5923_p6 = scmp.lt.s32.totalorder %s6609_s4, %s5921_s27 }
  0xeb   : > { %p5918_p0 = pnand %p5916_p3, %p6619_p13  ;;  %p5924_p8 = scmp.lt.s32.totalorder %s5922_s11, %s5915_s3 }
  0xed   : > { %p5919_p7 = pneg %p5918_p0  ;;  %p5925_p5 = por %p5924_p8, %p5923_p6 }
  0xef   : > { %p5926_p9 = pnand %p5925_p5, %p5919_p7 }
  0xf1   : > { %5929 = shalt.err (!%p5926_p9)
}
  0xf2   : > { %s8624_s7 = smov 128   ;;  %s8626_s13 = smov 8  }
  0xf3   : > { %5261 = dma.hbm_to_vmem [thread:$0]  (!%p6597_p1), %s6606_s2, 2048, %s6609_s4, %s6613_s5, %s8624_s7, %s8624_s7, %s8626_s13  }
  0xf4   : > { %s6271_s17 = smov [#allocation14]   ;;  %s6272_s27 = smov [#allocation17]  }
  0xf5   : > { %s443_s14 = sshll.u32 %s6271_s17, 4  ;;  %s465_s3 = sshll.u32 %s6272_s27, 4  ;;  %s444_s14 = int_to_ptr.vmem [resolvable:$true] %s443_s14  ;;  %s466_s3 = int_to_ptr.vmem [resolvable:$true] %s465_s3 }
  0xf6   : > { %s5930_s29 = scalar_lea.hbm %s8584_s6, 16  ;;  %p8668_p8 = scmp.ne.s32.totalorder %s8651_s28, 0 }
  0xf7   : > { %p5931_p6 = scmp.ne.s32.totalorder %s8584_s6, %s5930_s29  ;;  %p5937_p4 = scmp.lt.u32.totalorder %s5930_s29, %s8584_s6 }
  0xf9   : > { %p5933_p7 = pnand %p5931_p6, %p8668_p8 }
  0xfb   : > { %p5934_p12 = pneg %p5933_p7 }
  0xfd   : > { %p5939_p2 = pnand %p5937_p4, %p5934_p12 }
  0xff   : > { %5942 = shalt.err (!%p5939_p2)
}
 0x100   : > { %s5943_s4 = scalar_lea.vmem %s444_s14, 16  ;;  %s5950_s1 = scalar_lea.vmem %s444_s14, 32 }
 0x101   : > { %p5944_p10 = scmp.ne.s32.totalorder %s444_s14, %s5943_s4  ;;  %p5951_p0 = scmp.lt.s32.totalorder %s444_s14, %s444_s14 }
 0x102   : > { %p5952_p5 = scmp.lt.s32.totalorder %s5950_s1, %s5943_s4 }
 0x103   : > { %p5946_p11 = pnand %p5944_p10, %p8668_p8 }
 0x104   : > { %p5953_p9 = por %p5952_p5, %p5951_p0 }
 0x105   : > { %p5947_p3 = pneg %p5946_p11 }
 0x107   : > { %p5954_p1 = pnand %p5953_p9, %p5947_p3 }
 0x109   : > { %5957 = shalt.err (!%p5954_p1)
}
 0x10a   : > { %p8669_p6 = scmp.ne.s32.totalorder %s8649_s30, 0  ;;  %s5958_s0 = scalar_lea.hbm %s8586_s8, 16 }
 0x10b   : > { %p5959_p7 = scmp.ne.s32.totalorder %s8586_s8, %s5958_s0  ;;  %p5965_p1 = scmp.lt.u32.totalorder %s5958_s0, %s8586_s8 }
 0x10c   : > { %5230 = dma.hbm_to_vmem [thread:$0]  (!%p8669_p6), %s8584_s6, 16, %s444_s14, [#allocation13]  }
 0x10d   : > { %p5961_p12 = pnand %p5959_p7, %p8668_p8 }
 0x10f   : > { %p5962_p4 = pneg %p5961_p12 }
 0x111   : > { %p5967_p2 = pnand %p5965_p1, %p5962_p4 }
 0x113   : > { %5970 = shalt.err (!%p5967_p2)
}
 0x114   : > { %s5971_s4 = scalar_lea.vmem %s466_s3, 16  ;;  %s5978_s14 = scalar_lea.vmem %s466_s3, 32 }
 0x115   : > { %p5972_p10 = scmp.ne.s32.totalorder %s466_s3, %s5971_s4  ;;  %p5979_p0 = scmp.lt.s32.totalorder %s466_s3, %s466_s3 }
 0x116   : > { %p5980_p5 = scmp.lt.s32.totalorder %s5978_s14, %s5971_s4 }
 0x117   : > { %p5974_p11 = pnand %p5972_p10, %p8668_p8 }
 0x118   : > { %p5981_p9 = por %p5980_p5, %p5979_p0 }
 0x119   : > { %p5975_p3 = pneg %p5974_p11 }
 0x11b   : > { %p5982_p13 = pnand %p5981_p9, %p5975_p3 }
 0x11d   : > { %5985 = shalt.err (!%p5982_p13)
}
 0x11e   : > { %5236 = dma.hbm_to_vmem [thread:$0]  (!%p8669_p6), %s8586_s8, 16, %s466_s3, [#allocation16]  }
 0x11f   : > { %s6273_s15 = smov [#allocation20]   ;;  %s6274_s29 = smov [#allocation23]  }
 0x120   : > { %s486_s18 = sshll.u32 %s6273_s15, 4  ;;  %s512_s0 = sshll.u32 %s6274_s29, 4  ;;  %s487_s18 = int_to_ptr.vmem [resolvable:$true] %s486_s18  ;;  %s513_s0 = int_to_ptr.vmem [resolvable:$true] %s512_s0 }
 0x121   : > { %s5986_s27 = scalar_lea.hbm %s8588_s10, 1024 }
 0x122   : > { %p5987_p13 = scmp.ne.s32.totalorder %s8588_s10, %s5986_s27  ;;  %p5993_p4 = scmp.lt.u32.totalorder %s5986_s27, %s8588_s10 }
 0x124   : > { %p5989_p7 = pnand %p5987_p13, %p8668_p8 }
 0x126   : > { %p5990_p12 = pneg %p5989_p7 }
 0x128   : > { %p5995_p1 = pnand %p5993_p4, %p5990_p12 }
 0x12a   : > { %5998 = shalt.err (!%p5995_p1)
}
 0x12b   : > { %s5999_s3 = scalar_lea.vmem %s487_s18, 1024  ;;  %p6007_p3 = scmp.lt.s32.totalorder %s487_s18, %s487_s18 }
 0x12c   : > { %p6000_p2 = scmp.ne.s32.totalorder %s487_s18, %s5999_s3  ;;  %p6008_p0 = scmp.lt.s32.totalorder %s5999_s3, %s5999_s3 }
 0x12e   : > { %p6002_p10 = pnand %p6000_p2, %p8668_p8  ;;  %p6009_p5 = por %p6008_p0, %p6007_p3 }
 0x130   : > { %p6003_p11 = pneg %p6002_p10 }
 0x132   : > { %p6010_p9 = pnand %p6009_p5, %p6003_p11 }
 0x134   : > { %6013 = shalt.err (!%p6010_p9)
}
 0x135   : > { %s8670_s2 = smov 4   ;;  %s8671_s15 = smov 64  }
 0x136   : > { %5242 = dma.hbm_to_vmem [thread:$0]  (!%p8669_p6), %s8588_s10, 1024, %s487_s18, [#allocation19], %s8671_s15, %s8671_s15, %s8670_s2  }
 0x137   : > { %s6014_s11 = scalar_lea.hbm %s8590_s12, 1024 }
 0x138   : > { %p6015_p13 = scmp.ne.s32.totalorder %s8590_s12, %s6014_s11  ;;  %p6021_p4 = scmp.lt.u32.totalorder %s6014_s11, %s8590_s12 }
 0x13a   : > { %p6017_p7 = pnand %p6015_p13, %p8668_p8 }
 0x13c   : > { %p6018_p12 = pneg %p6017_p7 }
 0x13e   : > { %p6023_p1 = pnand %p6021_p4, %p6018_p12 }
 0x140   : > { %6026 = shalt.err (!%p6023_p1)
}
 0x141   : > { %s6027_s29 = scalar_lea.vmem %s513_s0, 1024  ;;  %p6035_p3 = scmp.lt.s32.totalorder %s513_s0, %s513_s0 }
 0x142   : > { %p6028_p2 = scmp.ne.s32.totalorder %s513_s0, %s6027_s29  ;;  %p6036_p0 = scmp.lt.s32.totalorder %s6027_s29, %s6027_s29 }
 0x144   : > { %p6030_p10 = pnand %p6028_p2, %p8668_p8  ;;  %p6037_p5 = por %p6036_p0, %p6035_p3 }
 0x146   : > { %p6031_p11 = pneg %p6030_p10 }
 0x148   : > { %p6038_p9 = pnand %p6037_p5, %p6031_p11 }
 0x14a   : > { %6041 = shalt.err (!%p6038_p9)
}
 0x14b   : > { %5248 = dma.hbm_to_vmem [thread:$0]  (!%p8669_p6), %s8590_s12, 1024, %s513_s0, [#allocation22], %s8671_s15, %s8671_s15, %s8670_s2  }
 0x14c   : > { %s6275_s17 = smov [#allocation26]   ;;  %s8672_s14 = sld [smem:[#allocation60_spill]] }
 0x14d   : > { %s539_s27 = sshll.u32 %s6275_s17, 4  ;;  %s540_s27 = int_to_ptr.vmem [resolvable:$true] %s539_s27 }
 0x152   : > { %s6042_s1 = scalar_lea.hbm %s8672_s14, 16 }
 0x153   : > { %p6043_p13 = scmp.ne.s32.totalorder %s8672_s14, %s6042_s1  ;;  %p6049_p4 = scmp.lt.u32.totalorder %s6042_s1, %s8672_s14 }
 0x155   : > { %p6045_p7 = pnand %p6043_p13, %p8668_p8 }
 0x157   : > { %p6046_p12 = pneg %p6045_p7 }
 0x159   : > { %p6051_p1 = pnand %p6049_p4, %p6046_p12 }
 0x15b   : > { %6054 = shalt.err (!%p6051_p1)
}
 0x15c   : > { %s6055_s0 = scalar_lea.vmem %s540_s27, 16  ;;  %s6062_s2 = scalar_lea.vmem %s540_s27, 32 }
 0x15d   : > { %p6056_p2 = scmp.ne.s32.totalorder %s540_s27, %s6055_s0  ;;  %p6063_p3 = scmp.lt.s32.totalorder %s540_s27, %s540_s27 }
 0x15e   : > { %p6064_p0 = scmp.lt.s32.totalorder %s6062_s2, %s6055_s0 }
 0x15f   : > { %p6058_p10 = pnand %p6056_p2, %p8668_p8 }
 0x160   : > { %p6065_p5 = por %p6064_p0, %p6063_p3 }
 0x161   : > { %p6059_p11 = pneg %p6058_p10 }
 0x163   : > { %p6066_p9 = pnand %p6065_p5, %p6059_p11 }
 0x165   : > { %6069 = shalt.err (!%p6066_p9)
}
 0x166   : > { %5254 = dma.hbm_to_vmem [thread:$0]  (!%p8669_p6), %s8672_s14, 16, %s540_s27, [#allocation25]  }
 0x167   : > { %s8673_s13 = sld [smem:[#allocation50_spill]]  ;;  %s554_s17 = scalar_lea.vmem [#allocation3], %s6592_s22 }
 0x168   : > { %s561_s11 = sshll.u32 %s554_s17, 4  ;;  %s8674_s30 = sand.u32 1, %s6254_s20   ;;  %s6749_s11 = int_to_ptr.vmem [resolvable:$true] %s561_s11 }
 0x169   : > { %s6753_s4 = scalar_lea.sflag [#allocation4], %s8674_s30  ;;  %p8675_p13 = scmp.ne.s32.totalorder %s8667_s9, 0 }
 0x16d   : > { %s6746_s25 = scalar_lea.hbm %s8673_s13, %s6595_s16  ;;  %s6075_s29 = scalar_lea.hbm %s8673_s13, 4096 }
 0x16e   : > { %s6070_s1 = scalar_lea.hbm %s6746_s25, 2048  ;;  %p6076_p12 = scmp.lt.u32.totalorder %s6746_s25, %s8673_s13 }
 0x16f   : > { %p6071_p8 = scmp.ne.s32.totalorder %s6746_s25, %s6070_s1  ;;  %p6077_p4 = scmp.lt.u32.totalorder %s6075_s29, %s6070_s1 }
 0x170   : > { %p6079_p2 = scmp.lt.u32.totalorder %s6070_s1, %s6746_s25 }
 0x171   : > { %p6073_p6 = pnand %p6071_p8, %p8675_p13  ;;  %p6078_p1 = por %p6077_p4, %p6076_p12 }
 0x173   : > { %p6074_p7 = pneg %p6073_p6  ;;  %p6080_p10 = por %p6079_p2, %p6078_p1 }
 0x175   : > { %p6081_p11 = pnand %p6080_p10, %p6074_p7 }
 0x177   : > { %6084 = shalt.err (!%p6081_p11)
}
 0x178   : > { %s6085_s15 = scalar_lea.vmem %s6749_s11, 2048  ;;  %s6276_s18 = smov [#allocation3]  }
 0x179   : > { %p6086_p3 = scmp.ne.s32.totalorder %s6749_s11, %s6085_s15  ;;  %s6090_s7 = sshll.u32 %s6276_s18, 4  ;;  %s6091_s7 = int_to_ptr.vmem [resolvable:$false] %s6090_s7 }
 0x17a   : > { %s6092_s28 = scalar_lea.vmem %s6091_s7, 4096  ;;  %p6093_p9 = scmp.lt.s32.totalorder %s6749_s11, %s6091_s7 }
 0x17b   : > { %p6088_p0 = pnand %p6086_p3, %p8675_p13  ;;  %p6094_p8 = scmp.lt.s32.totalorder %s6092_s28, %s6085_s15 }
 0x17d   : > { %p6089_p5 = pneg %p6088_p0  ;;  %p6095_p6 = por %p6094_p8, %p6093_p9 }
 0x17f   : > { %p6096_p12 = pnand %p6095_p6, %p6089_p5 }
 0x181   : > { %6099 = shalt.err (!%p6096_p12)
}
 0x182   : > { %p8676_p7 = scmp.ne.s32.totalorder %s8665_s23, 0  ;;  %s8677_s17 = smov 8  }
 0x183   : > { %s8678_s30 = smov 128   ;;  %s8679_s3 = sld [smem:[#allocation52_spill]] }
 0x184   : > { %5258 = dma.hbm_to_vmem [thread:$0]  (!%p8676_p7), %s6746_s25, 2048, %s6749_s11, %s6753_s4, %s8678_s30, %s8678_s30, %s8677_s17  }
 0x185   : > { %s596_s0 = scalar_lea.vmem [#allocation8], %s6592_s22 }
 0x186   : > { %s603_s2 = sshll.u32 %s596_s0, 4  ;;  %s6787_s2 = int_to_ptr.vmem [resolvable:$true] %s603_s2 }
 0x189   : > { %s6784_s29 = scalar_lea.hbm %s8679_s3, %s6595_s16  ;;  %s6105_s11 = scalar_lea.hbm %s8679_s3, 4096 }
 0x18a   : > { %s6100_s15 = scalar_lea.hbm %s6784_s29, 2048  ;;  %p6106_p10 = scmp.lt.u32.totalorder %s6784_s29, %s8679_s3 }
 0x18b   : > { %p6101_p4 = scmp.ne.s32.totalorder %s6784_s29, %s6100_s15  ;;  %p6107_p11 = scmp.lt.u32.totalorder %s6105_s11, %s6100_s15 }
 0x18c   : > { %p6109_p0 = scmp.lt.u32.totalorder %s6100_s15, %s6784_s29 }
 0x18d   : > { %p6103_p1 = pnand %p6101_p4, %p8675_p13  ;;  %p6108_p3 = por %p6107_p11, %p6106_p10 }
 0x18f   : > { %p6104_p2 = pneg %p6103_p1  ;;  %p6110_p5 = por %p6109_p0, %p6108_p3 }
 0x191   : > { %p6111_p9 = pnand %p6110_p5, %p6104_p2 }
 0x193   : > { %6114 = shalt.err (!%p6111_p9)
}
 0x194   : > { %s6115_s28 = scalar_lea.vmem %s6787_s2, 2048  ;;  %s6277_s1 = smov [#allocation8]  }
 0x195   : > { %p6116_p8 = scmp.ne.s32.totalorder %s6787_s2, %s6115_s28  ;;  %s6120_s27 = sshll.u32 %s6277_s1, 4  ;;  %s6121_s27 = int_to_ptr.vmem [resolvable:$false] %s6120_s27 }
 0x196   : > { %s6122_s0 = scalar_lea.vmem %s6121_s27, 4096  ;;  %p6123_p4 = scmp.lt.s32.totalorder %s6787_s2, %s6121_s27 }
 0x197   : > { %p6118_p6 = pnand %p6116_p8, %p8675_p13  ;;  %p6124_p1 = scmp.lt.s32.totalorder %s6122_s0, %s6115_s28 }
 0x199   : > { %p6119_p12 = pneg %p6118_p6  ;;  %p6125_p10 = por %p6124_p1, %p6123_p4 }
 0x19b   : > { %p6126_p11 = pnand %p6125_p10, %p6119_p12 }
 0x19d   : > { %6129 = shalt.err (!%p6126_p11)
}
 0x19e   : > { %5264 = dma.hbm_to_vmem [thread:$0]  (!%p8676_p7), %s6784_s29, 2048, %s6787_s2, %s6613_s5, %s8678_s30, %s8678_s30, %s8677_s17  }
 0x19f   : > { %s8680_s25 = sld [smem:[#allocation53_spill]]  ;;  %s617_s4 = scalar_lea.vmem [#allocation9], %s6592_s22 }
 0x1a0   : > { %s624_s7 = sshll.u32 %s617_s4, 4  ;;  %s8681_s28 = sand.u32 1, %s6258_s21   ;;  %s6821_s7 = int_to_ptr.vmem [resolvable:$true] %s624_s7 }
 0x1a1   : > { %s6825_s1 = scalar_lea.sflag [#allocation10], %s8681_s28 }
 0x1a5   : > { %s6818_s11 = scalar_lea.hbm %s8680_s25, %s6595_s16  ;;  %s6135_s16 = scalar_lea.hbm %s8680_s25, 4096 }
 0x1a6   : > { %s6130_s27 = scalar_lea.hbm %s6818_s11, 2048  ;;  %p6136_p5 = scmp.lt.u32.totalorder %s6818_s11, %s8680_s25 }
 0x1a7   : > { %p6131_p2 = scmp.ne.s32.totalorder %s6818_s11, %s6130_s27  ;;  %p6137_p9 = scmp.lt.u32.totalorder %s6135_s16, %s6130_s27 }
 0x1a8   : > { %p6139_p6 = scmp.lt.u32.totalorder %s6130_s27, %s6818_s11 }
 0x1a9   : > { %p6133_p3 = pnand %p6131_p2, %p8675_p13  ;;  %p6138_p8 = por %p6137_p9, %p6136_p5 }
 0x1ab   : > { %p6134_p0 = pneg %p6133_p3  ;;  %p6140_p12 = por %p6139_p6, %p6138_p8 }
 0x1ad   : > { %p6141_p4 = pnand %p6140_p12, %p6134_p0 }
 0x1af   : > { %6144 = shalt.err (!%p6141_p4)
}
 0x1b0   : > { %s6145_s22 = scalar_lea.vmem %s6821_s7, 2048  ;;  %s6278_s15 = smov [#allocation9]  }
 0x1b1   : > { %p6146_p1 = scmp.ne.s32.totalorder %s6821_s7, %s6145_s22  ;;  %s6150_s18 = sshll.u32 %s6278_s15, 4  ;;  %s6151_s18 = int_to_ptr.vmem [resolvable:$false] %s6150_s18 }
 0x1b2   : > { %s6152_s4 = scalar_lea.vmem %s6151_s18, 4096  ;;  %p6153_p2 = scmp.lt.s32.totalorder %s6821_s7, %s6151_s18 }
 0x1b3   : > { %p6148_p10 = pnand %p6146_p1, %p8675_p13  ;;  %p6154_p3 = scmp.lt.s32.totalorder %s6152_s4, %s6145_s22 }
 0x1b5   : > { %p6149_p11 = pneg %p6148_p10  ;;  %p6155_p5 = por %p6154_p3, %p6153_p2 }
 0x1b7   : > { %p6156_p9 = pnand %p6155_p5, %p6149_p11 }
 0x1b9   : > { %6159 = shalt.err (!%p6156_p9)
}
 0x1ba   : > { %5267 = dma.hbm_to_vmem [thread:$0]  (!%p8676_p7), %s6818_s11, 2048, %s6821_s7, %s6825_s1, %s8678_s30, %s8678_s30, %s8677_s17  }
 0x1bb   : > { %s8682_s9 = sld [smem:[#allocation39_spill]] }
 0x1c1   : > { %p8683_p13 = scmp.ne.s32.totalorder %s8682_s9, 0 }
 0x1c3   : > { %636 = sbr.rel (%p8683_p13) target bundleno = 4227 (0x1083), region = 80 }
 0x1ca   : > { %s6855_s28 = sand.u32 1, %s6250_s19   ;;  %p8684_p0 = scmp.ne.s32.totalorder %s8660_s26, 0 }
 0x1cb   : > { %s6858_s27 = sshll.u32 %s6855_s28, 7  ;;  %s639_s23 = scalar_lea.sflag [#allocation4], %s6855_s28 }
 0x1cc   : > { %s6862_s5 = scalar_lea.vmem [#allocation3], %s6858_s27 }
 0x1cd   : > { %6205 = dma.done.wait (%p8684_p0), %s639_s23, 2048  }
 0x1ce   : > { %6207 = vsyncadd (%p8684_p0), %s639_s23, 4294965248  ;;  %s647_s17 = sand.u32 1, %s6386_s24   ;;  %s6870_s11 = scalar_lea.vmem [#allocation6], %s6858_s27 }
 0x1cf   : > { %s648_s30 = scalar_lea.sflag [#allocation7], %s647_s17 }
 0x1d0   : > { %6209 = dma.done.wait (%p8684_p0), %s648_s30, 4096  }
 0x1d1   : > { %6211 = vsyncadd (%p8684_p0), %s648_s30, 4294963200  ;;  %s6877_s7 = scalar_lea.vmem [#allocation8], %s6858_s27  ;;  %s666_s1 = scalar_lea.sflag [#allocation10], %s647_s17 }
 0x1d2   : > { %s6880_s29 = scalar_lea.vmem [#allocation9], %s6858_s27 }
 0x1d3   : > { %6213 = dma.done.wait (%p8684_p0), %s666_s1, 2048  }
 0x1d4   : > { %6215 = vsyncadd (%p8684_p0), %s666_s1, 4294965248  ;;  %p8685_p7 = scmp.eq.s32.totalorder %s6386_s24, 0 }
 0x1d6   : > { %6217 = dma.done.wait (%p8685_p7), [#allocation10], 16   ;;  %p8686_p8 = pmov %p8685_p7 }
 0x1d7   : > { %p8687_p6 = pmov %p8685_p7 }
 0x1d8   : > { %6219 = vsyncadd (%p8686_p8), [#allocation10], 4294967280 }
 0x1d9   : > { %6221 = dma.done.wait (%p8687_p6), [#allocation13], 32   ;;  %p8688_p12 = pmov %p8687_p6 }
 0x1da   : > { %p8689_p4 = pmov %p8687_p6 }
 0x1db   : > { %6223 = vsyncadd (%p8688_p12), [#allocation13], 4294967264 }
 0x1dc   : > { %6225 = dma.done.wait (%p8689_p4), [#allocation16], 32   ;;  %p8690_p1 = pmov %p8689_p4 }
 0x1de   : > { %6227 = vsyncadd (%p8690_p1), [#allocation16], 4294967264  ;;  %p8691_p10 = pmov %p8690_p1 }
 0x1df   : > { %p8692_p11 = pmov %p8690_p1 }
 0x1e0   : > { %6229 = dma.done.wait (%p8691_p10), [#allocation19], 1040  }
 0x1e1   : > { %6231 = vsyncadd (%p8692_p11), [#allocation19], 4294966256  ;;  %p8693_p2 = pmov %p8690_p1 }
 0x1e2   : > { %p8694_p3 = pmov %p8690_p1 }
 0x1e3   : > { %6233 = dma.done.wait (%p8693_p2), [#allocation22], 2048  }
 0x1e4   : > { %6235 = vsyncadd (%p8694_p3), [#allocation22], 4294965248  ;;  %p8695_p5 = pmov %p8690_p1 }
 0x1e5   : > { %p8696_p9 = pmov %p8690_p1 }
 0x1e6   : > { %6237 = dma.done.wait (%p8695_p5), [#allocation25], 1040  }
 0x1e7   : > { %6239 = vsyncadd (%p8696_p9), [#allocation25], 4294966256  ;;  %v1015_v0 = vld [vmem:[%s6870_s11] sm:$0xff]  ;;  %v1017_v1 = vld [vmem:[%s6870_s11 + $0x10] sm:$0xff]  ;;  %vm2022_vm0 = vcmask 261120   ;;  %s6279_s26 = smov 96  }
 0x1e8   : > { %1033 = vadd.xlane.f32.xlu0 %v1015_v0  ;;  %1037 = vadd.xlane.f32.xlu1 %v1017_v1  ;;  %v1016_v2 = vld [vmem:[%s6870_s11 + $0x8] sm:$0xff]  ;;  %v1018_v3 = vld [vmem:[%s6870_s11 + $0x18] sm:$0xff]  ;;  %v6915_v4 = vld [vmem:[%s6870_s11 + $0x20] sm:$0xff]  ;;  %s6280_s16 = smov 64   ;;  %s6281_s2 = smov 32   ;;  %vm2947_vm1 = vcmask 523520  }
 0x1e9   : > { %v6918_v5 = vld [vmem:[%s6870_s11 + $0x28] sm:$0xff]  ;;  %v6921_v6 = vld [vmem:[%s6870_s11 + $0x30] sm:$0xff]  ;;  %v6924_v7 = vld [vmem:[%s6870_s11 + $0x38] sm:$0xff]  ;;  %vm3446_vm2 = vcmask 785920   ;;  %vm3945_vm3 = vcmask 1048320   ;;  %s8485_s0 = scalar_lea.vmem [#allocation27], %s6858_s27 }
 0x1ea   : > { %v6929_v8 = vld [vmem:[%s6870_s11 + $0x40] sm:$0xff]  ;;  %v6932_v9 = vld [vmem:[%s6870_s11 + $0x48] sm:$0xff]  ;;  %v6937_v10 = vld [vmem:[%s6870_s11 + $0x50] sm:$0xff]  ;;  %s4558_s22 = sshll.u32 %s6386_s24, 11  ;;  %s4192_s15 = sshll.u32 %s8485_s0, 4  ;;  %s8531_s15 = int_to_ptr.vmem [resolvable:$true] %s4192_s15 }
 0x1eb   : > { %v6940_v11 = vld [vmem:[%s6870_s11 + $0x58] sm:$0xff]  ;;  %v6945_v12 = vld [vmem:[%s6870_s11 + $0x60] sm:$0xff]  ;;  %v6948_v13 = vld [vmem:[%s6870_s11 + $0x68] sm:$0xff]  ;;  %s8722_s18 = sld [smem:[#allocation42_spill]]  ;;  %s8723_s27 = sld [smem:[#allocation61_spill]] }
 0x1ec   : > { %1035 = vadd.xlane.f32.xlu0 %v1016_v2  ;;  %1039 = vadd.xlane.f32.xlu1 %v1018_v3  ;;  %v6953_v14 = vld [vmem:[%s6870_s11 + $0x70] sm:$0xff]  ;;  %v6956_v15 = vld [vmem:[%s6870_s11 + $0x78] sm:$0xff]  ;;  %v6963_v16 = vld [vmem:[%s6862_s5] sm:$0xff]  ;;  %s4179_s24 = scalar_lea.sflag [#allocation5], %s6855_s28  ;;  %s6282_s17 = smov [#allocation27]  }
 0x1ed   : > { %v6966_v17 = vld [vmem:[%s6862_s5 + $0x8] sm:$0xff]  ;;  %v6971_v18 = vld [vmem:[%s6862_s5 + $0x10] sm:$0xff]  ;;  %v6974_v19 = vld [vmem:[%s6862_s5 + $0x18] sm:$0xff]  ;;  %s6164_s30 = sshll.u32 %s6282_s17, 4  ;;  %s6165_s30 = int_to_ptr.vmem [resolvable:$false] %s6164_s30 }
 0x1ee   : > { %v5348_v20 = vld [vmem:[#allocation21] sm:$0xff]   ;;  %v6995_v40 = vld [vmem:[%s6862_s5 + $0x20] sm:$0xff]  ;;  %v7018_v52 = vld [vmem:[%s6862_s5 + $0x38] sm:$0xff]  ;;  %s6166_s11 = scalar_lea.vmem %s6165_s30, 4096  ;;  %p6167_p6 = scmp.lt.s32.totalorder %s8531_s15, %s6165_s30 }
 0x1ef   : > { %4783 = vmatprep.subr.bf16.mxu1 %v5348_v20  ;;  %v7002_v45 = vld [vmem:[%s6862_s5 + $0x28] sm:$0xff]  ;;  %v7005_v46 = vld [vmem:[%s6862_s5 + $0x30] sm:$0xff]  ;;  %v5350_v61 = vld [vmem:[#allocation21 + $0x10] sm:$0xff]  }
 0x1f0   : > { %1041 = vadd.xlane.f32.xlu0 %v6915_v4  ;;  %1043 = vadd.xlane.f32.xlu1 %v6918_v5  ;;  %v5349_v54 = vld [vmem:[#allocation21 + $0x8] sm:$0xff]   ;;  %v7031_v62 = vld [vmem:[%s6862_s5 + $0x40] sm:$0xff] }
 0x1f1   : > { %4784 = vmatpush3.bf16.msra.mxu1 %v5348_v20  ;;  %s8529_s23 = scalar_lea.hbm %s8723_s27, %s4558_s22  ;;  %p8724_p0 = scmp.ne.s32.totalorder %s8722_s18, 0 }
 0x1f2   : > { %4785 = vmatprep.subr.bf16.mxu1 %v5349_v54 }
 0x1f4   : > { %1045 = vadd.xlane.f32.xlu0 %v6921_v6  ;;  %1047 = vadd.xlane.f32.xlu1 %v6924_v7 }
 0x1f5   : > { %4786 = vmatpush3.bf16.msra.mxu1 %v5349_v54 }
 0x1f6   : > { %4787 = vmatprep.subr.bf16.mxu1 %v5350_v61 }
 0x1f8   : > { %1049 = vadd.xlane.f32.xlu0 %v6929_v8  ;;  %1051 = vadd.xlane.f32.xlu1 %v6932_v9 }
 0x1f9   : > { %4788 = vmatpush3.bf16.msra.mxu1 %v5350_v61 }
 0x1fc   : > { %1053 = vadd.xlane.f32.xlu0 %v6937_v10  ;;  %1055 = vadd.xlane.f32.xlu1 %v6940_v11 }
 0x200   : > { %1057 = vadd.xlane.f32.xlu0 %v6945_v12  ;;  %1059 = vadd.xlane.f32.xlu1 %v6948_v13 }
 0x204   : > { %1061 = vadd.xlane.f32.xlu0 %v6953_v14  ;;  %1063 = vadd.xlane.f32.xlu1 %v6956_v15 }
 0x208   : > { %794 = vadd.xlane.f32.xlu0 %v6963_v16  ;;  %796 = vadd.xlane.f32.xlu1 %v6966_v17 }
 0x20c   : > { %798 = vadd.xlane.f32.xlu0 %v6971_v18  ;;  %800 = vadd.xlane.f32.xlu1 %v6974_v19 }
 0x275   : > { %v1034_v21 = vpop.xlane.xlu0 %1033  ;;  %v1038_v22 = vpop.xlane.xlu1 %1037 }
 0x276   : > { %v1065_v23 = vmul.f32 0.0078125, %v1034_v21  ;;  %v1067_v24 = vmul.f32 0.0078125, %v1038_v22 }
 0x278   : > { %v6978_v25 = vsub.f32 %v1015_v0, %v1065_v23  ;;  %v6980_v26 = vsub.f32 %v1017_v1, %v1067_v24  ;;  %v5352_v23 = vld [vmem:[#allocation21 + $0x20] sm:$0xff]   ;;  %v7054_v24 = vld [vmem:[%s6862_s5 + $0x58] sm:$0xff] }
 0x279   : > { %v1036_v27 = vpop.xlane.xlu0 %1035  ;;  %v1040_v28 = vpop.xlane.xlu1 %1039 }
 0x27a   : > { %v1066_v29 = vmul.f32 0.0078125, %v1036_v27  ;;  %v1097_v30 = vmul.f32 %v6978_v25, %v6978_v25  ;;  %v1068_v31 = vmul.f32 0.0078125, %v1040_v28  ;;  %v1099_v33 = vmul.f32 %v6980_v26, %v6980_v26 }
 0x27c   : > { %1113 = vadd.xlane.f32.xlu0 %v1097_v30  ;;  %v6984_v32 = vsub.f32 %v1016_v2, %v1066_v29  ;;  %v6988_v34 = vsub.f32 %v1018_v3, %v1068_v31  ;;  %v5351_v3 = vld [vmem:[#allocation21 + $0x18] sm:$0xff]  }
 0x27d   : > { %v1042_v35 = vpop.xlane.xlu0 %1041  ;;  %v1044_v37 = vpop.xlane.xlu1 %1043  ;;  %4789 = vmatprep.subr.bf16.mxu1 %v5351_v3 }
 0x27e   : > { %v1098_v36 = vmul.f32 %v6984_v32, %v6984_v32  ;;  %v1100_v38 = vmul.f32 %v6988_v34, %v6988_v34  ;;  %v1069_v39 = vmul.f32 0.0078125, %v1042_v35  ;;  %v1070_v42 = vmul.f32 0.0078125, %v1044_v37  ;;  %4790 = vmatpush3.bf16.msra.mxu1 %v5351_v3  ;;  %v5354_v35 = vld [vmem:[#allocation21 + $0x30] sm:$0xff]  }
 0x27f   : > { %4791 = vmatprep.subr.bf16.mxu1 %v5352_v23 }
 0x280   : > { %1115 = vadd.xlane.f32.xlu1 %v1098_v36  ;;  %1117 = vadd.xlane.f32.xlu0 %v1099_v33  ;;  %v6999_v44 = vsub.f32 %v6915_v4, %v1069_v39  ;;  %v7012_v50 = vsub.f32 %v6918_v5, %v1070_v42  ;;  %v7038_v4 = vld [vmem:[%s6862_s5 + $0x48] sm:$0xff]  ;;  %v7041_v5 = vld [vmem:[%s6862_s5 + $0x50] sm:$0xff]  ;;  %v7067_v36 = vld [vmem:[%s6862_s5 + $0x60] sm:$0xff] }
 0x281   : > { %v1046_v41 = vpop.xlane.xlu0 %1045  ;;  %v1048_v47 = vpop.xlane.xlu1 %1047  ;;  %v5355_v42 = vld [vmem:[#allocation21 + $0x38] sm:$0xff]  }
 0x282   : > { %v1071_v43 = vmul.f32 0.0078125, %v1046_v41  ;;  %v1101_v48 = vmul.f32 %v6999_v44, %v6999_v44  ;;  %v1072_v49 = vmul.f32 0.0078125, %v1048_v47  ;;  %v1102_v55 = vmul.f32 %v7012_v50, %v7012_v50  ;;  %4792 = vmatpush3.bf16.msra.mxu1 %v5352_v23  ;;  %v7077_v47 = vld [vmem:[%s6862_s5 + $0x70] sm:$0xff] }
 0x283   : > { %v5356_v23 = vld [vmem:[#allocation20] sm:$0xff]  }
 0x284   : > { %1119 = vadd.xlane.f32.xlu1 %v1100_v38  ;;  %802 = vadd.xlane.f32.xlu0 %v6995_v40  ;;  %v7015_v51 = vsub.f32 %v6921_v6, %v1071_v43  ;;  %v7026_v57 = vsub.f32 %v6924_v7, %v1072_v49  ;;  %v7074_v43 = vld [vmem:[%s6862_s5 + $0x68] sm:$0xff] }
 0x285   : > { %v1050_v53 = vpop.xlane.xlu0 %1049  ;;  %v1052_v58 = vpop.xlane.xlu1 %1051  ;;  %4751 = vmatprep.subr.bf16.mxu0 %v5356_v23 }
 0x286   : > { %v1103_v56 = vmul.f32 %v7015_v51, %v7015_v51  ;;  %v1104_v59 = vmul.f32 %v7026_v57, %v7026_v57  ;;  %v1073_v60 = vmul.f32 0.0078125, %v1050_v53  ;;  %v1074_v0 = vmul.f32 0.0078125, %v1052_v58  ;;  %4752 = vmatpush3.bf16.msra.mxu0 %v5356_v23 }
 0x288   : > { %804 = vadd.xlane.f32.xlu1 %v7002_v45  ;;  %806 = vadd.xlane.f32.xlu0 %v7005_v46  ;;  %v7035_v2 = vsub.f32 %v6929_v8, %v1073_v60  ;;  %v7048_v8 = vsub.f32 %v6932_v9, %v1074_v0 }
 0x289   : > { %v1054_v63 = vpop.xlane.xlu0 %1053  ;;  %v1056_v6 = vpop.xlane.xlu1 %1055 }
 0x28a   : > { %v1075_v1 = vmul.f32 0.0078125, %v1054_v63  ;;  %v1105_v20 = vmul.f32 %v7035_v2, %v7035_v2  ;;  %v1076_v21 = vmul.f32 0.0078125, %v1056_v6  ;;  %v1106_v28 = vmul.f32 %v7048_v8, %v7048_v8 }
 0x28c   : > { %808 = vadd.xlane.f32.xlu1 %v7018_v52  ;;  %1121 = vadd.xlane.f32.xlu0 %v1101_v48  ;;  %v7051_v22 = vsub.f32 %v6937_v10, %v1075_v1  ;;  %v7062_v29 = vsub.f32 %v6940_v11, %v1076_v21  ;;  %v5353_v10 = vld [vmem:[#allocation21 + $0x28] sm:$0xff]  }
 0x28d   : > { %v1058_v7 = vpop.xlane.xlu0 %1057  ;;  %v1060_v27 = vpop.xlane.xlu1 %1059  ;;  %4793 = vmatprep.subr.bf16.mxu1 %v5353_v10 }
 0x28e   : > { %v1107_v9 = vmul.f32 %v7051_v22, %v7051_v22  ;;  %4794 = vmatpush3.bf16.msra.mxu1 %v5353_v10  ;;  %v1108_v31 = vmul.f32 %v7062_v29, %v7062_v29  ;;  %v1077_v33 = vmul.f32 0.0078125, %v1058_v7  ;;  %v1078_v38 = vmul.f32 0.0078125, %v1060_v27  ;;  %v5358_v27 = vld [vmem:[#allocation20 + $0x10] sm:$0xff]  }
 0x28f   : > { %4795 = vmatprep.subr.bf16.mxu1 %v5354_v35  ;;  %v5362_v10 = vld [vmem:[#allocation20 + $0x30] sm:$0xff]  }
 0x290   : > { %1123 = vadd.xlane.f32.xlu1 %v1102_v55  ;;  %1125 = vadd.xlane.f32.xlu0 %v1103_v56  ;;  %v7071_v41 = vsub.f32 %v6945_v12, %v1077_v33  ;;  %v7080_v49 = vsub.f32 %v6948_v13, %v1078_v38  ;;  %v7090_v56 = vld [vmem:[%s6862_s5 + $0x78] sm:$0xff]  ;;  %s6160_s5 = scalar_lea.vmem %s8531_s15, 2048 }
 0x291   : > { %v1062_v30 = vpop.xlane.xlu0 %1061  ;;  %v1064_v37 = vpop.xlane.xlu1 %1063  ;;  %p6161_p13 = scmp.ne.s32.totalorder %s8531_s15, %s6160_s5  ;;  %p6168_p12 = scmp.lt.s32.totalorder %s6166_s11, %s6160_s5 }
 0x292   : > { %4796 = vmatpush3.bf16.msra.mxu1 %v5354_v35  ;;  %v1079_v39 = vmul.f32 0.0078125, %v1062_v30  ;;  %v1080_v48 = vmul.f32 0.0078125, %v1064_v37  ;;  %v1109_v12 = vmul.f32 %v7071_v41, %v7071_v41  ;;  %v1110_v13 = vmul.f32 %v7080_v49, %v7080_v49  ;;  %v5363_v30 = vld [vmem:[#allocation20 + $0x38] sm:$0xff]  }
 0x293   : > { %4797 = vmatprep.subr.bf16.mxu1 %v5355_v42  ;;  %p6162_p7 = pnand %p6161_p13, %p8724_p0  ;;  %p6169_p4 = por %p6168_p12, %p6167_p6 }
 0x294   : > { %1127 = vadd.xlane.f32.xlu1 %v1104_v59  ;;  %810 = vadd.xlane.f32.xlu0 %v7031_v62  ;;  %v7087_v55 = vsub.f32 %v6953_v14, %v1079_v39  ;;  %v7095_v59 = vsub.f32 %v6956_v15, %v1080_v48 }
 0x295   : > { %v795_v11 = vpop.xlane.xlu0 %794  ;;  %v797_v53 = vpop.xlane.xlu1 %796  ;;  %p6163_p8 = pneg %p6162_p7 }
 0x296   : > { %4798 = vmatpush3.bf16.msra.mxu1 %v5355_v42  ;;  %v827_v54 = vmul.f32 0.0078125, %v795_v11  ;;  %v1111_v60 = vmul.f32 %v7087_v55, %v7087_v55  ;;  %v828_v61 = vmul.f32 0.0078125, %v797_v53  ;;  %v1112_v1 = vmul.f32 %v7095_v59, %v7095_v59 }
 0x297   : > { %p6170_p1 = pnand %p6169_p4, %p6163_p8 }
 0x298   : > { %812 = vadd.xlane.f32.xlu1 %v7038_v4  ;;  %814 = vadd.xlane.f32.xlu0 %v7041_v5  ;;  %v7101_v14 = vsub.f32 %v6963_v16, %v827_v54  ;;  %v7108_v6 = vsub.f32 %v6966_v17, %v828_v61 }
 0x299   : > { %v799_v58 = vpop.xlane.xlu0 %798  ;;  %v801_v0 = vpop.xlane.xlu1 %800 }
 0x29a   : > { %v829_v63 = vmul.f32 0.0078125, %v799_v58  ;;  %v859_v15 = vmul.f32 %v7101_v14, %v7101_v14  ;;  %v830_v3 = vmul.f32 0.0078125, %v801_v0  ;;  %v860_v16 = vmul.f32 %v7108_v6, %v7108_v6 }
 0x29c   : > { %816 = vadd.xlane.f32.xlu1 %v7054_v24  ;;  %1129 = vadd.xlane.f32.xlu0 %v1105_v20  ;;  %v7111_v7 = vsub.f32 %v6971_v18, %v829_v63  ;;  %v7118_v21 = vsub.f32 %v6974_v19, %v830_v3  ;;  %v5357_v18 = vld [vmem:[#allocation20 + $0x8] sm:$0xff]   ;;  %v5360_v19 = vld [vmem:[#allocation20 + $0x20] sm:$0xff]  }
 0x29d   : > { %4753 = vmatprep.subr.bf16.mxu0 %v5357_v18 }
 0x29e   : > { %v861_v20 = vmul.f32 %v7111_v7, %v7111_v7  ;;  %v862_v17 = vmul.f32 %v7118_v21, %v7118_v21  ;;  %4754 = vmatpush3.bf16.msra.mxu0 %v5357_v18 }
 0x29f   : > { %4755 = vmatprep.subr.bf16.mxu0 %v5358_v27 }
 0x2a0   : > { %1131 = vadd.xlane.f32.xlu1 %v1106_v28  ;;  %1133 = vadd.xlane.f32.xlu0 %v1107_v9  ;;  %v5359_v28 = vld [vmem:[#allocation20 + $0x18] sm:$0xff]   ;;  %v5361_v9 = vld [vmem:[#allocation20 + $0x28] sm:$0xff]  }
 0x2a2   : > { %4756 = vmatpush3.bf16.msra.mxu0 %v5358_v27 }
 0x2a3   : > { %4757 = vmatprep.subr.bf16.mxu0 %v5359_v28 }
 0x2a4   : > { %1135 = vadd.xlane.f32.xlu1 %v1108_v31  ;;  %818 = vadd.xlane.f32.xlu0 %v7067_v36 }
 0x2a6   : > { %4758 = vmatpush3.bf16.msra.mxu0 %v5359_v28 }
 0x2a7   : > { %4759 = vmatprep.subr.bf16.mxu0 %v5360_v19 }
 0x2a8   : > { %820 = vadd.xlane.f32.xlu1 %v7074_v43  ;;  %822 = vadd.xlane.f32.xlu0 %v7077_v47 }
 0x2aa   : > { %4760 = vmatpush3.bf16.msra.mxu0 %v5360_v19 }
 0x2ab   : > { %4761 = vmatprep.subr.bf16.mxu0 %v5361_v9 }
 0x2ac   : > { %824 = vadd.xlane.f32.xlu1 %v7090_v56  ;;  %1137 = vadd.xlane.f32.xlu0 %v1109_v12 }
 0x2ae   : > { %4762 = vmatpush3.bf16.msra.mxu0 %v5361_v9  ;;  %v7138_v9 = vld [vmem:[#allocation14] ss:$0 sm:$0xff] }
 0x2af   : > { %4763 = vmatprep.subr.bf16.mxu0 %v5362_v10 }
 0x2b0   : > { %1139 = vadd.xlane.f32.xlu1 %v1110_v13  ;;  %1141 = vadd.xlane.f32.xlu0 %v1111_v60 }
 0x2b2   : > { %4764 = vmatpush3.bf16.msra.mxu0 %v5362_v10 }
 0x2b3   : > { %4765 = vmatprep.subr.bf16.mxu0 %v5363_v30 }
 0x2b4   : > { %1143 = vadd.xlane.f32.xlu1 %v1112_v1  ;;  %875 = vadd.xlane.f32.xlu0 %v859_v15 }
 0x2b6   : > { %4766 = vmatpush3.bf16.msra.mxu0 %v5363_v30 }
 0x2b8   : > { %877 = vadd.xlane.f32.xlu1 %v860_v16  ;;  %879 = vadd.xlane.f32.xlu0 %v861_v20 }
 0x2bc   : > { %881 = vadd.xlane.f32.xlu1 %v862_v17 }
 0x309   : > { %v1114_v31 = vpop.xlane.xlu0 %1113 }
 0x30a   : > { %v1145_v33 = vmul.f32 0.0078125, %v1114_v31 }
 0x30c   : > { %v1161_v35 = vadd.f32 1e-05, %v1145_v33 }
 0x30d   : > { %v1116_v37 = vpop.xlane.xlu1 %1115  ;;  %v1118_v38 = vpop.xlane.xlu0 %1117 }
 0x30e   : > { %5380 = vrsqrt.f32 %v1161_v35  ;;  %v1146_v11 = vmul.f32 0.0078125, %v1116_v37  ;;  %v1147_v39 = vmul.f32 0.0078125, %v1118_v38 }
 0x310   : > { %v1162_v42 = vadd.f32 1e-05, %v1146_v11  ;;  %v1163_v48 = vadd.f32 1e-05, %v1147_v39  ;;  %v7147_v39 = vld [vmem:[#allocation15] ss:$0 sm:$0xff] }
 0x311   : > { %v1120_v53 = vpop.xlane.xlu1 %1119  ;;  %v803_v12 = vpop.xlane.xlu0 %802 }
 0x312   : > { %5382 = vrsqrt.f32 %v1162_v42  ;;  %v1148_v54 = vmul.f32 0.0078125, %v1120_v53  ;;  %v831_v58 = vmul.f32 0.0078125, %v803_v12 }
 0x313   : > { %5384 = vrsqrt.f32 %v1163_v48 }
 0x314   : > { %v1164_v13 = vadd.f32 1e-05, %v1148_v54  ;;  %v7123_v60 = vsub.f32 %v6995_v40, %v831_v58 }
 0x315   : > { %v805_v61 = vpop.xlane.xlu1 %804  ;;  %v807_v63 = vpop.xlane.xlu0 %806 }
 0x316   : > { %5386 = vrsqrt.f32 %v1164_v13  ;;  %v832_v0 = vmul.f32 0.0078125, %v805_v61  ;;  %v833_v1 = vmul.f32 0.0078125, %v807_v63  ;;  %v863_v15 = vmul.f32 %v7123_v60, %v7123_v60 }
 0x318   : > { %v5381_v3 = vpop.eup %5380  ;;  %883 = vadd.xlane.f32.xlu0 %v863_v15  ;;  %v7128_v16 = vsub.f32 %v7002_v45, %v832_v0  ;;  %v7131_v20 = vsub.f32 %v7005_v46, %v833_v1 }
 0x319   : > { %v809_v17 = vpop.xlane.xlu1 %808  ;;  %v1122_v23 = vpop.xlane.xlu0 %1121  ;;  %v1193_v40 = vmul.f32 %v5381_v3, %v6978_v25 }
 0x31a   : > { %v834_v18 = vmul.f32 0.0078125, %v809_v17  ;;  %v1149_v27 = vmul.f32 0.0078125, %v1122_v23  ;;  %v864_v28 = vmul.f32 %v7128_v16, %v7128_v16  ;;  %v865_v19 = vmul.f32 %v7131_v20, %v7131_v20 }
 0x31b   : > { %v1215_v35 = vmul.f32 %v7138_v9, %v1193_v40 }
 0x31c   : > { %v5383_v10 = vpop.eup %5382  ;;  %v1165_v45 = vadd.f32 1e-05, %v1149_v27  ;;  %885 = vadd.xlane.f32.xlu1 %v864_v28  ;;  %887 = vadd.xlane.f32.xlu0 %v865_v19  ;;  %v7141_v46 = vsub.f32 %v7018_v52, %v834_v18 }
 0x31d   : > { %v5385_v30 = vpop.eup %5384  ;;  %v1124_v31 = vpop.xlane.xlu1 %1123  ;;  %v1194_v33 = vmul.f32 %v5383_v10, %v6984_v32  ;;  %v1237_v58 = vadd.f32 %v7147_v39, %v1215_v35 }
 0x31e   : > { %v1126_v25 = vpop.xlane.xlu0 %1125  ;;  %5388 = vrsqrt.f32 %v1165_v45  ;;  %v1150_v37 = vmul.f32 0.0078125, %v1124_v31  ;;  %v866_v11 = vmul.f32 %v7141_v46, %v7141_v46  ;;  %v1195_v52 = vmul.f32 %v5385_v30, %v6980_v26 }
 0x31f   : > { %v1151_v38 = vmul.f32 0.0078125, %v1126_v25  ;;  %v1216_v42 = vmul.f32 %v7138_v9, %v1194_v33 }
 0x320   : > { %v5387_v48 = vpop.eup %5386  ;;  %v1166_v53 = vadd.f32 1e-05, %v1150_v37  ;;  %889 = vadd.xlane.f32.xlu1 %v866_v11  ;;  %v1217_v63 = vmul.f32 %v7138_v9, %v1195_v52 }
 0x321   : > { %v1167_v12 = vadd.f32 1e-05, %v1151_v38  ;;  %v1128_v54 = vpop.xlane.xlu1 %1127  ;;  %v1238_v13 = vadd.f32 %v7147_v39, %v1216_v42  ;;  %v1196_v61 = vmul.f32 %v5387_v48, %v6988_v34 }
 0x322   : > { %v811_v32 = vpop.xlane.xlu0 %810  ;;  %5390 = vrsqrt.f32 %v1166_v53  ;;  %v1152_v0 = vmul.f32 0.0078125, %v1128_v54  ;;  %v1239_v18 = vadd.f32 %v7147_v39, %v1217_v63 }
 0x323   : > { %v835_v1 = vmul.f32 0.0078125, %v811_v32  ;;  %5392 = vrsqrt.f32 %v1167_v12  ;;  %v1660_v15 = vpack.c.bf16 %v1238_v13, %v1237_v58  ;;  %v1218_v26 = vmul.f32 %v7138_v9, %v1196_v61 }
 0x324   : > { %v1168_v3 = vadd.f32 1e-05, %v1152_v0 }
 0x325   : > { %v7157_v17 = vsub.f32 %v7031_v62, %v835_v1  ;;  %v813_v23 = vpop.xlane.xlu1 %812  ;;  %4799 = vmatprep.mubr.bf16.mxu1 %v1660_v15  ;;  %v1240_v34 = vadd.f32 %v7147_v39, %v1218_v26 }
 0x326   : > { %v815_v40 = vpop.xlane.xlu0 %814  ;;  %5394 = vrsqrt.f32 %v1168_v3  ;;  %v836_v27 = vmul.f32 0.0078125, %v813_v23 }
 0x327   : > { %v837_v28 = vmul.f32 0.0078125, %v815_v40  ;;  %v867_v19 = vmul.f32 %v7157_v17, %v7157_v17  ;;  %v1661_v10 = vpack.c.bf16 %v1240_v34, %v1239_v18 }
 0x328   : > { %v5389_v45 = vpop.eup %5388  ;;  %v7164_v30 = vsub.f32 %v7038_v4, %v836_v27 }
 0x329   : > { %891 = vadd.xlane.f32.xlu0 %v867_v19  ;;  %v7167_v62 = vsub.f32 %v7041_v5, %v837_v28  ;;  %v817_v31 = vpop.xlane.xlu1 %816  ;;  %4800 = vmatmul.mubr.bf16.vlgmr.msra.gmra.mrb[0].mxu1 %v1661_v10  ;;  %v1197_v33 = vmul.f32 %v5389_v45, %v6999_v44 }
 0x32a   : > { %v1130_v25 = vpop.xlane.xlu0 %1129  ;;  %v838_v35 = vmul.f32 0.0078125, %v817_v31  ;;  %v868_v38 = vmul.f32 %v7164_v30, %v7164_v30 }
 0x32b   : > { %v1153_v37 = vmul.f32 0.0078125, %v1130_v25  ;;  %v869_v11 = vmul.f32 %v7167_v62, %v7167_v62  ;;  %v1219_v12 = vmul.f32 %v7138_v9, %v1197_v33 }
 0x32c   : > { %v5391_v42 = vpop.eup %5390  ;;  %893 = vadd.xlane.f32.xlu1 %v868_v38  ;;  %v7175_v4 = vsub.f32 %v7054_v24, %v838_v35 }
 0x32d   : > { %v1169_v52 = vadd.f32 1e-05, %v1153_v37  ;;  %895 = vadd.xlane.f32.xlu0 %v869_v11  ;;  %v5393_v5 = vpop.eup %5392  ;;  %v1132_v48 = vpop.xlane.xlu1 %1131  ;;  %v1198_v44 = vmul.f32 %v5391_v42, %v7012_v50  ;;  %v1241_v50 = vadd.f32 %v7147_v39, %v1219_v12 }
 0x32e   : > { %v1134_v53 = vpop.xlane.xlu0 %1133  ;;  %v1154_v54 = vmul.f32 0.0078125, %v1132_v48  ;;  %v870_v58 = vmul.f32 %v7175_v4, %v7175_v4  ;;  %v1199_v61 = vmul.f32 %v5393_v5, %v7015_v51 }
 0x32f   : > { %5396 = vrsqrt.f32 %v1169_v52  ;;  %v1155_v32 = vmul.f32 0.0078125, %v1134_v53  ;;  %v1220_v13 = vmul.f32 %v7138_v9, %v1198_v44 }
 0x330   : > { %v5395_v63 = vpop.eup %5394  ;;  %v1170_v24 = vadd.f32 1e-05, %v1154_v54  ;;  %897 = vadd.xlane.f32.xlu1 %v870_v58  ;;  %v1221_v23 = vmul.f32 %v7138_v9, %v1199_v61 }
 0x331   : > { %v1171_v0 = vadd.f32 1e-05, %v1155_v32  ;;  %v1136_v1 = vpop.xlane.xlu1 %1135  ;;  %v1242_v26 = vadd.f32 %v7147_v39, %v1220_v13  ;;  %v1200_v3 = vmul.f32 %v5395_v63, %v7026_v57  ;;  %v7210_v13 = vld [vmem:[%s6877_s7] sm:$0xff] }
 0x332   : > { %v819_v15 = vpop.xlane.xlu0 %818  ;;  %5398 = vrsqrt.f32 %v1170_v24  ;;  %v1156_v40 = vmul.f32 0.0078125, %v1136_v1  ;;  %v1243_v45 = vadd.f32 %v7147_v39, %v1221_v23  ;;  %v7220_v23 = vld [vmem:[%s6877_s7 + $0x8] sm:$0xff] }
 0x333   : > { %v839_v18 = vmul.f32 0.0078125, %v819_v15  ;;  %5400 = vrsqrt.f32 %v1171_v0  ;;  %v1662_v34 = vpack.c.bf16 %v1242_v26, %v1241_v50  ;;  %v1222_v51 = vmul.f32 %v7138_v9, %v1200_v3 }
 0x334   : > { %v1172_v27 = vadd.f32 1e-05, %v1156_v40  ;;  %v7223_v40 = vld [vmem:[%s6877_s7 + $0x10] sm:$0xff] }
 0x335   : > { %v7189_v28 = vsub.f32 %v7067_v36, %v839_v18  ;;  %v821_v19 = vpop.xlane.xlu1 %820  ;;  %4803 = vmatprep.mubr.bf16.mxu1 %v1662_v34  ;;  %v1244_v57 = vadd.f32 %v7147_v39, %v1222_v51 }
 0x336   : > { %v823_v10 = vpop.xlane.xlu0 %822  ;;  %5402 = vrsqrt.f32 %v1172_v27  ;;  %v840_v31 = vmul.f32 0.0078125, %v821_v19 }
 0x337   : > { %v841_v25 = vmul.f32 0.0078125, %v823_v10  ;;  %v871_v33 = vmul.f32 %v7189_v28, %v7189_v28  ;;  %v1663_v35 = vpack.c.bf16 %v1244_v57, %v1243_v45 }
 0x338   : > { %v7196_v38 = vsub.f32 %v7074_v43, %v840_v31 }
 0x339   : > { %v5397_v37 = vpop.eup %5396  ;;  %899 = vadd.xlane.f32.xlu0 %v871_v33  ;;  %v7199_v36 = vsub.f32 %v7077_v47, %v841_v25  ;;  %v825_v11 = vpop.xlane.xlu1 %824  ;;  %4804 = vmatmul.mubr.bf16.gmra.mrb[4].mxu1 %v1663_v35  ;;  %v7236_v35 = vld [vmem:[%s6877_s7 + $0x20] sm:$0xff] }
 0x33a   : > { %v1138_v42 = vpop.xlane.xlu0 %1137  ;;  %v1201_v52 = vmul.f32 %v5397_v37, %v7035_v2  ;;  %v842_v5 = vmul.f32 0.0078125, %v825_v11  ;;  %v872_v53 = vmul.f32 %v7196_v38, %v7196_v38 }
 0x33b   : > { %v1157_v48 = vmul.f32 0.0078125, %v1138_v42  ;;  %v873_v44 = vmul.f32 %v7199_v36, %v7199_v36 }
 0x33c   : > { %v5399_v12 = vpop.eup %5398  ;;  %901 = vadd.xlane.f32.xlu1 %v872_v53  ;;  %v7207_v47 = vsub.f32 %v7090_v56, %v842_v5  ;;  %v1223_v61 = vmul.f32 %v7138_v9, %v1201_v52 }
 0x33d   : > { %v1173_v43 = vadd.f32 1e-05, %v1157_v48  ;;  %903 = vadd.xlane.f32.xlu0 %v873_v44  ;;  %v5401_v54 = vpop.eup %5400  ;;  %v1140_v32 = vpop.xlane.xlu1 %1139  ;;  %v1202_v2 = vmul.f32 %v5399_v12, %v7048_v8 }
 0x33e   : > { %v1142_v58 = vpop.xlane.xlu0 %1141  ;;  %v1158_v63 = vmul.f32 0.0078125, %v1140_v32  ;;  %v874_v0 = vmul.f32 %v7207_v47, %v7207_v47  ;;  %v1203_v1 = vmul.f32 %v5401_v54, %v7051_v22  ;;  %v1245_v18 = vadd.f32 %v7147_v39, %v1223_v61  ;;  %v7246_v54 = vld [vmem:[%s6877_s7 + $0x30] sm:$0xff] }
 0x33f   : > { %5404 = vrsqrt.f32 %v1173_v43  ;;  %v1159_v24 = vmul.f32 0.0078125, %v1142_v58  ;;  %v1224_v56 = vmul.f32 %v7138_v9, %v1202_v2  ;;  %v7243_v43 = vld [vmem:[%s6877_s7 + $0x28] sm:$0xff] }
 0x340   : > { %v5403_v15 = vpop.eup %5402  ;;  %v1174_v50 = vadd.f32 1e-05, %v1158_v63  ;;  %905 = vadd.xlane.f32.xlu1 %v874_v0  ;;  %v1225_v22 = vmul.f32 %v7138_v9, %v1203_v1  ;;  %v7255_v0 = vld [vmem:[%s6877_s7 + $0x40] sm:$0xff] }
 0x341   : > { %v1175_v26 = vadd.f32 1e-05, %v1159_v24  ;;  %1271 = vadd.xlane.f32.xlu0 %v7210_v13  ;;  %v1144_v8 = vpop.xlane.xlu1 %1143  ;;  %v1246_v34 = vadd.f32 %v7147_v39, %v1224_v56  ;;  %v1204_v51 = vmul.f32 %v5403_v15, %v7062_v29  ;;  %v7233_v29 = vld [vmem:[%s6877_s7 + $0x18] sm:$0xff] }
 0x342   : > { %v876_v3 = vpop.xlane.xlu0 %875  ;;  %5406 = vrsqrt.f32 %v1174_v50  ;;  %v1160_v27 = vmul.f32 0.0078125, %v1144_v8  ;;  %v1247_v37 = vadd.f32 %v7147_v39, %v1225_v22  ;;  %v7252_v24 = vld [vmem:[%s6877_s7 + $0x38] sm:$0xff]  ;;  %v7264_v8 = vld [vmem:[%s6877_s7 + $0x48] sm:$0xff] }
 0x343   : > { %v907_v19 = vmul.f32 0.0078125, %v876_v3  ;;  %5408 = vrsqrt.f32 %v1175_v26  ;;  %v1664_v10 = vpack.c.bf16 %v1246_v34, %v1245_v18  ;;  %v1226_v45 = vmul.f32 %v7138_v9, %v1204_v51  ;;  %v7267_v3 = vld [vmem:[%s6877_s7 + $0x50] sm:$0xff]  ;;  %v7273_v51 = vld [vmem:[#allocation11] ss:$0 sm:$0xff] }
 0x344   : > { %v1176_v57 = vadd.f32 1e-05, %v1160_v27  ;;  %1273 = vadd.xlane.f32.xlu1 %v7220_v23 }
 0x345   : > { %v923_v31 = vadd.f32 1e-05, %v907_v19  ;;  %1275 = vadd.xlane.f32.xlu0 %v7223_v40  ;;  %v878_v25 = vpop.xlane.xlu1 %877  ;;  %4807 = vmatprep.mubr.bf16.mxu1 %v1664_v10  ;;  %v1248_v11 = vadd.f32 %v7147_v39, %v1226_v45 }
 0x346   : > { %v880_v33 = vpop.xlane.xlu0 %879  ;;  %5410 = vrsqrt.f32 %v1176_v57  ;;  %v908_v42 = vmul.f32 0.0078125, %v878_v25  ;;  %v7280_v57 = vld [vmem:[%s6877_s7 + $0x58] sm:$0xff] }
 0x347   : > { %v909_v52 = vmul.f32 0.0078125, %v880_v33  ;;  %5412 = vrsqrt.f32 %v923_v31  ;;  %v1665_v5 = vpack.c.bf16 %v1248_v11, %v1247_v37  ;;  %v7289_v33 = vld [vmem:[#allocation12] ss:$0 sm:$0xff] }
 0x348   : > { %v924_v53 = vadd.f32 1e-05, %v908_v42  ;;  %1277 = vadd.xlane.f32.xlu1 %v7233_v29 }
 0x349   : > { %v5405_v48 = vpop.eup %5404  ;;  %v925_v44 = vadd.f32 1e-05, %v909_v52  ;;  %1279 = vadd.xlane.f32.xlu0 %v7236_v35  ;;  %v882_v12 = vpop.xlane.xlu1 %881  ;;  %4808 = vmatmul.mubr.bf16.gmra.mrb[8].mxu1 %v1665_v5  ;;  %v7296_v5 = vld [vmem:[%s6877_s7 + $0x68] sm:$0xff] }
 0x34a   : > { %v1205_v32 = vmul.f32 %v5405_v48, %v7071_v41  ;;  %5414 = vrsqrt.f32 %v924_v53  ;;  %v910_v58 = vmul.f32 0.0078125, %v882_v12 }
 0x34b   : > { %5416 = vrsqrt.f32 %v925_v44 }
 0x34c   : > { %v5407_v2 = vpop.eup %5406  ;;  %v926_v61 = vadd.f32 1e-05, %v910_v58  ;;  %1281 = vadd.xlane.f32.xlu1 %v7243_v43  ;;  %v1227_v41 = vmul.f32 %v7138_v9, %v1205_v32  ;;  %v7309_v32 = vld [vmem:[%s6877_s7 + $0x78] sm:$0xff] }
 0x34d   : > { %1283 = vadd.xlane.f32.xlu0 %v7246_v54  ;;  %v5409_v63 = vpop.eup %5408  ;;  %v1206_v56 = vmul.f32 %v5407_v2, %v7080_v49 }
 0x34e   : > { %5418 = vrsqrt.f32 %v926_v61  ;;  %v1207_v1 = vmul.f32 %v5409_v63, %v7087_v55  ;;  %v1249_v49 = vadd.f32 %v7147_v39, %v1227_v41 }
 0x34f   : > { %v1228_v15 = vmul.f32 %v7138_v9, %v1206_v56 }
 0x350   : > { %v5411_v50 = vpop.eup %5410  ;;  %1285 = vadd.xlane.f32.xlu1 %v7252_v24  ;;  %v1229_v34 = vmul.f32 %v7138_v9, %v1207_v1 }
 0x351   : > { %1287 = vadd.xlane.f32.xlu0 %v7255_v0  ;;  %v5413_v26 = vpop.eup %5412  ;;  %v1250_v18 = vadd.f32 %v7147_v39, %v1228_v15  ;;  %v1208_v55 = vmul.f32 %v5411_v50, %v7095_v59  ;;  %v7283_v59 = vld [vmem:[%s6877_s7 + $0x60] sm:$0xff] }
 0x352   : > { %v955_v22 = vmul.f32 %v5413_v26, %v7101_v14  ;;  %v1251_v31 = vadd.f32 %v7147_v39, %v1229_v34 }
 0x353   : > { %v1666_v27 = vpack.c.bf16 %v1250_v18, %v1249_v49  ;;  %v1230_v19 = vmul.f32 %v7138_v9, %v1208_v55 }
 0x354   : > { %v5415_v10 = vpop.eup %5414  ;;  %1289 = vadd.xlane.f32.xlu1 %v7264_v8  ;;  %v977_v9 = vmul.f32 %v7273_v51, %v955_v22 }
 0x355   : > { %1291 = vadd.xlane.f32.xlu0 %v7267_v3  ;;  %v5417_v45 = vpop.eup %5416  ;;  %4811 = vmatprep.mubr.bf16.mxu1 %v1666_v27  ;;  %v1252_v14 = vadd.f32 %v7147_v39, %v1230_v19  ;;  %v956_v25 = vmul.f32 %v5415_v10, %v7108_v6  ;;  %v7299_v39 = vld [vmem:[%s6877_s7 + $0x70] sm:$0xff] }
 0x356   : > { %v957_v37 = vmul.f32 %v5417_v45, %v7111_v7  ;;  %v999_v6 = vadd.f32 %v7289_v33, %v977_v9 }
 0x357   : > { %v1667_v11 = vpack.c.bf16 %v1252_v14, %v1251_v31  ;;  %v978_v42 = vmul.f32 %v7273_v51, %v956_v25 }
 0x358   : > { %v5419_v52 = vpop.eup %5418  ;;  %1293 = vadd.xlane.f32.xlu1 %v7280_v57  ;;  %v979_v53 = vmul.f32 %v7273_v51, %v957_v37 }
 0x359   : > { %1295 = vadd.xlane.f32.xlu0 %v7283_v59  ;;  %4812 = vmatmul.mubr.bf16.gmra.mrb[12].mxu1 %v1667_v11  ;;  %v1000_v48 = vadd.f32 %v7289_v33, %v978_v42  ;;  %v958_v7 = vmul.f32 %v5419_v52, %v7118_v21 }
 0x35a   : > { %v1001_v58 = vadd.f32 %v7289_v33, %v979_v53 }
 0x35b   : > { %v1491_v44 = vpack.c.bf16 %v1000_v48, %v999_v6  ;;  %v980_v12 = vmul.f32 %v7273_v51, %v958_v7 }
 0x35c   : > { %1297 = vadd.xlane.f32.xlu1 %v7296_v5 }
 0x35d   : > { %1299 = vadd.xlane.f32.xlu0 %v7299_v39  ;;  %4767 = vmatprep.mubr.bf16.mxu0 %v1491_v44  ;;  %v1002_v2 = vadd.f32 %v7289_v33, %v980_v12 }
 0x35f   : > { %v1492_v61 = vpack.c.bf16 %v1002_v2, %v1001_v58 }
 0x360   : > { %1301 = vadd.xlane.f32.xlu1 %v7309_v32 }
 0x361   : > { %4768 = vmatmul.mubr.bf16.vlgmr.msra.gmra.mrb[0].mxu0 %v1492_v61 }
 0x3a5   : > { %v884_v21 = vpop.xlane.xlu0 %883 }
 0x3a6   : > { %v911_v63 = vmul.f32 0.0078125, %v884_v21 }
 0x3a8   : > { %v927_v56 = vadd.f32 1e-05, %v911_v63 }
 0x3a9   : > { %v886_v41 = vpop.xlane.xlu1 %885  ;;  %v888_v1 = vpop.xlane.xlu0 %887 }
 0x3aa   : > { %5420 = vrsqrt.f32 %v927_v56  ;;  %v912_v15 = vmul.f32 0.0078125, %v886_v41  ;;  %v913_v50 = vmul.f32 0.0078125, %v888_v1  ;;  %v5364_v1 = vld [vmem:[#allocation23] sm:$0xff]  }
 0x3ab   : > { %4815 = vmatprep.subr.bf16.mxu0 %v5364_v1 }
 0x3ac   : > { %v928_v26 = vadd.f32 1e-05, %v912_v15  ;;  %v929_v49 = vadd.f32 1e-05, %v913_v50  ;;  %4816 = vmatpush3.bf16.msra.mxu0 %v5364_v1 }
 0x3ad   : > { %v890_v18 = vpop.xlane.xlu1 %889 }
 0x3ae   : > { %5422 = vrsqrt.f32 %v928_v26  ;;  %v914_v55 = vmul.f32 0.0078125, %v890_v18 }
 0x3af   : > { %5424 = vrsqrt.f32 %v929_v49 }
 0x3b0   : > { %v930_v34 = vadd.f32 1e-05, %v914_v55 }
 0x3b2   : > { %5426 = vrsqrt.f32 %v930_v34 }
 0x3b4   : > { %v5421_v22 = vpop.eup %5420 }
 0x3b5   : > { %v959_v19 = vmul.f32 %v5421_v22, %v7123_v60 }
 0x3b6   : > { %v892_v27 = vpop.xlane.xlu0 %891 }
 0x3b7   : > { %v915_v10 = vmul.f32 0.0078125, %v892_v27  ;;  %v981_v11 = vmul.f32 %v7273_v51, %v959_v19 }
 0x3b8   : > { %v5423_v45 = vpop.eup %5422 }
 0x3b9   : > { %v931_v31 = vadd.f32 1e-05, %v915_v10  ;;  %v5425_v14 = vpop.eup %5424  ;;  %v894_v25 = vpop.xlane.xlu1 %893  ;;  %v960_v37 = vmul.f32 %v5423_v45, %v7128_v16  ;;  %v1003_v12 = vadd.f32 %v7289_v33, %v981_v11 }
 0x3ba   : > { %v896_v9 = vpop.xlane.xlu0 %895  ;;  %v916_v42 = vmul.f32 0.0078125, %v894_v25  ;;  %v961_v6 = vmul.f32 %v5425_v14, %v7131_v20 }
 0x3bb   : > { %5428 = vrsqrt.f32 %v931_v31  ;;  %v917_v52 = vmul.f32 0.0078125, %v896_v9  ;;  %v982_v48 = vmul.f32 %v7273_v51, %v960_v37 }
 0x3bc   : > { %v5427_v7 = vpop.eup %5426  ;;  %v932_v53 = vadd.f32 1e-05, %v916_v42  ;;  %v983_v16 = vmul.f32 %v7273_v51, %v961_v6 }
 0x3bd   : > { %v933_v60 = vadd.f32 1e-05, %v917_v52  ;;  %v898_v44 = vpop.xlane.xlu1 %897  ;;  %v1004_v58 = vadd.f32 %v7289_v33, %v982_v48  ;;  %v962_v2 = vmul.f32 %v5427_v7, %v7141_v46 }
 0x3be   : > { %5430 = vrsqrt.f32 %v932_v53  ;;  %v918_v61 = vmul.f32 0.0078125, %v898_v44  ;;  %v1005_v56 = vadd.f32 %v7289_v33, %v983_v16 }
 0x3bf   : > { %5432 = vrsqrt.f32 %v933_v60  ;;  %v1493_v21 = vpack.c.bf16 %v1004_v58, %v1003_v12  ;;  %v984_v20 = vmul.f32 %v7273_v51, %v962_v2 }
 0x3c0   : > { %v934_v63 = vadd.f32 1e-05, %v918_v61 }
 0x3c1   : > { %4771 = vmatprep.mubr.bf16.mxu0 %v1493_v21  ;;  %v1006_v41 = vadd.f32 %v7289_v33, %v984_v20 }
 0x3c2   : > { %5434 = vrsqrt.f32 %v934_v63 }
 0x3c3   : > { %v1494_v15 = vpack.c.bf16 %v1006_v41, %v1005_v56 }
 0x3c5   : > { %v5429_v50 = vpop.eup %5428  ;;  %4772 = vmatmul.mubr.bf16.gmra.mrb[4].mxu0 %v1494_v15 }
 0x3c6   : > { %v900_v46 = vpop.xlane.xlu0 %899  ;;  %v963_v26 = vmul.f32 %v5429_v50, %v7157_v17 }
 0x3c7   : > { %v919_v49 = vmul.f32 0.0078125, %v900_v46 }
 0x3c8   : > { %v5431_v18 = vpop.eup %5430  ;;  %v985_v10 = vmul.f32 %v7273_v51, %v963_v26 }
 0x3c9   : > { %v935_v55 = vadd.f32 1e-05, %v919_v49  ;;  %v5433_v34 = vpop.eup %5432  ;;  %v902_v22 = vpop.xlane.xlu1 %901  ;;  %v964_v19 = vmul.f32 %v5431_v18, %v7164_v30 }
 0x3ca   : > { %v904_v27 = vpop.xlane.xlu0 %903  ;;  %v920_v45 = vmul.f32 0.0078125, %v902_v22  ;;  %v965_v14 = vmul.f32 %v5433_v34, %v7167_v62  ;;  %v1007_v52 = vadd.f32 %v7289_v33, %v985_v10 }
 0x3cb   : > { %5436 = vrsqrt.f32 %v935_v55  ;;  %v921_v31 = vmul.f32 0.0078125, %v904_v27  ;;  %v986_v25 = vmul.f32 %v7273_v51, %v964_v19 }
 0x3cc   : > { %v5435_v9 = vpop.eup %5434  ;;  %v936_v17 = vadd.f32 1e-05, %v920_v45  ;;  %v987_v48 = vmul.f32 %v7273_v51, %v965_v14 }
 0x3cd   : > { %v937_v37 = vadd.f32 1e-05, %v921_v31  ;;  %v906_v11 = vpop.xlane.xlu1 %905  ;;  %v1008_v6 = vadd.f32 %v7289_v33, %v986_v25  ;;  %v966_v30 = vmul.f32 %v5435_v9, %v7175_v4 }
 0x3ce   : > { %v1272_v42 = vpop.xlane.xlu0 %1271  ;;  %5438 = vrsqrt.f32 %v936_v17  ;;  %v922_v7 = vmul.f32 0.0078125, %v906_v11  ;;  %v1009_v16 = vadd.f32 %v7289_v33, %v987_v48 }
 0x3cf   : > { %v1303_v53 = vmul.f32 0.0078125, %v1272_v42  ;;  %5440 = vrsqrt.f32 %v937_v37  ;;  %v1495_v62 = vpack.c.bf16 %v1008_v6, %v1007_v52  ;;  %v988_v60 = vmul.f32 %v7273_v51, %v966_v30 }
 0x3d0   : > { %v938_v44 = vadd.f32 1e-05, %v922_v7 }
 0x3d1   : > { %v7337_v12 = vsub.f32 %v7210_v13, %v1303_v53  ;;  %v1274_v58 = vpop.xlane.xlu1 %1273  ;;  %4775 = vmatprep.mubr.bf16.mxu0 %v1495_v62  ;;  %v1010_v4 = vadd.f32 %v7289_v33, %v988_v60 }
 0x3d2   : > { %v1276_v2 = vpop.xlane.xlu0 %1275  ;;  %5442 = vrsqrt.f32 %v938_v44  ;;  %v1304_v61 = vmul.f32 0.0078125, %v1274_v58 }
 0x3d3   : > { %v1305_v21 = vmul.f32 0.0078125, %v1276_v2  ;;  %v1335_v20 = vmul.f32 %v7337_v12, %v7337_v12  ;;  %v1496_v63 = vpack.c.bf16 %v1010_v4, %v1009_v16 }
 0x3d4   : > { %v7344_v41 = vsub.f32 %v7220_v23, %v1304_v61 }
 0x3d5   : > { %v5437_v56 = vpop.eup %5436  ;;  %1351 = vadd.xlane.f32.xlu0 %v1335_v20  ;;  %v7347_v13 = vsub.f32 %v7223_v40, %v1305_v21  ;;  %v1278_v1 = vpop.xlane.xlu1 %1277  ;;  %4776 = vmatmul.mubr.bf16.gmra.mrb[8].mxu0 %v1496_v63  ;;  %v5365_v20 = vld [vmem:[#allocation23 + $0x8] sm:$0xff]  }
 0x3d6   : > { %v1280_v15 = vpop.xlane.xlu0 %1279  ;;  %v967_v50 = vmul.f32 %v5437_v56, %v7189_v28  ;;  %v1306_v46 = vmul.f32 0.0078125, %v1278_v1  ;;  %v1336_v49 = vmul.f32 %v7344_v41, %v7344_v41  ;;  %4817 = vmatprep.subr.bf16.mxu0 %v5365_v20 }
 0x3d7   : > { %v1307_v26 = vmul.f32 0.0078125, %v1280_v15  ;;  %v1337_v18 = vmul.f32 %v7347_v13, %v7347_v13  ;;  %4818 = vmatpush3.bf16.msra.mxu0 %v5365_v20 }
 0x3d8   : > { %v5439_v55 = vpop.eup %5438  ;;  %1353 = vadd.xlane.f32.xlu1 %v1336_v49  ;;  %v7355_v23 = vsub.f32 %v7233_v29, %v1306_v46  ;;  %v989_v19 = vmul.f32 %v7273_v51, %v967_v50 }
 0x3d9   : > { %1355 = vadd.xlane.f32.xlu0 %v1337_v18  ;;  %v7358_v40 = vsub.f32 %v7236_v35, %v1307_v26  ;;  %v5441_v34 = vpop.eup %5440  ;;  %v1282_v22 = vpop.xlane.xlu1 %1281  ;;  %v968_v27 = vmul.f32 %v5439_v55, %v7196_v38  ;;  %v5366_v26 = vld [vmem:[#allocation23 + $0x10] sm:$0xff]  }
 0x3da   : > { %v1284_v28 = vpop.xlane.xlu0 %1283  ;;  %v1308_v10 = vmul.f32 0.0078125, %v1282_v22  ;;  %v1338_v31 = vmul.f32 %v7355_v23, %v7355_v23  ;;  %v969_v35 = vmul.f32 %v5441_v34, %v7199_v36  ;;  %v1011_v11 = vadd.f32 %v7289_v33, %v989_v19  ;;  %4819 = vmatprep.subr.bf16.mxu0 %v5366_v26 }
 0x3db   : > { %v1309_v45 = vmul.f32 0.0078125, %v1284_v28  ;;  %v1339_v14 = vmul.f32 %v7358_v40, %v7358_v40  ;;  %v990_v29 = vmul.f32 %v7273_v51, %v968_v27  ;;  %4820 = vmatpush3.bf16.msra.mxu0 %v5366_v26  ;;  %v5367_v28 = vld [vmem:[#allocation23 + $0x18] sm:$0xff]  }
 0x3dc   : > { %v5443_v25 = vpop.eup %5442  ;;  %1357 = vadd.xlane.f32.xlu1 %v1338_v31  ;;  %v7369_v9 = vsub.f32 %v7243_v43, %v1308_v10  ;;  %v991_v6 = vmul.f32 %v7273_v51, %v969_v35  ;;  %4821 = vmatprep.subr.bf16.mxu0 %v5367_v28  ;;  %v5369_v31 = vld [vmem:[#allocation23 + $0x28] sm:$0xff]  }
 0x3dd   : > { %1359 = vadd.xlane.f32.xlu0 %v1339_v14  ;;  %v7372_v38 = vsub.f32 %v7246_v54, %v1309_v45  ;;  %v1286_v17 = vpop.xlane.xlu1 %1285  ;;  %v1012_v42 = vadd.f32 %v7289_v33, %v990_v29  ;;  %v970_v52 = vmul.f32 %v5443_v25, %v7207_v47  ;;  %v5370_v14 = vld [vmem:[#allocation23 + $0x30] sm:$0xff]   ;;  %v5371_v25 = vld [vmem:[#allocation23 + $0x38] sm:$0xff]  }
 0x3de   : > { %v1288_v37 = vpop.xlane.xlu0 %1287  ;;  %v1310_v36 = vmul.f32 0.0078125, %v1286_v17  ;;  %v1340_v48 = vmul.f32 %v7369_v9, %v7369_v9  ;;  %v1013_v44 = vadd.f32 %v7289_v33, %v991_v6 }
 0x3df   : > { %v1311_v30 = vmul.f32 0.0078125, %v1288_v37  ;;  %v1341_v43 = vmul.f32 %v7372_v38, %v7372_v38  ;;  %v1497_v54 = vpack.c.bf16 %v1012_v42, %v1011_v11  ;;  %v992_v7 = vmul.f32 %v7273_v51, %v970_v52  ;;  %4822 = vmatpush3.bf16.msra.mxu0 %v5367_v28 }
 0x3e0   : > { %1361 = vadd.xlane.f32.xlu1 %v1340_v48  ;;  %v7384_v53 = vsub.f32 %v7252_v24, %v1310_v36 }
 0x3e1   : > { %1363 = vadd.xlane.f32.xlu0 %v1341_v43  ;;  %v7387_v47 = vsub.f32 %v7255_v0, %v1311_v30  ;;  %v1290_v62 = vpop.xlane.xlu1 %1289  ;;  %4779 = vmatprep.mubr.bf16.mxu0 %v1497_v54  ;;  %v1014_v58 = vadd.f32 %v7289_v33, %v992_v7 }
 0x3e2   : > { %v1292_v60 = vpop.xlane.xlu0 %1291  ;;  %v1312_v2 = vmul.f32 0.0078125, %v1290_v62  ;;  %v1342_v51 = vmul.f32 %v7384_v53, %v7384_v53 }
 0x3e3   : > { %v1313_v16 = vmul.f32 0.0078125, %v1292_v60  ;;  %v1343_v4 = vmul.f32 %v7387_v47, %v7387_v47  ;;  %v1498_v24 = vpack.c.bf16 %v1014_v58, %v1013_v44 }
 0x3e4   : > { %1365 = vadd.xlane.f32.xlu1 %v1342_v51  ;;  %v7396_v0 = vsub.f32 %v7264_v8, %v1312_v2 }
 0x3e5   : > { %1367 = vadd.xlane.f32.xlu0 %v1343_v4  ;;  %v7399_v61 = vsub.f32 %v7267_v3, %v1313_v16  ;;  %v1294_v21 = vpop.xlane.xlu1 %1293  ;;  %4780 = vmatmul.mubr.bf16.gmra.mrb[12].mxu0 %v1498_v24 }
 0x3e6   : > { %v1296_v33 = vpop.xlane.xlu0 %1295  ;;  %v1314_v63 = vmul.f32 0.0078125, %v1294_v21  ;;  %v1344_v1 = vmul.f32 %v7396_v0, %v7396_v0 }
 0x3e7   : > { %v1315_v56 = vmul.f32 0.0078125, %v1296_v33  ;;  %v1345_v15 = vmul.f32 %v7399_v61, %v7399_v61 }
 0x3e8   : > { %1369 = vadd.xlane.f32.xlu1 %v1344_v1  ;;  %v7406_v8 = vsub.f32 %v7280_v57, %v1314_v63 }
 0x3e9   : > { %1371 = vadd.xlane.f32.xlu0 %v1345_v15  ;;  %v7409_v3 = vsub.f32 %v7283_v59, %v1315_v56  ;;  %v1298_v50 = vpop.xlane.xlu1 %1297 }
 0x3ea   : > { %v1300_v46 = vpop.xlane.xlu0 %1299  ;;  %v1316_v49 = vmul.f32 0.0078125, %v1298_v50  ;;  %v1346_v55 = vmul.f32 %v7406_v8, %v7406_v8 }
 0x3eb   : > { %v1317_v18 = vmul.f32 0.0078125, %v1300_v46  ;;  %v1347_v34 = vmul.f32 %v7409_v3, %v7409_v3 }
 0x3ec   : > { %1373 = vadd.xlane.f32.xlu1 %v1346_v55  ;;  %v7416_v57 = vsub.f32 %v7296_v5, %v1316_v49  ;;  %v5368_v5 = vld [vmem:[#allocation23 + $0x20] sm:$0xff]  }
 0x3ed   : > { %1375 = vadd.xlane.f32.xlu0 %v1347_v34  ;;  %v7419_v59 = vsub.f32 %v7299_v39, %v1317_v18  ;;  %v1302_v22 = vpop.xlane.xlu1 %1301  ;;  %4823 = vmatprep.subr.bf16.mxu0 %v5368_v5 }
 0x3ee   : > { %v1318_v27 = vmul.f32 0.0078125, %v1302_v22  ;;  %v1348_v19 = vmul.f32 %v7416_v57, %v7416_v57  ;;  %4824 = vmatpush3.bf16.msra.mxu0 %v5368_v5 }
 0x3ef   : > { %v1349_v10 = vmul.f32 %v7419_v59, %v7419_v59  ;;  %4825 = vmatprep.subr.bf16.mxu0 %v5369_v31 }
 0x3f0   : > { %1377 = vadd.xlane.f32.xlu1 %v1348_v19  ;;  %v7426_v45 = vsub.f32 %v7309_v32, %v1318_v27 }
 0x3f1   : > { %1379 = vadd.xlane.f32.xlu0 %v1349_v10 }
 0x3f2   : > { %v1350_v39 = vmul.f32 %v7426_v45, %v7426_v45  ;;  %4826 = vmatpush3.bf16.msra.mxu0 %v5369_v31 }
 0x3f3   : > { %4827 = vmatprep.subr.bf16.mxu0 %v5370_v14 }
 0x3f4   : > { %1381 = vadd.xlane.f32.xlu1 %v1350_v39 }
 0x3f6   : > { %4828 = vmatpush3.bf16.msra.mxu0 %v5370_v14 }
 0x3f7   : > { %4829 = vmatprep.subr.bf16.mxu0 %v5371_v25 }
 0x3fa   : > { %4830 = vmatpush3.bf16.msra.mxu0 %v5371_v25 }
 0x3fc   : > { %v4801_v29 = vpop.f32.mrb[0].mxu1 }
 0x3fd   : > { %v1766_v35 = vpop.f32.mrb[1].mxu1 }
 0x3fe   : > { %v4802_v17 = vpop.f32.mrb[2].mxu1 }
 0x3ff   : > { %v7430_v32 = vpack.c.bf16 %v4802_v17, %v4801_v29  ;;  %v1769_v37 = vpop.f32.mrb[3].mxu1 }
 0x400   : > { %v7432_v11 = vpack.c.bf16 %v1769_v37, %v1766_v35 }
 0x401   : > { %v2051_v52 = vsel %vm2022_vm0, %v7430_v32, 0 }
 0x402   : > { %5135 = vmatprep.subr.msk.bf16.mxu1 %vm2022_vm0, %v7432_v11  ;;  %v2048_v42 = vsel %vm2022_vm0, %v7432_v11, 0 }
 0x403   : > { %4848 = vmatpush3.bf16.xpose.msra.mxu1 %v2048_v42 }
 0x404   : > { %5136 = vmatprep.subr.msk.bf16.mxu1 %vm2022_vm0, %v7430_v32 }
 0x405   : > { %2467 = vrot.lane.b32.xlu1 %v7430_v32, %s6279_s26 }
 0x407   : > { %2465 = vrot.lane.b32.xlu0 %v7432_v11, %s6279_s26 }
 0x40b   : > { %4850 = vmatpush3.bf16.xpose.msra.mxu1 %v2051_v52 }
 0x40c   : > { %v4805_v6 = vpop.f32.mrb[4].mxu1 }
 0x40d   : > { %v1782_v36 = vpop.f32.mrb[5].mxu1 }
 0x40e   : > { %v4806_v30 = vpop.f32.mrb[6].mxu1 }
 0x40f   : > { %v7446_v48 = vpack.c.bf16 %v4806_v30, %v4805_v6  ;;  %v1785_v43 = vpop.f32.mrb[7].mxu1 }
 0x410   : > { %v7448_v54 = vpack.c.bf16 %v1785_v43, %v1782_v36 }
 0x411   : > { %v2057_v62 = vsel %vm2022_vm0, %v7446_v48, 0 }
 0x412   : > { %5137 = vmatprep.subr.msk.bf16.mxu1 %vm2022_vm0, %v7448_v54  ;;  %v2054_v7 = vsel %vm2022_vm0, %v7448_v54, 0 }
 0x413   : > { %4852 = vmatpush3.bf16.xpose.msra.mxu1 %v2054_v7  ;;  %v7490_v7 = vld [vmem:[#allocation17] ss:$0 sm:$0xff] }
 0x414   : > { %5138 = vmatprep.subr.msk.bf16.mxu1 %vm2022_vm0, %v7446_v48 }
 0x41b   : > { %4854 = vmatpush3.bf16.xpose.msra.mxu1 %v2057_v62 }
 0x41c   : > { %v4809_v60 = vpop.f32.mrb[8].mxu1 }
 0x41d   : > { %v1798_v44 = vpop.f32.mrb[9].mxu1 }
 0x41e   : > { %v4810_v58 = vpop.f32.mrb[10].mxu1 }
 0x41f   : > { %v7458_v2 = vpack.c.bf16 %v4810_v58, %v4809_v60  ;;  %v1801_v16 = vpop.f32.mrb[11].mxu1 }
 0x420   : > { %v7460_v51 = vpack.c.bf16 %v1801_v16, %v1798_v44 }
 0x421   : > { %v2063_v24 = vsel %vm2022_vm0, %v7458_v2, 0 }
 0x422   : > { %5139 = vmatprep.subr.msk.bf16.mxu1 %vm2022_vm0, %v7460_v51  ;;  %v2060_v4 = vsel %vm2022_vm0, %v7460_v51, 0 }
 0x423   : > { %4856 = vmatpush3.bf16.xpose.msra.mxu1 %v2060_v4 }
 0x424   : > { %5140 = vmatprep.subr.msk.bf16.mxu1 %vm2022_vm0, %v7458_v2 }
 0x42b   : > { %4858 = vmatpush3.bf16.xpose.msra.mxu1 %v2063_v24 }
 0x42c   : > { %v4813_v21 = vpop.f32.mrb[12].mxu1 }
 0x42d   : > { %v1814_v33 = vpop.f32.mrb[13].mxu1 }
 0x42e   : > { %v4814_v20 = vpop.f32.mrb[14].mxu1 }
 0x42f   : > { %v7470_v63 = vpack.c.bf16 %v4814_v20, %v4813_v21  ;;  %v1817_v56 = vpop.f32.mrb[15].mxu1 }
 0x430   : > { %v7472_v1 = vpack.c.bf16 %v1817_v56, %v1814_v33 }
 0x431   : > { %v2069_v34 = vsel %vm2022_vm0, %v7470_v63, 0 }
 0x432   : > { %5141 = vmatprep.subr.msk.bf16.mxu1 %vm2022_vm0, %v7472_v1  ;;  %v2066_v15 = vsel %vm2022_vm0, %v7472_v1, 0 }
 0x433   : > { %4860 = vmatpush3.bf16.xpose.msra.mxu1 %v2066_v15  ;;  %v7494_v15 = vld [vmem:[#allocation18] ss:$0 sm:$0xff] }
 0x434   : > { %v4769_v50 = vpop.f32.mrb[0].mxu0  ;;  %5142 = vmatprep.subr.msk.bf16.mxu1 %vm2022_vm0, %v7470_v63 }
 0x435   : > { %v1597_v46 = vpop.f32.mrb[1].mxu0 }
 0x436   : > { %v4770_v26 = vpop.f32.mrb[2].mxu0 }
 0x437   : > { %v7480_v49 = vpack.c.bf16 %v4770_v26, %v4769_v50  ;;  %v1600_v18 = vpop.f32.mrb[3].mxu0 }
 0x438   : > { %v7482_v55 = vpack.c.bf16 %v1600_v18, %v1597_v46 }
 0x43a   : > { %4863 = vmatprep.mubr.msk.bf16.mxu1 %vm2022_vm0, %v7482_v55 }
 0x43b   : > { %4862 = vmatpush3.bf16.xpose.msra.mxu1 %v2069_v34 }
 0x442   : > { %4864 = vmatmul.mubr.msk.bf16.vlgmr.msra.gmra.mrb[16].mxu1 %vm2022_vm0, %v7480_v49 }
 0x462   : > { %v1352_v22 = vpop.xlane.xlu0 %1351 }
 0x463   : > { %v1383_v28 = vmul.f32 0.0078125, %v1352_v22 }
 0x465   : > { %v1399_v27 = vadd.f32 1e-05, %v1383_v28  ;;  %v1354_v19 = vpop.xlane.xlu1 %1353 }
 0x466   : > { %v1356_v10 = vpop.xlane.xlu0 %1355  ;;  %v1384_v5 = vmul.f32 0.0078125, %v1354_v19 }
 0x467   : > { %5444 = vrsqrt.f32 %v1399_v27  ;;  %v1385_v39 = vmul.f32 0.0078125, %v1356_v10 }
 0x468   : > { %v1400_v31 = vadd.f32 1e-05, %v1384_v5 }
 0x469   : > { %v1401_v14 = vadd.f32 1e-05, %v1385_v39  ;;  %v1358_v29 = vpop.xlane.xlu1 %1357 }
 0x46a   : > { %v1360_v35 = vpop.xlane.xlu0 %1359  ;;  %5446 = vrsqrt.f32 %v1400_v31  ;;  %v1386_v25 = vmul.f32 0.0078125, %v1358_v29 }
 0x46b   : > { %v1387_v17 = vmul.f32 0.0078125, %v1360_v35  ;;  %5448 = vrsqrt.f32 %v1401_v14 }
 0x46c   : > { %v1402_v37 = vadd.f32 1e-05, %v1386_v25 }
 0x46d   : > { %v1403_v42 = vadd.f32 1e-05, %v1387_v17  ;;  %v1362_v52 = vpop.xlane.xlu1 %1361 }
 0x46e   : > { %v1364_v6 = vpop.xlane.xlu0 %1363  ;;  %5450 = vrsqrt.f32 %v1402_v37  ;;  %v1388_v36 = vmul.f32 0.0078125, %v1362_v52 }
 0x46f   : > { %v1389_v30 = vmul.f32 0.0078125, %v1364_v6  ;;  %5452 = vrsqrt.f32 %v1403_v42 }
 0x470   : > { %v1404_v62 = vadd.f32 1e-05, %v1388_v36 }
 0x471   : > { %v5445_v43 = vpop.eup %5444  ;;  %v1405_v60 = vadd.f32 1e-05, %v1389_v30  ;;  %v1366_v44 = vpop.xlane.xlu1 %1365 }
 0x472   : > { %v1368_v58 = vpop.xlane.xlu0 %1367  ;;  %v1431_v16 = vmul.f32 %v5445_v43, %v7337_v12  ;;  %5454 = vrsqrt.f32 %v1404_v62  ;;  %v1390_v4 = vmul.f32 0.0078125, %v1366_v44 }
 0x473   : > { %v1391_v24 = vmul.f32 0.0078125, %v1368_v58  ;;  %5456 = vrsqrt.f32 %v1405_v60 }
 0x474   : > { %v1453_v21 = vmul.f32 %v7490_v7, %v1431_v16  ;;  %v5447_v33 = vpop.eup %5446  ;;  %v1406_v20 = vadd.f32 1e-05, %v1390_v4 }
 0x475   : > { %v1407_v56 = vadd.f32 1e-05, %v1391_v24  ;;  %v5449_v50 = vpop.eup %5448  ;;  %v1370_v46 = vpop.xlane.xlu1 %1369  ;;  %v1432_v18 = vmul.f32 %v5447_v33, %v7344_v41 }
 0x476   : > { %v1372_v26 = vpop.xlane.xlu0 %1371  ;;  %v1433_v34 = vmul.f32 %v5449_v50, %v7347_v13  ;;  %5458 = vrsqrt.f32 %v1406_v20  ;;  %v1392_v12 = vmul.f32 0.0078125, %v1370_v46  ;;  %v1475_v27 = vadd.f32 %v7494_v15, %v1453_v21 }
 0x477   : > { %v1393_v22 = vmul.f32 0.0078125, %v1372_v26  ;;  %5460 = vrsqrt.f32 %v1407_v56  ;;  %v1454_v28 = vmul.f32 %v7490_v7, %v1432_v18 }
 0x478   : > { %v5451_v19 = vpop.eup %5450  ;;  %v1455_v10 = vmul.f32 %v7490_v7, %v1433_v34  ;;  %v1408_v5 = vadd.f32 1e-05, %v1392_v12 }
 0x479   : > { %v1409_v39 = vadd.f32 1e-05, %v1393_v22  ;;  %v5453_v31 = vpop.eup %5452  ;;  %v1434_v14 = vmul.f32 %v5451_v19, %v7355_v23  ;;  %v1374_v29 = vpop.xlane.xlu1 %1373  ;;  %v1476_v13 = vadd.f32 %v7494_v15, %v1454_v28 }
 0x47a   : > { %v1376_v41 = vpop.xlane.xlu0 %1375  ;;  %5462 = vrsqrt.f32 %v1408_v5  ;;  %v1394_v35 = vmul.f32 0.0078125, %v1374_v29  ;;  %v1477_v17 = vadd.f32 %v7494_v15, %v1455_v10  ;;  %v1435_v52 = vmul.f32 %v5453_v31, %v7358_v40 }
 0x47b   : > { %v1395_v25 = vmul.f32 0.0078125, %v1376_v41  ;;  %v1456_v37 = vmul.f32 %v7490_v7, %v1434_v14  ;;  %5464 = vrsqrt.f32 %v1409_v39  ;;  %v1829_v42 = vpack.c.bf16 %v1476_v13, %v1475_v27 }
 0x47c   : > { %v5455_v6 = vpop.eup %5454  ;;  %v1410_v36 = vadd.f32 1e-05, %v1394_v35  ;;  %v1457_v58 = vmul.f32 %v7490_v7, %v1435_v52 }
 0x47d   : > { %v1411_v30 = vadd.f32 1e-05, %v1395_v25  ;;  %v5457_v43 = vpop.eup %5456  ;;  %v1378_v23 = vpop.xlane.xlu1 %1377  ;;  %4831 = vmatprep.mubr.bf16.mxu0 %v1829_v42  ;;  %v1478_v60 = vadd.f32 %v7494_v15, %v1456_v37  ;;  %v1436_v44 = vmul.f32 %v5455_v6, %v7369_v9 }
 0x47e   : > { %v1380_v62 = vpop.xlane.xlu0 %1379  ;;  %5466 = vrsqrt.f32 %v1410_v36  ;;  %v1396_v16 = vmul.f32 0.0078125, %v1378_v23  ;;  %v1437_v24 = vmul.f32 %v5457_v43, %v7372_v38  ;;  %v1479_v33 = vadd.f32 %v7494_v15, %v1457_v58 }
 0x47f   : > { %v1397_v4 = vmul.f32 0.0078125, %v1380_v62  ;;  %5468 = vrsqrt.f32 %v1411_v30  ;;  %v1830_v40 = vpack.c.bf16 %v1478_v60, %v1477_v17  ;;  %v1458_v21 = vmul.f32 %v7490_v7, %v1436_v44 }
 0x480   : > { %v5459_v20 = vpop.eup %5458  ;;  %v1412_v56 = vadd.f32 1e-05, %v1396_v16  ;;  %v1459_v46 = vmul.f32 %v7490_v7, %v1437_v24 }
 0x481   : > { %v1413_v50 = vadd.f32 1e-05, %v1397_v4  ;;  %v5461_v26 = vpop.eup %5460  ;;  %v1382_v9 = vpop.xlane.xlu1 %1381  ;;  %4832 = vmatmul.mubr.bf16.vlgmr.msra.gmra.mrb[16].mxu0 %v1830_v40  ;;  %v1480_v18 = vadd.f32 %v7494_v15, %v1458_v21  ;;  %v1438_v34 = vmul.f32 %v5459_v20, %v7384_v53 }
 0x482   : > { %5470 = vrsqrt.f32 %v1412_v56  ;;  %v1398_v38 = vmul.f32 0.0078125, %v1382_v9  ;;  %v1439_v12 = vmul.f32 %v5461_v26, %v7387_v47  ;;  %v1481_v27 = vadd.f32 %v7494_v15, %v1459_v46 }
 0x483   : > { %5472 = vrsqrt.f32 %v1413_v50  ;;  %v1831_v22 = vpack.c.bf16 %v1480_v18, %v1479_v33  ;;  %v1460_v28 = vmul.f32 %v7490_v7, %v1438_v34 }
 0x484   : > { %v5463_v19 = vpop.eup %5462  ;;  %v1414_v10 = vadd.f32 1e-05, %v1398_v38  ;;  %v1461_v5 = vmul.f32 %v7490_v7, %v1439_v12 }
 0x485   : > { %v5465_v39 = vpop.eup %5464  ;;  %4835 = vmatprep.mubr.bf16.mxu0 %v1831_v22  ;;  %v1482_v31 = vadd.f32 %v7494_v15, %v1460_v28  ;;  %v1440_v53 = vmul.f32 %v5463_v19, %v7396_v0 }
 0x486   : > { %5474 = vrsqrt.f32 %v1414_v10  ;;  %v1441_v14 = vmul.f32 %v5465_v39, %v7399_v61  ;;  %v1483_v41 = vadd.f32 %v7494_v15, %v1461_v5 }
 0x487   : > { %v1832_v47 = vpack.c.bf16 %v1482_v31, %v1481_v27  ;;  %v1462_v29 = vmul.f32 %v7490_v7, %v1440_v53 }
 0x488   : > { %v5467_v13 = vpop.eup %5466  ;;  %v1463_v35 = vmul.f32 %v7490_v7, %v1441_v14 }
 0x489   : > { %v5469_v25 = vpop.eup %5468  ;;  %4836 = vmatmul.mubr.bf16.gmra.mrb[20].mxu0 %v1832_v47  ;;  %v1484_v17 = vadd.f32 %v7494_v15, %v1462_v29  ;;  %v1442_v37 = vmul.f32 %v5467_v13, %v7406_v8 }
 0x48a   : > { %v1443_v42 = vmul.f32 %v5469_v25, %v7409_v3  ;;  %v1485_v61 = vadd.f32 %v7494_v15, %v1463_v35 }
 0x48b   : > { %v1833_v0 = vpack.c.bf16 %v1484_v17, %v1483_v41  ;;  %v1464_v52 = vmul.f32 %v7490_v7, %v1442_v37 }
 0x48c   : > { %v5471_v6 = vpop.eup %5470  ;;  %v1465_v36 = vmul.f32 %v7490_v7, %v1443_v42 }
 0x48d   : > { %v5473_v30 = vpop.eup %5472  ;;  %4839 = vmatprep.mubr.bf16.mxu0 %v1833_v0  ;;  %v1486_v43 = vadd.f32 %v7494_v15, %v1464_v52  ;;  %v1444_v23 = vmul.f32 %v5471_v6, %v7416_v57 }
 0x48e   : > { %v1445_v62 = vmul.f32 %v5473_v30, %v7419_v59  ;;  %v1487_v3 = vadd.f32 %v7494_v15, %v1465_v36 }
 0x48f   : > { %v1834_v60 = vpack.c.bf16 %v1486_v43, %v1485_v61  ;;  %v1466_v8 = vmul.f32 %v7490_v7, %v1444_v23 }
 0x490   : > { %v5475_v44 = vpop.eup %5474  ;;  %v1467_v58 = vmul.f32 %v7490_v7, %v1445_v62 }
 0x491   : > { %4840 = vmatmul.mubr.bf16.gmra.mrb[24].mxu0 %v1834_v60  ;;  %v1488_v16 = vadd.f32 %v7494_v15, %v1466_v8  ;;  %v1446_v4 = vmul.f32 %v5475_v44, %v7426_v45 }
 0x492   : > { %v1489_v57 = vadd.f32 %v7494_v15, %v1467_v58 }
 0x493   : > { %v1835_v24 = vpack.c.bf16 %v1488_v16, %v1487_v3  ;;  %v1468_v40 = vmul.f32 %v7490_v7, %v1446_v4 }
 0x495   : > { %4843 = vmatprep.mubr.bf16.mxu0 %v1835_v24  ;;  %v1490_v59 = vadd.f32 %v7494_v15, %v1468_v40  ;;  %v7616_v40 = vpop.permute.xlu0 %2465 }
 0x497   : > { %v1836_v21 = vpack.c.bf16 %v1490_v59, %v1489_v57 }
 0x498   : > { %v4773_v33 = vpop.f32.mrb[4].mxu0 }
 0x499   : > { %v1613_v20 = vpop.f32.mrb[5].mxu0  ;;  %4844 = vmatmul.mubr.bf16.gmra.mrb[28].mxu0 %v1836_v21 }
 0x49a   : > { %v4774_v56 = vpop.f32.mrb[6].mxu0 }
 0x49b   : > { %v7542_v50 = vpack.c.bf16 %v4774_v56, %v4773_v33  ;;  %v1616_v46 = vpop.f32.mrb[7].mxu0 }
 0x49c   : > { %v7544_v26 = vpack.c.bf16 %v1616_v46, %v1613_v20 }
 0x49e   : > { %4867 = vmatprep.mubr.msk.bf16.mxu1 %vm2022_vm0, %v7544_v26 }
 0x49f   : > { %4868 = vmatmul.mubr.msk.bf16.gmra.mrb[20].mxu1 %vm2022_vm0, %v7542_v50 }
 0x4a8   : > { %v4777_v45 = vpop.f32.mrb[8].mxu0 }
 0x4a9   : > { %v1629_v7 = vpop.f32.mrb[9].mxu0 }
 0x4aa   : > { %v4778_v9 = vpop.f32.mrb[10].mxu0 }
 0x4ab   : > { %v7550_v15 = vpack.c.bf16 %v4778_v9, %v4777_v45  ;;  %v1632_v18 = vpop.f32.mrb[11].mxu0 }
 0x4ac   : > { %v7552_v34 = vpack.c.bf16 %v1632_v18, %v1629_v7  ;;  %v7647_v7 = vpop.permute.xlu1 %2467 }
 0x4ae   : > { %4871 = vmatprep.mubr.msk.bf16.mxu1 %vm2022_vm0, %v7552_v34 }
 0x4af   : > { %4872 = vmatmul.mubr.msk.bf16.gmra.mrb[24].mxu1 %vm2022_vm0, %v7550_v15 }
 0x4b8   : > { %v4781_v38 = vpop.f32.mrb[12].mxu0 }
 0x4b9   : > { %v1645_v12 = vpop.f32.mrb[13].mxu0 }
 0x4ba   : > { %v4782_v22 = vpop.f32.mrb[14].mxu0 }
 0x4bb   : > { %v7558_v28 = vpack.c.bf16 %v4782_v22, %v4781_v38  ;;  %v1648_v27 = vpop.f32.mrb[15].mxu0 }
 0x4bc   : > { %v7560_v19 = vpack.c.bf16 %v1648_v27, %v1645_v12 }
 0x4be   : > { %4875 = vmatprep.mubr.msk.bf16.mxu1 %vm2022_vm0, %v7560_v19 }
 0x4bf   : > { %4876 = vmatmul.mubr.msk.bf16.gmra.mrb[28].mxu1 %vm2022_vm0, %v7558_v28 }
 0x515   : > { %v7566_v10 = vpop.f32.mrb[16].mxu1 }
 0x516   : > { %v7568_v5 = vpop.f32.mrb[17].mxu1  ;;  %2172 = vmax.xlane.f32.xlu0 %v7566_v10 }
 0x517   : > { %v7571_v39 = vpop.f32.mrb[18].mxu1 }
 0x518   : > { %2174 = vmax.xlane.f32.xlu1 %v7571_v39  ;;  %v7574_v31 = vpop.f32.mrb[19].mxu1 }
 0x51a   : > { %2168 = vmax.xlane.f32.xlu0 %v7568_v5 }
 0x51c   : > { %2170 = vmax.xlane.f32.xlu1 %v7574_v31 }
 0x554   : > { %v4833_v53 = vpop.f32.mrb[16].mxu0 }
 0x555   : > { %v1935_v14 = vpop.f32.mrb[17].mxu0 }
 0x556   : > { %v4834_v47 = vpop.f32.mrb[18].mxu0 }
 0x557   : > { %v7578_v29 = vpack.c.bf16 %v4834_v47, %v4833_v53  ;;  %v1938_v41 = vpop.f32.mrb[19].mxu0 }
 0x558   : > { %v7580_v13 = vpack.c.bf16 %v1938_v41, %v1935_v14 }
 0x55a   : > { %4879 = vmatprep.subr.bf16.mxu0 %v7580_v13 }
 0x55b   : > { %4880 = vmatpush3.bf16.msra.mxu0 %v7580_v13 }
 0x55c   : > { %v4837_v35 = vpop.f32.mrb[20].mxu0  ;;  %4881 = vmatprep.subr.bf16.mxu0 %v7578_v29 }
 0x55d   : > { %v1951_v25 = vpop.f32.mrb[21].mxu0 }
 0x55e   : > { %v4838_v17 = vpop.f32.mrb[22].mxu0 }
 0x55f   : > { %v7585_v37 = vpack.c.bf16 %v4838_v17, %v4837_v35  ;;  %v1954_v42 = vpop.f32.mrb[23].mxu0  ;;  %4882 = vmatpush3.bf16.msra.mxu0 %v7578_v29 }
 0x560   : > { %v7588_v0 = vpack.c.bf16 %v1954_v42, %v1951_v25 }
 0x562   : > { %4883 = vmatprep.subr.bf16.mxu0 %v7588_v0 }
 0x563   : > { %4884 = vmatpush3.bf16.msra.mxu0 %v7588_v0 }
 0x564   : > { %v4841_v52 = vpop.f32.mrb[24].mxu0  ;;  %4885 = vmatprep.subr.bf16.mxu0 %v7585_v37 }
 0x565   : > { %v1967_v61 = vpop.f32.mrb[25].mxu0 }
 0x566   : > { %v4842_v6 = vpop.f32.mrb[26].mxu0 }
 0x567   : > { %v7593_v36 = vpack.c.bf16 %v4842_v6, %v4841_v52  ;;  %v1970_v30 = vpop.f32.mrb[27].mxu0  ;;  %4886 = vmatpush3.bf16.msra.mxu0 %v7585_v37 }
 0x568   : > { %v7596_v43 = vpack.c.bf16 %v1970_v30, %v1967_v61 }
 0x56a   : > { %4887 = vmatprep.subr.bf16.mxu0 %v7596_v43 }
 0x56b   : > { %4888 = vmatpush3.bf16.msra.mxu0 %v7596_v43 }
 0x56c   : > { %v4845_v23 = vpop.f32.mrb[28].mxu0  ;;  %4889 = vmatprep.subr.bf16.mxu0 %v7593_v36 }
 0x56d   : > { %v1983_v62 = vpop.f32.mrb[29].mxu0 }
 0x56e   : > { %v4846_v60 = vpop.f32.mrb[30].mxu0 }
 0x56f   : > { %v7601_v8 = vpack.c.bf16 %v4846_v60, %v4845_v23  ;;  %v1986_v3 = vpop.f32.mrb[31].mxu0  ;;  %4890 = vmatpush3.bf16.msra.mxu0 %v7593_v36 }
 0x570   : > { %v7604_v44 = vpack.c.bf16 %v1986_v3, %v1983_v62 }
 0x572   : > { %v4869_v58 = vpop.f32.mrb[20].mxu1  ;;  %4891 = vmatprep.subr.bf16.mxu0 %v7604_v44 }
 0x573   : > { %v7607_v16 = vpop.f32.mrb[21].mxu1  ;;  %2180 = vmax.xlane.f32.xlu0 %v4869_v58  ;;  %4892 = vmatpush3.bf16.msra.mxu0 %v7604_v44 }
 0x574   : > { %v7610_v4 = vpop.f32.mrb[22].mxu1  ;;  %4893 = vmatprep.subr.bf16.mxu0 %v7601_v8 }
 0x575   : > { %2182 = vmax.xlane.f32.xlu1 %v7610_v4  ;;  %v7614_v24 = vpop.f32.mrb[23].mxu1 }
 0x577   : > { %2176 = vmax.xlane.f32.xlu0 %v7607_v16  ;;  %4894 = vmatpush3.bf16.msra.mxu0 %v7601_v8 }
 0x578   : > { %5143 = vmatprep.subr.msk.bf16.mxu0 %vm2022_vm0, %v7616_v40 }
 0x579   : > { %2178 = vmax.xlane.f32.xlu1 %v7614_v24 }
 0x582   : > { %v7623_v57 = vpop.f32.mrb[24].mxu1 }
 0x583   : > { %v7625_v59 = vpop.f32.mrb[25].mxu1  ;;  %2188 = vmax.xlane.f32.xlu0 %v7623_v57 }
 0x584   : > { %v7628_v21 = vpop.f32.mrb[26].mxu1 }
 0x585   : > { %2190 = vmax.xlane.f32.xlu1 %v7628_v21  ;;  %v7631_v33 = vpop.f32.mrb[27].mxu1 }
 0x587   : > { %2184 = vmax.xlane.f32.xlu0 %v7625_v59 }
 0x589   : > { %2186 = vmax.xlane.f32.xlu1 %v7631_v33 }
 0x592   : > { %v7635_v20 = vpop.f32.mrb[28].mxu1 }
 0x593   : > { %v7637_v56 = vpop.f32.mrb[29].mxu1  ;;  %2196 = vmax.xlane.f32.xlu0 %v7635_v20 }
 0x594   : > { %v7640_v46 = vpop.f32.mrb[30].mxu1 }
 0x595   : > { %v7642_v45 = vpop.f32.mrb[31].mxu1 }
 0x597   : > { %2192 = vmax.xlane.f32.xlu0 %v7637_v56 }
 0x59a   : > { %2471 = vrot.lane.b32.xlu1 %v7446_v48, %s6279_s26 }
 0x5a3   : > { %v2173_v38 = vpop.xlane.xlu0 %2172 }
 0x5a4   : > { %v2202_v53 = vsub.f32 %v7566_v10, %v2173_v38 }
 0x5a5   : > { %v2175_v9 = vpop.xlane.xlu1 %2174 }
 0x5a6   : > { %v2203_v18 = vsub.f32 %v7571_v39, %v2175_v9  ;;  %v2220_v41 = vmul.f32 1.442695, %v2202_v53 }
 0x5a7   : > { %v2169_v14 = vpop.xlane.xlu0 %2168 }
 0x5a8   : > { %v2222_v22 = vmul.f32 1.442695, %v2203_v18  ;;  %v2200_v35 = vsub.f32 %v7568_v5, %v2169_v14 }
 0x5a9   : > { %v2171_v12 = vpop.xlane.xlu1 %2170 }
 0x5aa   : > { %v2201_v27 = vsub.f32 %v7574_v31, %v2171_v12  ;;  %5476 = vpow2.f32 %v2222_v22  ;;  %v2216_v25 = vmul.f32 1.442695, %v2200_v35 }
 0x5ac   : > { %v2218_v47 = vmul.f32 1.442695, %v2201_v27 }
 0x5ad   : > { %2469 = vrot.lane.b32.xlu0 %v7448_v54, %s6279_s26 }
 0x5ae   : > { %5478 = vpow2.f32 %v2218_v47 }
 0x5af   : > { %5480 = vpow2.f32 %v2220_v41 }
 0x5b0   : > { %5482 = vpow2.f32 %v2216_v25 }
 0x5b4   : > { %v7657_v39 = vpop.eup %5476 }
 0x5b8   : > { %v7660_v31 = vpop.eup %5478 }
 0x5b9   : > { %v7663_v10 = vpop.eup %5480 }
 0x5ba   : > { %v7666_v5 = vpop.eup %5482 }
 0x5be   : > { %2198 = vmax.xlane.f32.xlu1 %v7640_v46 }
 0x5c2   : > { %2194 = vmax.xlane.f32.xlu1 %v7642_v45 }
 0x5c6   : > { %2254 = vadd.xlane.f32.xlu1 %v7657_v39 }
 0x5ca   : > { %2250 = vadd.xlane.f32.xlu1 %v7660_v31 }
 0x5cc   : > { %2252 = vadd.xlane.f32.xlu0 %v7663_v10 }
 0x5d0   : > { %2248 = vadd.xlane.f32.xlu0 %v7666_v5 }
 0x5db   : > { %2475 = vrot.lane.b32.xlu1 %v7458_v2, %s6279_s26 }
 0x5e6   : > { %2473 = vrot.lane.b32.xlu0 %v7460_v51, %s6279_s26 }
 0x600   : > { %v2181_v17 = vpop.xlane.xlu0 %2180 }
 0x601   : > { %v2206_v42 = vsub.f32 %v4869_v58, %v2181_v17 }
 0x602   : > { %v2183_v52 = vpop.xlane.xlu1 %2182 }
 0x603   : > { %v2228_v61 = vmul.f32 1.442695, %v2206_v42  ;;  %v2207_v30 = vsub.f32 %v7610_v4, %v2183_v52 }
 0x604   : > { %v2177_v6 = vpop.xlane.xlu0 %2176 }
 0x605   : > { %5484 = vpow2.f32 %v2228_v61  ;;  %v2204_v23 = vsub.f32 %v7607_v16, %v2177_v6  ;;  %v2230_v9 = vmul.f32 1.442695, %v2207_v30 }
 0x606   : > { %v2179_v62 = vpop.xlane.xlu1 %2178 }
 0x607   : > { %v2224_v60 = vmul.f32 1.442695, %v2204_v23  ;;  %v2205_v3 = vsub.f32 %v7614_v24, %v2179_v62 }
 0x609   : > { %5486 = vpow2.f32 %v2224_v60  ;;  %v2226_v18 = vmul.f32 1.442695, %v2205_v3 }
 0x60b   : > { %5488 = vpow2.f32 %v2226_v18 }
 0x60c   : > { %5490 = vpow2.f32 %v2230_v9 }
 0x60f   : > { %v7676_v38 = vpop.eup %5484 }
 0x610   : > { %2260 = vadd.xlane.f32.xlu0 %v7676_v38  ;;  %v2189_v58 = vpop.xlane.xlu0 %2188 }
 0x611   : > { %v2210_v12 = vsub.f32 %v7623_v57, %v2189_v58 }
 0x612   : > { %v2191_v22 = vpop.xlane.xlu1 %2190 }
 0x613   : > { %v7680_v4 = vpop.eup %5486  ;;  %v2236_v16 = vmul.f32 1.442695, %v2210_v12  ;;  %v2211_v53 = vsub.f32 %v7628_v21, %v2191_v22 }
 0x614   : > { %2256 = vadd.xlane.f32.xlu1 %v7680_v4  ;;  %v2185_v27 = vpop.xlane.xlu0 %2184 }
 0x615   : > { %v7683_v24 = vpop.eup %5488  ;;  %5492 = vpow2.f32 %v2236_v16  ;;  %v2208_v14 = vsub.f32 %v7625_v59, %v2185_v27  ;;  %v2238_v35 = vmul.f32 1.442695, %v2211_v53 }
 0x616   : > { %v2187_v47 = vpop.xlane.xlu1 %2186  ;;  %2258 = vadd.xlane.f32.xlu0 %v7683_v24  ;;  %v7688_v41 = vpop.eup %5490 }
 0x617   : > { %v2232_v57 = vmul.f32 1.442695, %v2208_v14  ;;  %v2209_v25 = vsub.f32 %v7631_v33, %v2187_v47 }
 0x618   : > { %2262 = vadd.xlane.f32.xlu1 %v7688_v41 }
 0x619   : > { %5494 = vpow2.f32 %v2232_v57  ;;  %v2234_v17 = vmul.f32 1.442695, %v2209_v25 }
 0x61a   : > { %5496 = vpow2.f32 %v2238_v35  ;;  %v2472_v3 = vpop.permute.xlu1 %2471 }
 0x61b   : > { %5498 = vpow2.f32 %v2234_v17 }
 0x61f   : > { %v7692_v42 = vpop.eup %5492 }
 0x620   : > { %2268 = vadd.xlane.f32.xlu1 %v7692_v42  ;;  %v2197_v21 = vpop.xlane.xlu0 %2196 }
 0x621   : > { %v2214_v59 = vsub.f32 %v7635_v20, %v2197_v21 }
 0x623   : > { %v7696_v52 = vpop.eup %5494  ;;  %v2244_v61 = vmul.f32 1.442695, %v2214_v59 }
 0x624   : > { %2264 = vadd.xlane.f32.xlu1 %v7696_v52  ;;  %v2193_v6 = vpop.xlane.xlu0 %2192  ;;  %v7700_v33 = vpop.eup %5496 }
 0x625   : > { %5500 = vpow2.f32 %v2244_v61  ;;  %v2212_v30 = vsub.f32 %v7637_v56, %v2193_v6  ;;  %v7703_v62 = vpop.eup %5498 }
 0x627   : > { %v2240_v23 = vmul.f32 1.442695, %v2212_v30 }
 0x628   : > { %2270 = vadd.xlane.f32.xlu1 %v7700_v33  ;;  %v2470_v27 = vpop.permute.xlu0 %2469 }
 0x629   : > { %5502 = vpow2.f32 %v2240_v23 }
 0x62c   : > { %2266 = vadd.xlane.f32.xlu1 %v7703_v62 }
 0x62f   : > { %v7706_v20 = vpop.eup %5500 }
 0x630   : > { %2276 = vadd.xlane.f32.xlu0 %v7706_v20 }
 0x633   : > { %v7709_v60 = vpop.eup %5502 }
 0x634   : > { %2272 = vadd.xlane.f32.xlu0 %v7709_v60 }
 0x64b   : > { %v2199_v56 = vpop.xlane.xlu1 %2198 }
 0x64c   : > { %v2215_v9 = vsub.f32 %v7640_v46, %v2199_v56  ;;  %v2506_v56 = vsel %vm2022_vm0, %v7616_v40, 0  ;;  %v2512_v40 = vsel %vm2022_vm0, %v2470_v27, 0 }
 0x64e   : > { %v2246_v18 = vmul.f32 1.442695, %v2215_v9 }
 0x64f   : > { %v2195_v58 = vpop.xlane.xlu1 %2194 }
 0x650   : > { %5504 = vpow2.f32 %v2246_v18  ;;  %v2213_v12 = vsub.f32 %v7642_v45, %v2195_v58 }
 0x652   : > { %v2242_v22 = vmul.f32 1.442695, %v2213_v12 }
 0x653   : > { %v2255_v16 = vpop.xlane.xlu1 %2254 }
 0x654   : > { %5506 = vpow2.f32 %v2242_v22 }
 0x657   : > { %v2251_v53 = vpop.xlane.xlu1 %2250 }
 0x659   : > { %v2253_v14 = vpop.xlane.xlu0 %2252 }
 0x65a   : > { %v7714_v47 = vpop.eup %5504  ;;  %5508 = vrcp.f32 %v2253_v14 }
 0x65b   : > { %2278 = vadd.xlane.f32.xlu0 %v7714_v47  ;;  %5510 = vrcp.f32 %v2251_v53 }
 0x65c   : > { %5512 = vrcp.f32 %v2255_v16 }
 0x65d   : > { %v2249_v57 = vpop.xlane.xlu0 %2248 }
 0x65e   : > { %v7717_v46 = vpop.eup %5506  ;;  %5514 = vrcp.f32 %v2249_v57 }
 0x65f   : > { %2274 = vadd.xlane.f32.xlu1 %v7717_v46 }
 0x664   : > { %v5509_v45 = vpop.eup %5508 }
 0x665   : > { %v5511_v35 = vpop.eup %5510  ;;  %v2298_v21 = vmul.f32 %v5509_v45, %v7663_v10 }
 0x666   : > { %v5513_v25 = vpop.eup %5512  ;;  %v2297_v61 = vmul.f32 %v5511_v35, %v7660_v31  ;;  %v2474_v31 = vpop.permute.xlu0 %2473 }
 0x667   : > { %v2299_v6 = vmul.f32 %v5513_v25, %v7657_v39  ;;  %v2509_v39 = vsel %vm2022_vm0, %v7647_v7, 0  ;;  %v2518_v10 = vsel %vm2022_vm0, %v2474_v31, 0 }
 0x668   : > { %v5515_v17 = vpop.eup %5514 }
 0x669   : > { %v2296_v59 = vmul.f32 %v5515_v17, %v7666_v5  ;;  %v2313_v23 = vpack.c.bf16 %v2299_v6, %v2298_v21  ;;  %v2476_v5 = vpop.permute.xlu1 %2475 }
 0x66b   : > { %v2312_v30 = vpack.c.bf16 %v2297_v61, %v2296_v59 }
 0x66d   : > { %4895 = vmatprep.mubr.bf16.mxu0 %v2312_v30 }
 0x66e   : > { %4896 = vmatmul.mubr.bf16.vlgmr.msra.gmra.mrb[32].mxu0 %v2313_v23 }
 0x66f   : > { %4912 = vmatpush3.bf16.xpose.msra.mxu0 %v2506_v56 }
 0x670   : > { %5144 = vmatprep.subr.msk.bf16.mxu0 %vm2022_vm0, %v7647_v7  ;;  %2479 = vrot.lane.b32.xlu1 %v7470_v63, %s6279_s26  ;;  %v2515_v7 = vsel %vm2022_vm0, %v2472_v3, 0 }
 0x671   : > { %2477 = vrot.lane.b32.xlu0 %v7472_v1, %s6279_s26 }
 0x674   : > { %2443 = vrot.lane.b32.xlu1 %v7480_v49, %s6279_s26 }
 0x675   : > { %2441 = vrot.lane.b32.xlu0 %v7482_v55, %s6279_s26 }
 0x677   : > { %4914 = vmatpush3.bf16.xpose.msra.mxu0 %v2509_v39 }
 0x678   : > { %5145 = vmatprep.subr.msk.bf16.mxu0 %vm2022_vm0, %v2470_v27  ;;  %2447 = vrot.lane.b32.xlu1 %v7542_v50, %s6279_s26 }
 0x679   : > { %2445 = vrot.lane.b32.xlu0 %v7544_v26, %s6279_s26 }
 0x67c   : > { %2451 = vrot.lane.b32.xlu1 %v7550_v15, %s6279_s26 }
 0x67d   : > { %2449 = vrot.lane.b32.xlu0 %v7552_v34, %s6279_s26 }
 0x67f   : > { %4916 = vmatpush3.bf16.xpose.msra.mxu0 %v2512_v40 }
 0x680   : > { %5146 = vmatprep.subr.msk.bf16.mxu0 %vm2022_vm0, %v2472_v3  ;;  %2455 = vrot.lane.b32.xlu1 %v7558_v28, %s6279_s26  ;;  %v2521_v3 = vsel %vm2022_vm0, %v2476_v5, 0 }
 0x681   : > { %2453 = vrot.lane.b32.xlu0 %v7560_v19, %s6279_s26 }
 0x684   : > { %2788 = vrot.lane.b32.xlu1 %v7578_v29, %s6279_s26 }
 0x685   : > { %2786 = vrot.lane.b32.xlu0 %v7580_v13, %s6279_s26 }
 0x687   : > { %4918 = vmatpush3.bf16.xpose.msra.mxu0 %v2515_v7 }
 0x688   : > { %5147 = vmatprep.subr.msk.bf16.mxu0 %vm2022_vm0, %v2474_v31  ;;  %2792 = vrot.lane.b32.xlu1 %v7585_v37, %s6279_s26 }
 0x689   : > { %2790 = vrot.lane.b32.xlu0 %v7588_v0, %s6279_s26 }
 0x68c   : > { %2796 = vrot.lane.b32.xlu1 %v7593_v36, %s6279_s26 }
 0x68d   : > { %2794 = vrot.lane.b32.xlu0 %v7596_v43, %s6279_s26 }
 0x68f   : > { %4920 = vmatpush3.bf16.xpose.msra.mxu0 %v2518_v10 }
 0x690   : > { %5148 = vmatprep.subr.msk.bf16.mxu0 %vm2022_vm0, %v2476_v5  ;;  %2800 = vrot.lane.b32.xlu1 %v7601_v8, %s6279_s26 }
 0x691   : > { %2798 = vrot.lane.b32.xlu0 %v7604_v44, %s6279_s26 }
 0x694   : > { %2974 = vrot.lane.b32.xlu1 %v7430_v32, %s6280_s16 }
 0x695   : > { %2972 = vrot.lane.b32.xlu0 %v7432_v11, %s6280_s16 }
 0x697   : > { %4922 = vmatpush3.bf16.xpose.msra.mxu0 %v2521_v3 }
 0x69d   : > { %v2261_v9 = vpop.xlane.xlu0 %2260 }
 0x6a1   : > { %v2257_v18 = vpop.xlane.xlu1 %2256 }
 0x6a2   : > { %5516 = vrcp.f32 %v2257_v18 }
 0x6a3   : > { %5518 = vrcp.f32 %v2261_v9  ;;  %v2259_v58 = vpop.xlane.xlu0 %2258 }
 0x6a4   : > { %5520 = vrcp.f32 %v2259_v58 }
 0x6a5   : > { %v2263_v12 = vpop.xlane.xlu1 %2262 }
 0x6a6   : > { %5522 = vrcp.f32 %v2263_v12 }
 0x6ac   : > { %v5517_v22 = vpop.eup %5516 }
 0x6ad   : > { %v5519_v16 = vpop.eup %5518  ;;  %v2269_v27 = vpop.xlane.xlu1 %2268  ;;  %v2300_v14 = vmul.f32 %v5517_v22, %v7680_v4 }
 0x6ae   : > { %v5521_v53 = vpop.eup %5520  ;;  %v2302_v17 = vmul.f32 %v5519_v16, %v7676_v38 }
 0x6af   : > { %v2301_v57 = vmul.f32 %v5521_v53, %v7683_v24 }
 0x6b0   : > { %v5523_v45 = vpop.eup %5522 }
 0x6b1   : > { %v2265_v35 = vpop.xlane.xlu1 %2264  ;;  %v2314_v25 = vpack.c.bf16 %v2301_v57, %v2300_v14  ;;  %v2303_v21 = vmul.f32 %v5523_v45, %v7688_v41 }
 0x6b3   : > { %4899 = vmatprep.mubr.bf16.mxu0 %v2314_v25  ;;  %v2315_v59 = vpack.c.bf16 %v2303_v21, %v2302_v17 }
 0x6b5   : > { %v2271_v61 = vpop.xlane.xlu1 %2270  ;;  %4900 = vmatmul.mubr.bf16.gmra.mrb[36].mxu0 %v2315_v59 }
 0x6b6   : > { %5524 = vrcp.f32 %v2271_v61 }
 0x6b7   : > { %5526 = vrcp.f32 %v2265_v35 }
 0x6b8   : > { %5528 = vrcp.f32 %v2269_v27 }
 0x6b9   : > { %v2267_v6 = vpop.xlane.xlu1 %2266 }
 0x6ba   : > { %5530 = vrcp.f32 %v2267_v6 }
 0x6bd   : > { %v2277_v31 = vpop.xlane.xlu0 %2276 }
 0x6c0   : > { %v5525_v30 = vpop.eup %5524 }
 0x6c1   : > { %v5527_v4 = vpop.eup %5526  ;;  %v2307_v56 = vmul.f32 %v5525_v30, %v7700_v33  ;;  %v2273_v10 = vpop.xlane.xlu0 %2272 }
 0x6c2   : > { %v5529_v23 = vpop.eup %5528  ;;  %v2304_v39 = vmul.f32 %v5527_v4, %v7696_v52 }
 0x6c3   : > { %v2306_v41 = vmul.f32 %v5529_v23, %v7692_v42 }
 0x6c4   : > { %v5531_v24 = vpop.eup %5530 }
 0x6c5   : > { %v2305_v38 = vmul.f32 %v5531_v24, %v7703_v62  ;;  %v2317_v7 = vpack.c.bf16 %v2307_v56, %v2306_v41 }
 0x6c7   : > { %v2316_v40 = vpack.c.bf16 %v2305_v38, %v2304_v39 }
 0x6c9   : > { %4903 = vmatprep.mubr.bf16.mxu0 %v2316_v40 }
 0x6ca   : > { %4904 = vmatmul.mubr.bf16.gmra.mrb[40].mxu0 %v2317_v7 }
 0x6e8   : > { %v2279_v5 = vpop.xlane.xlu0 %2278 }
 0x6e9   : > { %5532 = vrcp.f32 %v2279_v5 }
 0x6ea   : > { %5534 = vrcp.f32 %v2273_v10 }
 0x6eb   : > { %5536 = vrcp.f32 %v2277_v31 }
 0x6ec   : > { %v2275_v3 = vpop.xlane.xlu1 %2274  ;;  %v2478_v9 = vpop.permute.xlu0 %2477 }
 0x6ed   : > { %5538 = vrcp.f32 %v2275_v3  ;;  %5149 = vmatprep.subr.msk.bf16.mxu0 %vm2022_vm0, %v2478_v9  ;;  %v2524_v52 = vsel %vm2022_vm0, %v2478_v9, 0 }
 0x6ee   : > { %4924 = vmatpush3.bf16.xpose.msra.mxu0 %v2524_v52 }
 0x6f0   : > { %v2480_v33 = vpop.permute.xlu1 %2479  ;;  %v2442_v42 = vpop.permute.xlu0 %2441 }
 0x6f1   : > { %5150 = vmatprep.subr.msk.bf16.mxu0 %vm2022_vm0, %v2480_v33  ;;  %v2527_v22 = vsel %vm2022_vm0, %v2480_v33, 0 }
 0x6f3   : > { %v5533_v62 = vpop.eup %5532 }
 0x6f4   : > { %v2444_v18 = vpop.permute.xlu1 %2443  ;;  %v2446_v58 = vpop.permute.xlu0 %2445  ;;  %v2311_v53 = vmul.f32 %v5533_v62, %v7714_v47 }
 0x6f5   : > { %v5535_v12 = vpop.eup %5534 }
 0x6f6   : > { %v5537_v16 = vpop.eup %5536  ;;  %4926 = vmatpush3.bf16.xpose.msra.mxu0 %v2527_v22  ;;  %v2308_v45 = vmul.f32 %v5535_v12, %v7709_v60 }
 0x6f7   : > { %v5539_v27 = vpop.eup %5538  ;;  %v2310_v25 = vmul.f32 %v5537_v16, %v7706_v20 }
 0x6f8   : > { %v2448_v14 = vpop.permute.xlu1 %2447  ;;  %v2450_v57 = vpop.permute.xlu0 %2449  ;;  %v2309_v35 = vmul.f32 %v5539_v27, %v7717_v46 }
 0x6f9   : > { %v2319_v21 = vpack.c.bf16 %v2311_v53, %v2310_v25 }
 0x6fa   : > { %v2318_v17 = vpack.c.bf16 %v2309_v35, %v2308_v45 }
 0x6fc   : > { %v2452_v59 = vpop.permute.xlu1 %2451  ;;  %4907 = vmatprep.mubr.bf16.mxu0 %v2318_v17  ;;  %v2454_v61 = vpop.permute.xlu0 %2453 }
 0x6fd   : > { %4908 = vmatmul.mubr.bf16.gmra.mrb[44].mxu0 %v2319_v21 }
 0x6fe   : > { %4927 = vmatprep.mubr.msk.bf16.mxu0 %vm2022_vm0, %v2442_v42 }
 0x700   : > { %v2456_v6 = vpop.permute.xlu1 %2455  ;;  %v2787_v30 = vpop.permute.xlu0 %2786 }
 0x701   : > { %4943 = vmatprep.subr.bf16.mxu1 %v2787_v30 }
 0x702   : > { %4944 = vmatpush3.bf16.msra.mxu1 %v2787_v30 }
 0x704   : > { %v2789_v47 = vpop.permute.xlu1 %2788  ;;  %v2791_v60 = vpop.permute.xlu0 %2790 }
 0x705   : > { %4928 = vmatmul.mubr.msk.bf16.vlgmr.msra.gmra.mrb[48].mxu0 %vm2022_vm0, %v2444_v18  ;;  %4945 = vmatprep.subr.bf16.mxu1 %v2789_v47 }
 0x706   : > { %4931 = vmatprep.mubr.msk.bf16.mxu0 %vm2022_vm0, %v2446_v58  ;;  %4946 = vmatpush3.bf16.msra.mxu1 %v2789_v47 }
 0x707   : > { %4947 = vmatprep.subr.bf16.mxu1 %v2791_v60 }
 0x708   : > { %v2793_v20 = vpop.permute.xlu1 %2792  ;;  %v2795_v46 = vpop.permute.xlu0 %2794 }
 0x70a   : > { %4948 = vmatpush3.bf16.msra.mxu1 %v2791_v60 }
 0x70b   : > { %4949 = vmatprep.subr.bf16.mxu1 %v2793_v20 }
 0x70c   : > { %v2797_v4 = vpop.permute.xlu1 %2796  ;;  %v2799_v23 = vpop.permute.xlu0 %2798 }
 0x70d   : > { %4932 = vmatmul.mubr.msk.bf16.gmra.mrb[52].mxu0 %vm2022_vm0, %v2448_v14 }
 0x70e   : > { %4935 = vmatprep.mubr.msk.bf16.mxu0 %vm2022_vm0, %v2450_v57  ;;  %4950 = vmatpush3.bf16.msra.mxu1 %v2793_v20 }
 0x70f   : > { %4951 = vmatprep.subr.bf16.mxu1 %v2795_v46 }
 0x710   : > { %v2801_v24 = vpop.permute.xlu1 %2800  ;;  %v7802_v56 = vpop.permute.xlu0 %2972 }
 0x712   : > { %4952 = vmatpush3.bf16.msra.mxu1 %v2795_v46 }
 0x713   : > { %4953 = vmatprep.subr.bf16.mxu1 %v2797_v4 }
 0x715   : > { %4936 = vmatmul.mubr.msk.bf16.gmra.mrb[56].mxu0 %vm2022_vm0, %v2452_v59 }
 0x716   : > { %4939 = vmatprep.mubr.msk.bf16.mxu0 %vm2022_vm0, %v2454_v61  ;;  %4954 = vmatpush3.bf16.msra.mxu1 %v2797_v4 }
 0x717   : > { %4955 = vmatprep.subr.bf16.mxu1 %v2799_v23 }
 0x71a   : > { %4956 = vmatpush3.bf16.msra.mxu1 %v2799_v23 }
 0x71b   : > { %4957 = vmatprep.subr.bf16.mxu1 %v2801_v24 }
 0x71d   : > { %4940 = vmatmul.mubr.msk.bf16.gmra.mrb[60].mxu0 %vm2022_vm0, %v2456_v6 }
 0x71e   : > { %4958 = vmatpush3.bf16.msra.mxu1 %v2801_v24 }
 0x71f   : > { %5151 = vmatprep.subr.msk.bf16.mxu1 %vm2022_vm0, %v7802_v56 }
 0x741   : > { %v4897_v39 = vpop.f32.mrb[32].mxu0 }
 0x742   : > { %v2354_v38 = vpop.f32.mrb[33].mxu0 }
 0x743   : > { %v4898_v41 = vpop.f32.mrb[34].mxu0 }
 0x744   : > { %v2418_v40 = vpack.c.bf16 %v4898_v41, %v4897_v39  ;;  %v2357_v7 = vpop.f32.mrb[35].mxu0 }
 0x745   : > { %v2417_v31 = vpack.c.bf16 %v2357_v7, %v2354_v38  ;;  %v7851_v38 = vpop.permute.xlu1 %2974 }
 0x746   : > { %2426 = vst.msk [vmem:[#allocation2 + $0x8] sm:$0xff] %vm2022_vm0, %v2418_v40 }
 0x747   : > { %2425 = vst.msk [vmem:[#allocation2] sm:$0xff] %vm2022_vm0, %v2417_v31 }
 0x788   : > { %v4901_v10 = vpop.f32.mrb[36].mxu0 }
 0x789   : > { %v2370_v5 = vpop.f32.mrb[37].mxu0 }
 0x78a   : > { %v4902_v3 = vpop.f32.mrb[38].mxu0 }
 0x78b   : > { %v2420_v9 = vpack.c.bf16 %v4902_v3, %v4901_v10  ;;  %v2373_v52 = vpop.f32.mrb[39].mxu0 }
 0x78c   : > { %v2419_v33 = vpack.c.bf16 %v2373_v52, %v2370_v5 }
 0x78d   : > { %2428 = vst.msk [vmem:[#allocation2 + $0x18] sm:$0xff] %vm2022_vm0, %v2420_v9 }
 0x78e   : > { %2427 = vst.msk [vmem:[#allocation2 + $0x10] sm:$0xff] %vm2022_vm0, %v2419_v33 }
 0x79d   : > { %v4905_v42 = vpop.f32.mrb[40].mxu0 }
 0x79e   : > { %v2386_v62 = vpop.f32.mrb[41].mxu0 }
 0x79f   : > { %v4906_v18 = vpop.f32.mrb[42].mxu0 }
 0x7a0   : > { %v2422_v58 = vpack.c.bf16 %v4906_v18, %v4905_v42  ;;  %v2389_v12 = vpop.f32.mrb[43].mxu0 }
 0x7a1   : > { %v2421_v22 = vpack.c.bf16 %v2389_v12, %v2386_v62 }
 0x7a2   : > { %2430 = vst.msk [vmem:[#allocation2 + $0x28] sm:$0xff] %vm2022_vm0, %v2422_v58 }
 0x7a3   : > { %2429 = vst.msk [vmem:[#allocation2 + $0x20] sm:$0xff] %vm2022_vm0, %v2421_v22 }
 0x7d0   : > { %v4909_v16 = vpop.f32.mrb[44].mxu0 }
 0x7d1   : > { %v2402_v27 = vpop.f32.mrb[45].mxu0 }
 0x7d2   : > { %v4910_v53 = vpop.f32.mrb[46].mxu0 }
 0x7d3   : > { %v2424_v14 = vpack.c.bf16 %v4910_v53, %v4909_v16  ;;  %v2405_v57 = vpop.f32.mrb[47].mxu0 }
 0x7d4   : > { %v2423_v45 = vpack.c.bf16 %v2405_v57, %v2402_v27 }
 0x7d5   : > { %2432 = vst.msk [vmem:[#allocation2 + $0x38] sm:$0xff] %vm2022_vm0, %v2424_v14 }
 0x7d6   : > { %2431 = vst.msk [vmem:[#allocation2 + $0x30] sm:$0xff] %vm2022_vm0, %v2423_v45 }
 0x7d8   : > { %v4929_v35 = vpop.f32.mrb[48].mxu0 }
 0x7d9   : > { %2630 = vmax.xlane.f32.xlu0 %v4929_v35  ;;  %v2563_v25 = vpop.f32.mrb[49].mxu0 }
 0x7da   : > { %v4930_v17 = vpop.f32.mrb[50].mxu0 }
 0x7db   : > { %v2566_v21 = vpop.f32.mrb[51].mxu0 }
 0x7dc   : > { %2628 = vmax.xlane.f32.xlu1 %v2566_v21 }
 0x7dd   : > { %2626 = vmax.xlane.f32.xlu0 %v2563_v25 }
 0x7e0   : > { %v4933_v59 = vpop.f32.mrb[52].mxu0 }
 0x7e1   : > { %2632 = vmax.xlane.f32.xlu0 %v4930_v17  ;;  %v7814_v61 = vpop.f32.mrb[53].mxu0 }
 0x7e2   : > { %v7816_v6 = vpop.f32.mrb[54].mxu0 }
 0x7e3   : > { %2640 = vmax.xlane.f32.xlu1 %v7816_v6  ;;  %v7819_v30 = vpop.f32.mrb[55].mxu0 }
 0x7e5   : > { %2638 = vmax.xlane.f32.xlu0 %v4933_v59 }
 0x7e7   : > { %2636 = vmax.xlane.f32.xlu1 %v7819_v30 }
 0x7e8   : > { %v7822_v47 = vpop.f32.mrb[56].mxu0 }
 0x7e9   : > { %2634 = vmax.xlane.f32.xlu0 %v7814_v61  ;;  %v7825_v60 = vpop.f32.mrb[57].mxu0 }
 0x7ea   : > { %v7827_v20 = vpop.f32.mrb[58].mxu0 }
 0x7eb   : > { %2648 = vmax.xlane.f32.xlu1 %v7827_v20  ;;  %v7830_v46 = vpop.f32.mrb[59].mxu0 }
 0x7ed   : > { %2646 = vmax.xlane.f32.xlu0 %v7822_v47 }
 0x7ef   : > { %2644 = vmax.xlane.f32.xlu1 %v7830_v46 }
 0x7f0   : > { %v7834_v4 = vpop.f32.mrb[60].mxu0 }
 0x7f1   : > { %2642 = vmax.xlane.f32.xlu0 %v7825_v60  ;;  %v7837_v23 = vpop.f32.mrb[61].mxu0 }
 0x7f2   : > { %v7839_v24 = vpop.f32.mrb[62].mxu0 }
 0x7f3   : > { %v7841_v39 = vpop.f32.mrb[63].mxu0 }
 0x7f5   : > { %2654 = vmax.xlane.f32.xlu0 %v7834_v4 }
 0x7f9   : > { %2650 = vmax.xlane.f32.xlu0 %v7837_v23 }
 0x800   : > { %2978 = vrot.lane.b32.xlu1 %v7446_v48, %s6280_s16 }
 0x80f   : > { %2976 = vrot.lane.b32.xlu0 %v7448_v54, %s6280_s16 }
 0x824   : > { %2656 = vmax.xlane.f32.xlu1 %v7839_v24 }
 0x828   : > { %2652 = vmax.xlane.f32.xlu1 %v7841_v39 }
 0x866   : > { %v2631_v41 = vpop.xlane.xlu0 %2630 }
 0x867   : > { %v2660_v40 = vsub.f32 %v4929_v35, %v2631_v41 }
 0x869   : > { %v2678_v7 = vmul.f32 1.442695, %v2660_v40  ;;  %v2629_v31 = vpop.xlane.xlu1 %2628 }
 0x86a   : > { %v2659_v10 = vsub.f32 %v2566_v21, %v2629_v31  ;;  %v2627_v5 = vpop.xlane.xlu0 %2626 }
 0x86b   : > { %5540 = vpow2.f32 %v2678_v7  ;;  %v2658_v3 = vsub.f32 %v2563_v25, %v2627_v5 }
 0x86c   : > { %v2676_v9 = vmul.f32 1.442695, %v2659_v10 }
 0x86d   : > { %v2674_v52 = vmul.f32 1.442695, %v2658_v3 }
 0x86e   : > { %5542 = vpow2.f32 %v2676_v9  ;;  %v2633_v33 = vpop.xlane.xlu0 %2632 }
 0x86f   : > { %5544 = vpow2.f32 %v2674_v52  ;;  %v2661_v42 = vsub.f32 %v4930_v17, %v2633_v33 }
 0x870   : > { %v2641_v53 = vpop.xlane.xlu1 %2640 }
 0x871   : > { %v2680_v62 = vmul.f32 1.442695, %v2661_v42  ;;  %v2665_v7 = vsub.f32 %v7816_v6, %v2641_v53 }
 0x872   : > { %v2639_v16 = vpop.xlane.xlu0 %2638 }
 0x873   : > { %5546 = vpow2.f32 %v2680_v62  ;;  %v2664_v57 = vsub.f32 %v4933_v59, %v2639_v16  ;;  %v2688_v3 = vmul.f32 1.442695, %v2665_v7 }
 0x874   : > { %v2637_v45 = vpop.xlane.xlu1 %2636 }
 0x875   : > { %v7853_v18 = vpop.eup %5540  ;;  %v2686_v25 = vmul.f32 1.442695, %v2664_v57  ;;  %v2663_v21 = vsub.f32 %v7819_v30, %v2637_v45 }
 0x876   : > { %2710 = vadd.xlane.f32.xlu1 %v7853_v18  ;;  %v2635_v27 = vpop.xlane.xlu0 %2634 }
 0x877   : > { %v2662_v17 = vsub.f32 %v7814_v61, %v2635_v27  ;;  %5548 = vpow2.f32 %v2686_v25  ;;  %v2684_v10 = vmul.f32 1.442695, %v2663_v21 }
 0x878   : > { %v7856_v58 = vpop.eup %5542  ;;  %v2649_v41 = vpop.xlane.xlu1 %2648 }
 0x879   : > { %v7858_v12 = vpop.eup %5544  ;;  %2708 = vadd.xlane.f32.xlu0 %v7856_v58  ;;  %v2682_v31 = vmul.f32 1.442695, %v2662_v17  ;;  %v2669_v6 = vsub.f32 %v7827_v20, %v2649_v41 }
 0x87a   : > { %2706 = vadd.xlane.f32.xlu1 %v7858_v12  ;;  %v2647_v14 = vpop.xlane.xlu0 %2646 }
 0x87b   : > { %v2668_v5 = vsub.f32 %v7822_v47, %v2647_v14  ;;  %5550 = vpow2.f32 %v2682_v31  ;;  %v2696_v27 = vmul.f32 1.442695, %v2669_v6 }
 0x87c   : > { %v2645_v9 = vpop.xlane.xlu1 %2644  ;;  %5552 = vpow2.f32 %v2684_v10 }
 0x87d   : > { %v7862_v22 = vpop.eup %5546  ;;  %v2694_v52 = vmul.f32 1.442695, %v2668_v5  ;;  %5554 = vpow2.f32 %v2688_v3 }
 0x87e   : > { %2712 = vadd.xlane.f32.xlu1 %v7862_v22  ;;  %v2643_v35 = vpop.xlane.xlu0 %2642 }
 0x87f   : > { %v2666_v61 = vsub.f32 %v7825_v60, %v2643_v35  ;;  %5556 = vpow2.f32 %v2694_v52  ;;  %v2667_v60 = vsub.f32 %v7830_v46, %v2645_v9 }
 0x880   : > { %v7879_v47 = vpop.permute.xlu1 %2978 }
 0x881   : > { %v2690_v62 = vmul.f32 1.442695, %v2666_v61  ;;  %v7877_v16 = vpop.eup %5548  ;;  %v2692_v57 = vmul.f32 1.442695, %v2667_v60  ;;  %v3013_v60 = vsel %vm2022_vm0, %v7802_v56, 0 }
 0x882   : > { %v2655_v40 = vpop.xlane.xlu0 %2654 }
 0x883   : > { %v2672_v59 = vsub.f32 %v7834_v4, %v2655_v40 }
 0x885   : > { %v2702_v30 = vmul.f32 1.442695, %v2672_v59  ;;  %v7883_v53 = vpop.eup %5550 }
 0x886   : > { %v2651_v33 = vpop.xlane.xlu0 %2650 }
 0x887   : > { %v2670_v42 = vsub.f32 %v7837_v23, %v2651_v33  ;;  %5558 = vpow2.f32 %v2702_v30  ;;  %v7885_v23 = vpop.eup %5552 }
 0x888   : > { %5560 = vpow2.f32 %v2690_v62  ;;  %v7890_v35 = vpop.eup %5554 }
 0x889   : > { %v2698_v4 = vmul.f32 1.442695, %v2670_v42  ;;  %v7892_v46 = vpop.eup %5556 }
 0x88a   : > { %v2977_v5 = vpop.permute.xlu0 %2976 }
 0x88b   : > { %5562 = vpow2.f32 %v2698_v4 }
 0x88c   : > { %5564 = vpow2.f32 %v2696_v27 }
 0x88f   : > { %2980 = vrot.lane.b32.xlu0 %v7460_v51, %s6280_s16  ;;  %2982 = vrot.lane.b32.xlu1 %v7458_v2, %s6280_s16 }
 0x891   : > { %v7897_v21 = vpop.eup %5558 }
 0x892   : > { %v7899_v41 = vpop.eup %5560 }
 0x895   : > { %v7903_v40 = vpop.eup %5562 }
 0x896   : > { %v7905_v7 = vpop.eup %5564 }
 0x8ae   : > { %2718 = vadd.xlane.f32.xlu0 %v7877_v16 }
 0x8b1   : > { %v2657_v14 = vpop.xlane.xlu1 %2656 }
 0x8b2   : > { %v2673_v20 = vsub.f32 %v7839_v24, %v2657_v14  ;;  %2714 = vadd.xlane.f32.xlu0 %v7883_v53 }
 0x8b3   : > { %2716 = vadd.xlane.f32.xlu1 %v7885_v23 }
 0x8b4   : > { %v2704_v45 = vmul.f32 1.442695, %v2673_v20 }
 0x8b5   : > { %v2653_v25 = vpop.xlane.xlu1 %2652 }
 0x8b6   : > { %5566 = vpow2.f32 %v2704_v45  ;;  %v2671_v17 = vsub.f32 %v7841_v39, %v2653_v25  ;;  %2720 = vadd.xlane.f32.xlu0 %v7890_v35 }
 0x8b7   : > { %2726 = vadd.xlane.f32.xlu1 %v7892_v46  ;;  %5568 = vpow2.f32 %v2692_v57 }
 0x8b8   : > { %v2700_v24 = vmul.f32 1.442695, %v2671_v17 }
 0x8ba   : > { %2734 = vadd.xlane.f32.xlu0 %v7897_v21  ;;  %5570 = vpow2.f32 %v2700_v24 }
 0x8bb   : > { %2722 = vadd.xlane.f32.xlu1 %v7899_v41 }
 0x8be   : > { %2730 = vadd.xlane.f32.xlu0 %v7903_v40 }
 0x8bf   : > { %2728 = vadd.xlane.f32.xlu1 %v7905_v7 }
 0x8c0   : > { %v7909_v39 = vpop.eup %5566 }
 0x8c1   : > { %v7911_v31 = vpop.eup %5568 }
 0x8c2   : > { %2736 = vadd.xlane.f32.xlu0 %v7909_v39 }
 0x8c3   : > { %2724 = vadd.xlane.f32.xlu1 %v7911_v31 }
 0x8c4   : > { %v7915_v10 = vpop.eup %5570 }
 0x8c7   : > { %2732 = vadd.xlane.f32.xlu1 %v7915_v10 }
 0x8d8   : > { %2986 = vrot.lane.b32.xlu1 %v7470_v63, %s6280_s16  ;;  %2984 = vrot.lane.b32.xlu0 %v7472_v1, %s6280_s16 }
 0x8dc   : > { %2958 = vrot.lane.b32.xlu1 %v7480_v49, %s6280_s16  ;;  %2956 = vrot.lane.b32.xlu0 %v7482_v55, %s6280_s16 }
 0x8e0   : > { %2962 = vrot.lane.b32.xlu1 %v7542_v50, %s6280_s16  ;;  %2960 = vrot.lane.b32.xlu0 %v7544_v26, %s6280_s16 }
 0x8e4   : > { %2966 = vrot.lane.b32.xlu1 %v7550_v15, %s6280_s16  ;;  %2964 = vrot.lane.b32.xlu0 %v7552_v34, %s6280_s16 }
 0x8e8   : > { %2970 = vrot.lane.b32.xlu1 %v7558_v28, %s6280_s16  ;;  %2968 = vrot.lane.b32.xlu0 %v7560_v19, %s6280_s16 }
 0x8ec   : > { %3287 = vrot.lane.b32.xlu1 %v7578_v29, %s6280_s16  ;;  %3285 = vrot.lane.b32.xlu0 %v7580_v13, %s6280_s16 }
 0x8f0   : > { %3291 = vrot.lane.b32.xlu1 %v7585_v37, %s6280_s16  ;;  %3289 = vrot.lane.b32.xlu0 %v7588_v0, %s6280_s16 }
 0x8f4   : > { %3295 = vrot.lane.b32.xlu1 %v7593_v36, %s6280_s16  ;;  %3293 = vrot.lane.b32.xlu0 %v7596_v43, %s6280_s16 }
 0x8f8   : > { %3299 = vrot.lane.b32.xlu1 %v7601_v8, %s6280_s16  ;;  %3297 = vrot.lane.b32.xlu0 %v7604_v44, %s6280_s16 }
 0x8fc   : > { %3473 = vrot.lane.b32.xlu1 %v7430_v32, %s6281_s2  ;;  %3471 = vrot.lane.b32.xlu0 %v7432_v11, %s6281_s2 }
 0x903   : > { %v2711_v3 = vpop.xlane.xlu1 %2710 }
 0x906   : > { %v2709_v9 = vpop.xlane.xlu0 %2708 }
 0x907   : > { %5572 = vrcp.f32 %v2709_v9  ;;  %v2707_v59 = vpop.xlane.xlu1 %2706 }
 0x908   : > { %5574 = vrcp.f32 %v2707_v59 }
 0x909   : > { %5576 = vrcp.f32 %v2711_v3 }
 0x90a   : > { %v2981_v56 = vpop.permute.xlu0 %2980 }
 0x90b   : > { %v2713_v52 = vpop.xlane.xlu1 %2712 }
 0x90c   : > { %5578 = vrcp.f32 %v2713_v52 }
 0x911   : > { %v5573_v61 = vpop.eup %5572 }
 0x912   : > { %v5575_v33 = vpop.eup %5574  ;;  %v2755_v30 = vmul.f32 %v5573_v61, %v7856_v58  ;;  %v3016_v58 = vsel %vm2022_vm0, %v7851_v38, 0 }
 0x913   : > { %v2754_v42 = vmul.f32 %v5575_v33, %v7858_v12  ;;  %v5577_v6 = vpop.eup %5576  ;;  %v3022_v12 = vsel %vm2022_vm0, %v7879_v47, 0 }
 0x914   : > { %v2756_v11 = vmul.f32 %v5577_v6, %v7853_v18  ;;  %v3019_v18 = vsel %vm2022_vm0, %v2977_v5, 0 }
 0x915   : > { %v2770_v32 = vpack.c.bf16 %v2755_v30, %v2754_v42 }
 0x916   : > { %v5579_v62 = vpop.eup %5578 }
 0x917   : > { %v2757_v4 = vmul.f32 %v5579_v62, %v7862_v22  ;;  %4959 = vmatprep.mubr.bf16.mxu1 %v2770_v32  ;;  %v3025_v22 = vsel %vm2022_vm0, %v2981_v56, 0 }
 0x919   : > { %v2771_v27 = vpack.c.bf16 %v2757_v4, %v2756_v11 }
 0x91b   : > { %4960 = vmatmul.mubr.bf16.vlgmr.msra.gmra.mrb[32].mxu1 %v2771_v27 }
 0x91c   : > { %4976 = vmatpush3.bf16.xpose.msra.mxu1 %v3013_v60 }
 0x91d   : > { %5152 = vmatprep.subr.msk.bf16.mxu1 %vm2022_vm0, %v7851_v38  ;;  %v2983_v38 = vpop.permute.xlu1 %2982 }
 0x91e   : > { %v3028_v45 = vsel %vm2022_vm0, %v2983_v38, 0 }
 0x924   : > { %4978 = vmatpush3.bf16.xpose.msra.mxu1 %v3016_v58 }
 0x925   : > { %5153 = vmatprep.subr.msk.bf16.mxu1 %vm2022_vm0, %v2977_v5 }
 0x92c   : > { %4980 = vmatpush3.bf16.xpose.msra.mxu1 %v3019_v18 }
 0x92d   : > { %5154 = vmatprep.subr.msk.bf16.mxu1 %vm2022_vm0, %v7879_v47 }
 0x934   : > { %4982 = vmatpush3.bf16.xpose.msra.mxu1 %v3022_v12 }
 0x935   : > { %5155 = vmatprep.subr.msk.bf16.mxu1 %vm2022_vm0, %v2981_v56 }
 0x93b   : > { %v2719_v14 = vpop.xlane.xlu0 %2718 }
 0x93c   : > { %4984 = vmatpush3.bf16.xpose.msra.mxu1 %v3025_v22 }
 0x93d   : > { %5156 = vmatprep.subr.msk.bf16.mxu1 %vm2022_vm0, %v2983_v38 }
 0x93f   : > { %v2715_v20 = vpop.xlane.xlu0 %2714 }
 0x940   : > { %5580 = vrcp.f32 %v2715_v20  ;;  %v2717_v57 = vpop.xlane.xlu1 %2716 }
 0x941   : > { %5582 = vrcp.f32 %v2717_v57 }
 0x942   : > { %5584 = vrcp.f32 %v2719_v14 }
 0x943   : > { %v2721_v25 = vpop.xlane.xlu0 %2720 }
 0x944   : > { %4986 = vmatpush3.bf16.xpose.msra.mxu1 %v3028_v45  ;;  %5586 = vrcp.f32 %v2721_v25  ;;  %v2727_v47 = vpop.xlane.xlu1 %2726 }
 0x947   : > { %v2735_v17 = vpop.xlane.xlu0 %2734 }
 0x948   : > { %v2723_v24 = vpop.xlane.xlu1 %2722 }
 0x94a   : > { %v5581_v5 = vpop.eup %5580 }
 0x94b   : > { %v5583_v3 = vpop.eup %5582  ;;  %v2731_v9 = vpop.xlane.xlu0 %2730  ;;  %v2758_v59 = vmul.f32 %v5581_v5, %v7883_v53 }
 0x94c   : > { %v5585_v52 = vpop.eup %5584  ;;  %v2729_v61 = vpop.xlane.xlu1 %2728  ;;  %v2759_v33 = vmul.f32 %v5583_v3, %v7885_v23 }
 0x94d   : > { %5588 = vrcp.f32 %v2729_v61  ;;  %v2760_v32 = vmul.f32 %v5585_v52, %v7877_v16 }
 0x94e   : > { %v5587_v30 = vpop.eup %5586  ;;  %v2772_v42 = vpack.c.bf16 %v2759_v33, %v2758_v59  ;;  %5590 = vrcp.f32 %v2723_v24 }
 0x94f   : > { %v2737_v6 = vpop.xlane.xlu0 %2736  ;;  %v2761_v62 = vmul.f32 %v5587_v30, %v7890_v35  ;;  %5592 = vrcp.f32 %v2727_v47 }
 0x950   : > { %v2725_v11 = vpop.xlane.xlu1 %2724  ;;  %4963 = vmatprep.mubr.bf16.mxu1 %v2772_v42 }
 0x951   : > { %5594 = vrcp.f32 %v2725_v11  ;;  %v2773_v4 = vpack.c.bf16 %v2761_v62, %v2760_v32 }
 0x952   : > { %5596 = vrcp.f32 %v2731_v9 }
 0x953   : > { %4964 = vmatmul.mubr.bf16.gmra.mrb[36].mxu1 %v2773_v4  ;;  %v2985_v53 = vpop.permute.xlu0 %2984 }
 0x954   : > { %v2733_v27 = vpop.xlane.xlu1 %2732  ;;  %5157 = vmatprep.subr.msk.bf16.mxu1 %vm2022_vm0, %v2985_v53  ;;  %v3031_v23 = vsel %vm2022_vm0, %v2985_v53, 0 }
 0x955   : > { %5598 = vrcp.f32 %v2733_v27  ;;  %4988 = vmatpush3.bf16.xpose.msra.mxu1 %v3031_v23 }
 0x956   : > { %5600 = vrcp.f32 %v2737_v6 }
 0x957   : > { %v2957_v60 = vpop.permute.xlu0 %2956  ;;  %v5589_v16 = vpop.eup %5588  ;;  %5602 = vrcp.f32 %v2735_v17 }
 0x958   : > { %v2987_v35 = vpop.permute.xlu1 %2986  ;;  %v5591_v58 = vpop.eup %5590  ;;  %v2765_v22 = vmul.f32 %v5589_v16, %v7905_v7 }
 0x959   : > { %5158 = vmatprep.subr.msk.bf16.mxu1 %vm2022_vm0, %v2987_v35  ;;  %v5593_v18 = vpop.eup %5592  ;;  %v3034_v38 = vsel %vm2022_vm0, %v2987_v35, 0  ;;  %v2762_v20 = vmul.f32 %v5591_v58, %v7899_v41 }
 0x95a   : > { %v2764_v25 = vmul.f32 %v5593_v18, %v7892_v46 }
 0x95b   : > { %v5595_v12 = vpop.eup %5594  ;;  %v2961_v56 = vpop.permute.xlu0 %2960 }
 0x95c   : > { %v2959_v14 = vpop.permute.xlu1 %2958  ;;  %v2763_v57 = vmul.f32 %v5595_v12, %v7911_v31  ;;  %v5597_v45 = vpop.eup %5596  ;;  %v2775_v5 = vpack.c.bf16 %v2765_v22, %v2764_v25 }
 0x95d   : > { %4990 = vmatpush3.bf16.xpose.msra.mxu1 %v3034_v38  ;;  %v2766_v7 = vmul.f32 %v5597_v45, %v7903_v40 }
 0x95e   : > { %v2774_v47 = vpack.c.bf16 %v2763_v57, %v2762_v20 }
 0x95f   : > { %v5599_v17 = vpop.eup %5598  ;;  %v2965_v24 = vpop.permute.xlu0 %2964 }
 0x960   : > { %v5601_v3 = vpop.eup %5600  ;;  %v2963_v9 = vpop.permute.xlu1 %2962  ;;  %4967 = vmatprep.mubr.bf16.mxu1 %v2774_v47  ;;  %v2767_v59 = vmul.f32 %v5599_v17, %v7915_v10 }
 0x961   : > { %4968 = vmatmul.mubr.bf16.gmra.mrb[40].mxu1 %v2775_v5  ;;  %v5603_v52 = vpop.eup %5602  ;;  %v2769_v31 = vmul.f32 %v5601_v3, %v7909_v39 }
 0x962   : > { %v2776_v41 = vpack.c.bf16 %v2767_v59, %v2766_v7  ;;  %v2768_v46 = vmul.f32 %v5603_v52, %v7897_v21 }
 0x963   : > { %v2969_v61 = vpop.permute.xlu0 %2968 }
 0x964   : > { %v2967_v33 = vpop.permute.xlu1 %2966  ;;  %4971 = vmatprep.mubr.bf16.mxu1 %v2776_v41  ;;  %v2777_v42 = vpack.c.bf16 %v2769_v31, %v2768_v46 }
 0x967   : > { %v3286_v30 = vpop.permute.xlu0 %3285 }
 0x968   : > { %v2971_v6 = vpop.permute.xlu1 %2970  ;;  %5007 = vmatprep.subr.bf16.mxu0 %v3286_v30 }
 0x969   : > { %4972 = vmatmul.mubr.bf16.gmra.mrb[44].mxu1 %v2777_v42  ;;  %5008 = vmatpush3.bf16.msra.mxu0 %v3286_v30 }
 0x96a   : > { %4991 = vmatprep.mubr.msk.bf16.mxu1 %vm2022_vm0, %v2957_v60 }
 0x96b   : > { %v3290_v10 = vpop.permute.xlu0 %3289 }
 0x96c   : > { %v3288_v40 = vpop.permute.xlu1 %3287 }
 0x96d   : > { %5009 = vmatprep.subr.bf16.mxu0 %v3288_v40 }
 0x96e   : > { %5010 = vmatpush3.bf16.msra.mxu0 %v3288_v40 }
 0x96f   : > { %5011 = vmatprep.subr.bf16.mxu0 %v3290_v10  ;;  %v3294_v21 = vpop.permute.xlu0 %3293 }
 0x970   : > { %v3292_v39 = vpop.permute.xlu1 %3291 }
 0x971   : > { %4992 = vmatmul.mubr.msk.bf16.vlgmr.msra.gmra.mrb[48].mxu1 %vm2022_vm0, %v2959_v14 }
 0x972   : > { %4995 = vmatprep.mubr.msk.bf16.mxu1 %vm2022_vm0, %v2961_v56  ;;  %5012 = vmatpush3.bf16.msra.mxu0 %v3290_v10 }
 0x973   : > { %5013 = vmatprep.subr.bf16.mxu0 %v3292_v39  ;;  %v3298_v62 = vpop.permute.xlu0 %3297 }
 0x974   : > { %v3296_v32 = vpop.permute.xlu1 %3295 }
 0x976   : > { %5014 = vmatpush3.bf16.msra.mxu0 %v3292_v39 }
 0x977   : > { %5015 = vmatprep.subr.bf16.mxu0 %v3294_v21  ;;  %v8001_v4 = vpop.permute.xlu0 %3471 }
 0x978   : > { %v3300_v11 = vpop.permute.xlu1 %3299 }
 0x979   : > { %4996 = vmatmul.mubr.msk.bf16.gmra.mrb[52].mxu1 %vm2022_vm0, %v2963_v9 }
 0x97a   : > { %4999 = vmatprep.mubr.msk.bf16.mxu1 %vm2022_vm0, %v2965_v24  ;;  %5016 = vmatpush3.bf16.msra.mxu0 %v3294_v21 }
 0x97b   : > { %5017 = vmatprep.subr.bf16.mxu0 %v3296_v32 }
 0x97e   : > { %5018 = vmatpush3.bf16.msra.mxu0 %v3296_v32 }
 0x97f   : > { %5019 = vmatprep.subr.bf16.mxu0 %v3298_v62 }
 0x981   : > { %5000 = vmatmul.mubr.msk.bf16.gmra.mrb[56].mxu1 %vm2022_vm0, %v2967_v33 }
 0x982   : > { %5003 = vmatprep.mubr.msk.bf16.mxu1 %vm2022_vm0, %v2969_v61  ;;  %5020 = vmatpush3.bf16.msra.mxu0 %v3298_v62 }
 0x983   : > { %5021 = vmatprep.subr.bf16.mxu0 %v3300_v11 }
 0x986   : > { %5022 = vmatpush3.bf16.msra.mxu0 %v3300_v11  ;;  %v8091_v11 = vpop.permute.xlu1 %3473 }
 0x987   : > { %5159 = vmatprep.subr.msk.bf16.mxu0 %vm2022_vm0, %v8001_v4 }
 0x989   : > { %5004 = vmatmul.mubr.msk.bf16.gmra.mrb[60].mxu1 %vm2022_vm0, %v2971_v6 }
 0x9ee   : > { %v8006_v53 = vpop.f32.mrb[32].mxu1 }
 0x9ef   : > { %v8008_v27 = vpop.f32.mrb[33].mxu1 }
 0x9f0   : > { %v8010_v23 = vpop.f32.mrb[34].mxu1 }
 0x9f1   : > { %v8014_v16 = vpop.f32.mrb[35].mxu1 }
 0xa26   : > { %v8018_v58 = vpop.f32.mrb[36].mxu1 }
 0xa27   : > { %v8020_v18 = vpop.f32.mrb[37].mxu1 }
 0xa28   : > { %v8022_v12 = vpop.f32.mrb[38].mxu1 }
 0xa29   : > { %v8026_v22 = vpop.f32.mrb[39].mxu1 }
 0xa34   : > { %v8030_v38 = vpop.f32.mrb[40].mxu1 }
 0xa35   : > { %v8032_v20 = vpop.f32.mrb[41].mxu1 }
 0xa36   : > { %8697 = vst [vmem:[#allocation44_spill] sm:$0xff] %v8032_v20  ;;  %v8034_v57 = vpop.f32.mrb[42].mxu1 }
 0xa37   : > { %v8038_v25 = vpop.f32.mrb[43].mxu1 }
 0xa38   : > { %8698 = vst [vmem:[#allocation45_spill] sm:$0xff] %v8038_v25 }
 0xa3c   : > { %v8042_v17 = vpop.f32.mrb[44].mxu1 }
 0xa3d   : > { %8699 = vst [vmem:[#allocation46_spill] sm:$0xff] %v8042_v17  ;;  %v8044_v24 = vpop.f32.mrb[45].mxu1 }
 0xa3e   : > { %8700 = vst [vmem:[#allocation47_spill] sm:$0xff] %v8044_v24  ;;  %v8046_v5 = vpop.f32.mrb[46].mxu1 }
 0xa3f   : > { %8701 = vst [vmem:[#allocation48_spill] sm:$0xff] %v8046_v5  ;;  %v8050_v9 = vpop.f32.mrb[47].mxu1 }
 0xa40   : > { %8702 = vst [vmem:[#allocation49_spill] sm:$0xff] %v8050_v9 }
 0xa44   : > { %v4993_v59 = vpop.f32.mrb[48].mxu1 }
 0xa45   : > { %3137 = vmax.xlane.f32.xlu0 %v4993_v59  ;;  %v3070_v52 = vpop.f32.mrb[49].mxu1 }
 0xa46   : > { %v4994_v41 = vpop.f32.mrb[50].mxu1 }
 0xa47   : > { %v3073_v61 = vpop.f32.mrb[51].mxu1 }
 0xa48   : > { %3135 = vmax.xlane.f32.xlu1 %v3073_v61 }
 0xa49   : > { %3133 = vmax.xlane.f32.xlu0 %v3070_v52 }
 0xa4c   : > { %v4997_v31 = vpop.f32.mrb[52].mxu1 }
 0xa4d   : > { %3139 = vmax.xlane.f32.xlu0 %v4994_v41  ;;  %v8054_v33 = vpop.f32.mrb[53].mxu1 }
 0xa4e   : > { %v8056_v46 = vpop.f32.mrb[54].mxu1 }
 0xa4f   : > { %3147 = vmax.xlane.f32.xlu1 %v8056_v46  ;;  %v8059_v30 = vpop.f32.mrb[55].mxu1 }
 0xa51   : > { %3145 = vmax.xlane.f32.xlu0 %v4997_v31 }
 0xa53   : > { %3143 = vmax.xlane.f32.xlu1 %v8059_v30 }
 0xa54   : > { %v8062_v42 = vpop.f32.mrb[56].mxu1 }
 0xa55   : > { %3141 = vmax.xlane.f32.xlu0 %v8054_v33  ;;  %v8065_v6 = vpop.f32.mrb[57].mxu1 }
 0xa56   : > { %v8067_v40 = vpop.f32.mrb[58].mxu1 }
 0xa57   : > { %3155 = vmax.xlane.f32.xlu1 %v8067_v40  ;;  %v8070_v10 = vpop.f32.mrb[59].mxu1 }
 0xa59   : > { %3153 = vmax.xlane.f32.xlu0 %v8062_v42 }
 0xa5b   : > { %3151 = vmax.xlane.f32.xlu1 %v8070_v10 }
 0xa5c   : > { %v8074_v39 = vpop.f32.mrb[60].mxu1 }
 0xa5d   : > { %3149 = vmax.xlane.f32.xlu0 %v8065_v6  ;;  %v8077_v21 = vpop.f32.mrb[61].mxu1 }
 0xa5e   : > { %v8079_v32 = vpop.f32.mrb[62].mxu1 }
 0xa5f   : > { %v8081_v62 = vpop.f32.mrb[63].mxu1 }
 0xa61   : > { %3161 = vmax.xlane.f32.xlu0 %v8074_v39 }
 0xa65   : > { %3157 = vmax.xlane.f32.xlu0 %v8077_v21 }
 0xa6c   : > { %3477 = vrot.lane.b32.xlu1 %v7446_v48, %s6281_s2 }
 0xa7b   : > { %3475 = vrot.lane.b32.xlu0 %v7448_v54, %s6281_s2 }
 0xa90   : > { %3163 = vmax.xlane.f32.xlu1 %v8079_v32 }
 0xa94   : > { %3159 = vmax.xlane.f32.xlu1 %v8081_v62 }
 0xad2   : > { %v3138_v7 = vpop.xlane.xlu0 %3137 }
 0xad3   : > { %v3167_v3 = vsub.f32 %v4993_v59, %v3138_v7 }
 0xad5   : > { %v3185_v47 = vmul.f32 1.442695, %v3167_v3  ;;  %v3136_v14 = vpop.xlane.xlu1 %3135 }
 0xad6   : > { %v3166_v35 = vsub.f32 %v3073_v61, %v3136_v14  ;;  %v3134_v45 = vpop.xlane.xlu0 %3133 }
 0xad7   : > { %5604 = vpow2.f32 %v3185_v47  ;;  %v3165_v56 = vsub.f32 %v3070_v52, %v3134_v45 }
 0xad8   : > { %v3183_v60 = vmul.f32 1.442695, %v3166_v35 }
 0xad9   : > { %v3181_v24 = vmul.f32 1.442695, %v3165_v56 }
 0xada   : > { %5606 = vpow2.f32 %v3183_v60  ;;  %v3140_v48 = vpop.xlane.xlu0 %3139 }
 0xadb   : > { %5608 = vpow2.f32 %v3181_v24  ;;  %v3168_v54 = vsub.f32 %v4994_v41, %v3140_v48 }
 0xadc   : > { %v3148_v14 = vpop.xlane.xlu1 %3147 }
 0xadd   : > { %v3187_v9 = vmul.f32 1.442695, %v3168_v54  ;;  %v3172_v48 = vsub.f32 %v8056_v46, %v3148_v14 }
 0xade   : > { %v3146_v60 = vpop.xlane.xlu0 %3145 }
 0xadf   : > { %5610 = vpow2.f32 %v3187_v9  ;;  %v3171_v47 = vsub.f32 %v4997_v31, %v3146_v60  ;;  %v3195_v20 = vmul.f32 1.442695, %v3172_v48 }
 0xae0   : > { %v3144_v24 = vpop.xlane.xlu1 %3143 }
 0xae1   : > { %v8093_v17 = vpop.eup %5604  ;;  %v3193_v7 = vmul.f32 1.442695, %v3171_v47  ;;  %v3170_v52 = vsub.f32 %v8059_v30, %v3144_v24 }
 0xae2   : > { %3217 = vadd.xlane.f32.xlu1 %v8093_v17  ;;  %v3142_v56 = vpop.xlane.xlu0 %3141 }
 0xae3   : > { %v3169_v59 = vsub.f32 %v8054_v33, %v3142_v56  ;;  %5612 = vpow2.f32 %v3193_v7  ;;  %v3191_v54 = vmul.f32 1.442695, %v3170_v52 }
 0xae4   : > { %v8096_v5 = vpop.eup %5606  ;;  %v3156_v41 = vpop.xlane.xlu1 %3155 }
 0xae5   : > { %v8098_v3 = vpop.eup %5608  ;;  %3215 = vadd.xlane.f32.xlu0 %v8096_v5  ;;  %v3176_v46 = vsub.f32 %v8067_v40, %v3156_v41 }
 0xae6   : > { %3213 = vadd.xlane.f32.xlu1 %v8098_v3  ;;  %v3154_v45 = vpop.xlane.xlu0 %3153 }
 0xae8   : > { %v3152_v25 = vpop.xlane.xlu1 %3151 }
 0xae9   : > { %v8102_v35 = vpop.eup %5610 }
 0xaea   : > { %3219 = vadd.xlane.f32.xlu1 %v8102_v35  ;;  %v3150_v9 = vpop.xlane.xlu0 %3149 }
 0xaeb   : > { %v3173_v33 = vsub.f32 %v8065_v6, %v3150_v9  ;;  %v3174_v6 = vsub.f32 %v8070_v10, %v3152_v25 }
 0xaed   : > { %v3197_v14 = vmul.f32 1.442695, %v3173_v33  ;;  %v8117_v24 = vpop.eup %5612  ;;  %v3199_v7 = vmul.f32 1.442695, %v3174_v6 }
 0xaee   : > { %v3162_v61 = vpop.xlane.xlu0 %3161 }
 0xaef   : > { %v3179_v31 = vsub.f32 %v8074_v39, %v3162_v61 }
 0xaf1   : > { %v3209_v30 = vmul.f32 1.442695, %v3179_v31 }
 0xaf2   : > { %v3158_v56 = vpop.xlane.xlu0 %3157 }
 0xaf3   : > { %v3177_v47 = vsub.f32 %v8077_v21, %v3158_v56  ;;  %v3512_v56 = vsel %vm2022_vm0, %v8001_v4, 0 }
 0xaf5   : > { %v3205_v39 = vmul.f32 1.442695, %v3177_v47 }
 0xafb   : > { %3479 = vrot.lane.b32.xlu0 %v7460_v51, %s6281_s2  ;;  %3481 = vrot.lane.b32.xlu1 %v7458_v2, %s6281_s2  ;;  %v3189_v51 = vmul.f32 1.442695, %v3169_v59  ;;  %v3175_v2 = vsub.f32 %v8062_v42, %v3154_v45  ;;  %v8119_v42 = vpop.permute.xlu1 %3477  ;;  %v3203_v45 = vmul.f32 1.442695, %v3176_v46 }
 0xafd   : > { %5614 = vpow2.f32 %v3189_v51  ;;  %v3201_v60 = vmul.f32 1.442695, %v3175_v2 }
 0xafe   : > { %5616 = vpow2.f32 %v3191_v54 }
 0xaff   : > { %5618 = vpow2.f32 %v3195_v20 }
 0xb00   : > { %5620 = vpow2.f32 %v3201_v60 }
 0xb01   : > { %5622 = vpow2.f32 %v3209_v30 }
 0xb02   : > { %5624 = vpow2.f32 %v3197_v14 }
 0xb03   : > { %5626 = vpow2.f32 %v3205_v39 }
 0xb04   : > { %5628 = vpow2.f32 %v3203_v45 }
 0xb07   : > { %v8123_v20 = vpop.eup %5614 }
 0xb08   : > { %v8125_v21 = vpop.eup %5616 }
 0xb09   : > { %v8130_v52 = vpop.eup %5618 }
 0xb0a   : > { %v8132_v25 = vpop.eup %5620 }
 0xb0b   : > { %v8137_v61 = vpop.eup %5622 }
 0xb0c   : > { %v8139_v48 = vpop.eup %5624 }
 0xb0d   : > { %v8143_v51 = vpop.eup %5626 }
 0xb0e   : > { %v8145_v54 = vpop.eup %5628 }
 0xb1a   : > { %3225 = vadd.xlane.f32.xlu0 %v8117_v24 }
 0xb1d   : > { %v3164_v9 = vpop.xlane.xlu1 %3163 }
 0xb1e   : > { %v3180_v40 = vsub.f32 %v8079_v32, %v3164_v9  ;;  %3221 = vadd.xlane.f32.xlu0 %v8123_v20 }
 0xb1f   : > { %3223 = vadd.xlane.f32.xlu1 %v8125_v21 }
 0xb20   : > { %v3211_v59 = vmul.f32 1.442695, %v3180_v40 }
 0xb21   : > { %v3160_v41 = vpop.xlane.xlu1 %3159 }
 0xb22   : > { %5630 = vpow2.f32 %v3211_v59  ;;  %v3178_v10 = vsub.f32 %v8081_v62, %v3160_v41  ;;  %3227 = vadd.xlane.f32.xlu0 %v8130_v52 }
 0xb23   : > { %3233 = vadd.xlane.f32.xlu1 %v8132_v25  ;;  %5632 = vpow2.f32 %v3199_v7 }
 0xb24   : > { %v3207_v32 = vmul.f32 1.442695, %v3178_v10 }
 0xb26   : > { %3241 = vadd.xlane.f32.xlu0 %v8137_v61  ;;  %5634 = vpow2.f32 %v3207_v32 }
 0xb27   : > { %3229 = vadd.xlane.f32.xlu1 %v8139_v48 }
 0xb2a   : > { %3237 = vadd.xlane.f32.xlu0 %v8143_v51 }
 0xb2b   : > { %3235 = vadd.xlane.f32.xlu1 %v8145_v54 }
 0xb2c   : > { %v8149_v62 = vpop.eup %5630 }
 0xb2d   : > { %v8151_v2 = vpop.eup %5632 }
 0xb2e   : > { %3243 = vadd.xlane.f32.xlu0 %v8149_v62 }
 0xb2f   : > { %3231 = vadd.xlane.f32.xlu1 %v8151_v2 }
 0xb30   : > { %v8155_v31 = vpop.eup %5634 }
 0xb33   : > { %3239 = vadd.xlane.f32.xlu1 %v8155_v31 }
 0xb44   : > { %3485 = vrot.lane.b32.xlu1 %v7470_v63, %s6281_s2  ;;  %3483 = vrot.lane.b32.xlu0 %v7472_v1, %s6281_s2  ;;  %v3476_v63 = vpop.permute.xlu0 %3475 }
 0xb48   : > { %3457 = vrot.lane.b32.xlu1 %v7480_v49, %s6281_s2  ;;  %3455 = vrot.lane.b32.xlu0 %v7482_v55, %s6281_s2 }
 0xb4c   : > { %3461 = vrot.lane.b32.xlu1 %v7542_v50, %s6281_s2  ;;  %3459 = vrot.lane.b32.xlu0 %v7544_v26, %s6281_s2 }
 0xb50   : > { %3465 = vrot.lane.b32.xlu1 %v7550_v15, %s6281_s2  ;;  %3463 = vrot.lane.b32.xlu0 %v7552_v34, %s6281_s2 }
 0xb54   : > { %3469 = vrot.lane.b32.xlu1 %v7558_v28, %s6281_s2  ;;  %3467 = vrot.lane.b32.xlu0 %v7560_v19, %s6281_s2 }
 0xb58   : > { %3786 = vrot.lane.b32.xlu1 %v7578_v29, %s6281_s2  ;;  %3784 = vrot.lane.b32.xlu0 %v7580_v13, %s6281_s2 }
 0xb5c   : > { %3788 = vrot.lane.b32.xlu0 %v7588_v0, %s6281_s2 }
 0xb6f   : > { %v3218_v1 = vpop.xlane.xlu1 %3217 }
 0xb72   : > { %v3216_v49 = vpop.xlane.xlu0 %3215 }
 0xb73   : > { %5636 = vrcp.f32 %v3216_v49  ;;  %v3214_v55 = vpop.xlane.xlu1 %3213 }
 0xb74   : > { %5638 = vrcp.f32 %v3214_v55 }
 0xb75   : > { %5640 = vrcp.f32 %v3218_v1 }
 0xb76   : > { %v3480_v4 = vpop.permute.xlu0 %3479 }
 0xb77   : > { %v3220_v50 = vpop.xlane.xlu1 %3219 }
 0xb78   : > { %5642 = vrcp.f32 %v3220_v50 }
 0xb7d   : > { %v5637_v26 = vpop.eup %5636 }
 0xb7e   : > { %v5639_v15 = vpop.eup %5638  ;;  %v3262_v34 = vmul.f32 %v5637_v26, %v8096_v5  ;;  %v3515_v5 = vsel %vm2022_vm0, %v8091_v11, 0 }
 0xb7f   : > { %v3261_v28 = vmul.f32 %v5639_v15, %v8098_v3  ;;  %v5641_v19 = vpop.eup %5640  ;;  %v3521_v3 = vsel %vm2022_vm0, %v8119_v42, 0 }
 0xb80   : > { %v3263_v0 = vmul.f32 %v5641_v19, %v8093_v17  ;;  %v3518_v17 = vsel %vm2022_vm0, %v3476_v63, 0 }
 0xb81   : > { %v3277_v29 = vpack.c.bf16 %v3262_v34, %v3261_v28 }
 0xb82   : > { %v5643_v13 = vpop.eup %5642 }
 0xb83   : > { %v3264_v60 = vmul.f32 %v5643_v13, %v8102_v35  ;;  %5023 = vmatprep.mubr.bf16.mxu0 %v3277_v29  ;;  %v3524_v35 = vsel %vm2022_vm0, %v3480_v4, 0 }
 0xb85   : > { %v3278_v33 = vpack.c.bf16 %v3264_v60, %v3263_v0 }
 0xb87   : > { %5024 = vmatmul.mubr.bf16.vlgmr.msra.gmra.mrb[64].mxu0 %v3278_v33 }
 0xb88   : > { %5040 = vmatpush3.bf16.xpose.msra.mxu0 %v3512_v56 }
 0xb89   : > { %5160 = vmatprep.subr.msk.bf16.mxu0 %vm2022_vm0, %v8091_v11  ;;  %v3482_v11 = vpop.permute.xlu1 %3481 }
 0xb8a   : > { %v3527_v14 = vsel %vm2022_vm0, %v3482_v11, 0 }
 0xb90   : > { %5042 = vmatpush3.bf16.xpose.msra.mxu0 %v3515_v5 }
 0xb91   : > { %5161 = vmatprep.subr.msk.bf16.mxu0 %vm2022_vm0, %v3476_v63 }
 0xb98   : > { %5044 = vmatpush3.bf16.xpose.msra.mxu0 %v3518_v17 }
 0xb99   : > { %5162 = vmatprep.subr.msk.bf16.mxu0 %vm2022_vm0, %v8119_v42 }
 0xba0   : > { %5046 = vmatpush3.bf16.xpose.msra.mxu0 %v3521_v3 }
 0xba1   : > { %5163 = vmatprep.subr.msk.bf16.mxu0 %vm2022_vm0, %v3480_v4 }
 0xba7   : > { %v3226_v30 = vpop.xlane.xlu0 %3225 }
 0xba8   : > { %5048 = vmatpush3.bf16.xpose.msra.mxu0 %v3524_v35 }
 0xba9   : > { %5164 = vmatprep.subr.msk.bf16.mxu0 %vm2022_vm0, %v3482_v11 }
 0xbab   : > { %v3222_v47 = vpop.xlane.xlu0 %3221 }
 0xbac   : > { %5644 = vrcp.f32 %v3222_v47  ;;  %v3224_v46 = vpop.xlane.xlu1 %3223 }
 0xbad   : > { %5646 = vrcp.f32 %v3224_v46 }
 0xbae   : > { %5648 = vrcp.f32 %v3226_v30 }
 0xbaf   : > { %v3228_v39 = vpop.xlane.xlu0 %3227 }
 0xbb0   : > { %5050 = vmatpush3.bf16.xpose.msra.mxu0 %v3527_v14  ;;  %5650 = vrcp.f32 %v3228_v39  ;;  %v3234_v42 = vpop.xlane.xlu1 %3233 }
 0xbb3   : > { %v3242_v45 = vpop.xlane.xlu0 %3241 }
 0xbb4   : > { %v3230_v6 = vpop.xlane.xlu1 %3229 }
 0xbb6   : > { %v5645_v9 = vpop.eup %5644 }
 0xbb7   : > { %v5647_v40 = vpop.eup %5646  ;;  %v3238_v7 = vpop.xlane.xlu0 %3237  ;;  %v3265_v59 = vmul.f32 %v5645_v9, %v8123_v20 }
 0xbb8   : > { %v5649_v41 = vpop.eup %5648  ;;  %v3236_v10 = vpop.xlane.xlu1 %3235  ;;  %v3266_v32 = vmul.f32 %v5647_v40, %v8125_v21 }
 0xbb9   : > { %5652 = vrcp.f32 %v3236_v10  ;;  %v3267_v55 = vmul.f32 %v5649_v41, %v8117_v24 }
 0xbba   : > { %v5651_v63 = vpop.eup %5650  ;;  %v3279_v1 = vpack.c.bf16 %v3266_v32, %v3265_v59  ;;  %5654 = vrcp.f32 %v3230_v6 }
 0xbbb   : > { %v3244_v49 = vpop.xlane.xlu0 %3243  ;;  %v3268_v50 = vmul.f32 %v5651_v63, %v8130_v52  ;;  %5656 = vrcp.f32 %v3234_v42 }
 0xbbc   : > { %v3232_v26 = vpop.xlane.xlu1 %3231  ;;  %5027 = vmatprep.mubr.bf16.mxu0 %v3279_v1 }
 0xbbd   : > { %5658 = vrcp.f32 %v3232_v26  ;;  %v3280_v15 = vpack.c.bf16 %v3268_v50, %v3267_v55 }
 0xbbe   : > { %5660 = vrcp.f32 %v3238_v7 }
 0xbbf   : > { %5028 = vmatmul.mubr.bf16.gmra.mrb[68].mxu0 %v3280_v15  ;;  %v3484_v20 = vpop.permute.xlu0 %3483 }
 0xbc0   : > { %v3530_v34 = vsel %vm2022_vm0, %v3484_v20, 0  ;;  %v3240_v21 = vpop.xlane.xlu1 %3239  ;;  %5165 = vmatprep.subr.msk.bf16.mxu0 %vm2022_vm0, %v3484_v20 }
 0xbc1   : > { %5662 = vrcp.f32 %v3240_v21  ;;  %5052 = vmatpush3.bf16.xpose.msra.mxu0 %v3530_v34 }
 0xbc2   : > { %5664 = vrcp.f32 %v3244_v49 }
 0xbc3   : > { %v3456_v28 = vpop.permute.xlu0 %3455  ;;  %v5653_v24 = vpop.eup %5652  ;;  %5666 = vrcp.f32 %v3242_v45 }
 0xbc4   : > { %v3486_v52 = vpop.permute.xlu1 %3485  ;;  %v5655_v19 = vpop.eup %5654  ;;  %v3272_v60 = vmul.f32 %v5653_v24, %v8145_v54 }
 0xbc5   : > { %5166 = vmatprep.subr.msk.bf16.mxu0 %vm2022_vm0, %v3486_v52  ;;  %v5657_v29 = vpop.eup %5656  ;;  %v3533_v33 = vsel %vm2022_vm0, %v3486_v52, 0  ;;  %v3269_v5 = vmul.f32 %v5655_v19, %v8139_v48 }
 0xbc6   : > { %v3271_v4 = vmul.f32 %v5657_v29, %v8132_v25 }
 0xbc7   : > { %v5659_v13 = vpop.eup %5658  ;;  %v3460_v0 = vpop.permute.xlu0 %3459 }
 0xbc8   : > { %v3458_v56 = vpop.permute.xlu1 %3457  ;;  %v3270_v17 = vmul.f32 %v5659_v13, %v8151_v2  ;;  %v5661_v3 = vpop.eup %5660  ;;  %v3282_v47 = vpack.c.bf16 %v3272_v60, %v3271_v4 }
 0xbc9   : > { %5054 = vmatpush3.bf16.xpose.msra.mxu0 %v3533_v33  ;;  %v3273_v54 = vmul.f32 %v5661_v3, %v8143_v51 }
 0xbca   : > { %v3281_v35 = vpack.c.bf16 %v3270_v17, %v3269_v5 }
 0xbcb   : > { %v5663_v30 = vpop.eup %5662  ;;  %v3464_v11 = vpop.permute.xlu0 %3463 }
 0xbcc   : > { %v5665_v46 = vpop.eup %5664  ;;  %v3462_v14 = vpop.permute.xlu1 %3461  ;;  %5031 = vmatprep.mubr.bf16.mxu0 %v3281_v35  ;;  %v3274_v39 = vmul.f32 %v5663_v30, %v8155_v31 }
 0xbcd   : > { %5032 = vmatmul.mubr.bf16.gmra.mrb[72].mxu0 %v3282_v47  ;;  %v5667_v42 = vpop.eup %5666  ;;  %v3276_v2 = vmul.f32 %v5665_v46, %v8149_v62 }
 0xbce   : > { %v3283_v48 = vpack.c.bf16 %v3274_v39, %v3273_v54  ;;  %v3275_v25 = vmul.f32 %v5667_v42, %v8137_v61 }
 0xbcf   : > { %v3468_v45 = vpop.permute.xlu0 %3467 }
 0xbd0   : > { %v3466_v6 = vpop.permute.xlu1 %3465  ;;  %5035 = vmatprep.mubr.bf16.mxu0 %v3283_v48  ;;  %v3284_v40 = vpack.c.bf16 %v3276_v2, %v3275_v25 }
 0xbd3   : > { %v3785_v9 = vpop.permute.xlu0 %3784 }
 0xbd4   : > { %v3470_v7 = vpop.permute.xlu1 %3469  ;;  %5071 = vmatprep.subr.bf16.mxu1 %v3785_v9 }
 0xbd5   : > { %5036 = vmatmul.mubr.bf16.gmra.mrb[76].mxu0 %v3284_v40  ;;  %5072 = vmatpush3.bf16.msra.mxu1 %v3785_v9 }
 0xbd6   : > { %5055 = vmatprep.mubr.msk.bf16.mxu0 %vm2022_vm0, %v3456_v28 }
 0xbd7   : > { %v3789_v31 = vpop.permute.xlu0 %3788 }
 0xbd8   : > { %v3787_v51 = vpop.permute.xlu1 %3786 }
 0xbd9   : > { %5073 = vmatprep.subr.bf16.mxu1 %v3787_v51 }
 0xbda   : > { %5074 = vmatpush3.bf16.msra.mxu1 %v3787_v51 }
 0xbdb   : > { %5075 = vmatprep.subr.bf16.mxu1 %v3789_v31 }
 0xbdd   : > { %5056 = vmatmul.mubr.msk.bf16.vlgmr.msra.gmra.mrb[80].mxu0 %vm2022_vm0, %v3458_v56 }
 0xbde   : > { %5059 = vmatprep.mubr.msk.bf16.mxu0 %vm2022_vm0, %v3460_v0  ;;  %5076 = vmatpush3.bf16.msra.mxu1 %v3789_v31 }
 0xbe5   : > { %5060 = vmatmul.mubr.msk.bf16.gmra.mrb[84].mxu0 %vm2022_vm0, %v3462_v14 }
 0xbe6   : > { %5063 = vmatprep.mubr.msk.bf16.mxu0 %vm2022_vm0, %v3464_v11 }
 0xbed   : > { %5064 = vmatmul.mubr.msk.bf16.gmra.mrb[88].mxu0 %vm2022_vm0, %v3466_v6 }
 0xbee   : > { %5067 = vmatprep.mubr.msk.bf16.mxu0 %vm2022_vm0, %v3468_v45 }
 0xbf5   : > { %5068 = vmatmul.mubr.msk.bf16.gmra.mrb[92].mxu0 %vm2022_vm0, %v3470_v7 }
 0xc5a   : > { %v8228_v61 = vpop.f32.mrb[64].mxu0 }
 0xc5b   : > { %v8230_v62 = vpop.f32.mrb[65].mxu0 }
 0xc5c   : > { %v8232_v59 = vpop.f32.mrb[66].mxu0 }
 0xc5d   : > { %v3407_v41 = vpack.c.bf16 %v8232_v59, %v8228_v61  ;;  %v8236_v10 = vpop.f32.mrb[67].mxu0  ;;  %v8705_v59 = vpack.c.bf16 %v8034_v57, %v8030_v38  ;;  %v8707_v38 = vpack.c.bf16 %v8026_v22, %v8020_v18 }
 0xc5e   : > { %v3406_v32 = vpack.c.bf16 %v8236_v10, %v8230_v62  ;;  %v8706_v10 = vpack.c.bf16 %v8014_v16, %v8008_v27 }
 0xc92   : > { %v8240_v63 = vpop.f32.mrb[68].mxu0 }
 0xc93   : > { %v8242_v1 = vpop.f32.mrb[69].mxu0 }
 0xc94   : > { %v8244_v49 = vpop.f32.mrb[70].mxu0 }
 0xc95   : > { %v3409_v55 = vpack.c.bf16 %v8244_v49, %v8240_v63  ;;  %v8248_v50 = vpop.f32.mrb[71].mxu0  ;;  %v8710_v63 = vld [vmem:[#allocation44_spill] sm:$0xff] }
 0xc96   : > { %v8708_v57 = vpack.c.bf16 %v8248_v50, %v8242_v1 }
 0xca0   : > { %v8252_v15 = vpop.f32.mrb[72].mxu0 }
 0xca1   : > { %v8254_v20 = vpop.f32.mrb[73].mxu0 }
 0xca2   : > { %v8256_v34 = vpop.f32.mrb[74].mxu0 }
 0xca3   : > { %v8260_v28 = vpop.f32.mrb[75].mxu0 }
 0xca8   : > { %v8264_v52 = vpop.f32.mrb[76].mxu0 }
 0xca9   : > { %v8266_v19 = vpop.f32.mrb[77].mxu0 }
 0xcaa   : > { %v8268_v29 = vpop.f32.mrb[78].mxu0 }
 0xcab   : > { %v8272_v0 = vpop.f32.mrb[79].mxu0 }
 0xcb0   : > { %v5057_v33 = vpop.f32.mrb[80].mxu0 }
 0xcb1   : > { %3636 = vmax.xlane.f32.xlu0 %v5057_v33  ;;  %v3569_v56 = vpop.f32.mrb[81].mxu0 }
 0xcb2   : > { %v5058_v5 = vpop.f32.mrb[82].mxu0 }
 0xcb3   : > { %v3572_v17 = vpop.f32.mrb[83].mxu0 }
 0xcb4   : > { %3634 = vmax.xlane.f32.xlu1 %v3572_v17 }
 0xcb5   : > { %3632 = vmax.xlane.f32.xlu0 %v3569_v56 }
 0xcb8   : > { %v5061_v3 = vpop.f32.mrb[84].mxu0 }
 0xcb9   : > { %3638 = vmax.xlane.f32.xlu0 %v5058_v5  ;;  %v3585_v4 = vpop.f32.mrb[85].mxu0 }
 0xcba   : > { %v5062_v35 = vpop.f32.mrb[86].mxu0 }
 0xcbb   : > { %3646 = vmax.xlane.f32.xlu1 %v5062_v35  ;;  %v3588_v30 = vpop.f32.mrb[87].mxu0 }
 0xcbd   : > { %3644 = vmax.xlane.f32.xlu0 %v5061_v3 }
 0xcbf   : > { %3642 = vmax.xlane.f32.xlu1 %v3588_v30 }
 0xcc0   : > { %v5065_v11 = vpop.f32.mrb[88].mxu0 }
 0xcc1   : > { %3640 = vmax.xlane.f32.xlu0 %v3585_v4  ;;  %v8276_v47 = vpop.f32.mrb[89].mxu0 }
 0xcc2   : > { %v8278_v46 = vpop.f32.mrb[90].mxu0 }
 0xcc3   : > { %3654 = vmax.xlane.f32.xlu1 %v8278_v46  ;;  %v8281_v14 = vpop.f32.mrb[91].mxu0 }
 0xcc5   : > { %3652 = vmax.xlane.f32.xlu0 %v5065_v11 }
 0xcc7   : > { %3650 = vmax.xlane.f32.xlu1 %v8281_v14 }
 0xcc8   : > { %v8284_v54 = vpop.f32.mrb[92].mxu0 }
 0xcc9   : > { %3648 = vmax.xlane.f32.xlu0 %v8276_v47  ;;  %v8287_v39 = vpop.f32.mrb[93].mxu0 }
 0xcca   : > { %v8289_v42 = vpop.f32.mrb[94].mxu0 }
 0xccb   : > { %v8291_v48 = vpop.f32.mrb[95].mxu0 }
 0xccd   : > { %3660 = vmax.xlane.f32.xlu0 %v8284_v54 }
 0xcd1   : > { %3656 = vmax.xlane.f32.xlu0 %v8287_v39 }
 0xcd8   : > { %3792 = vrot.lane.b32.xlu1 %v7596_v43, %s6281_s2 }
 0xce7   : > { %3790 = vrot.lane.b32.xlu0 %v7585_v37, %s6281_s2 }
 0xcfc   : > { %3662 = vmax.xlane.f32.xlu1 %v8289_v42 }
 0xd00   : > { %3658 = vmax.xlane.f32.xlu1 %v8291_v48 }
 0xd11   : > { %3794 = vrot.lane.b32.xlu1 %v7593_v36, %s6281_s2 }
 0xd3e   : > { %v3637_v45 = vpop.xlane.xlu0 %3636 }
 0xd3f   : > { %v3666_v2 = vsub.f32 %v5057_v33, %v3637_v45 }
 0xd41   : > { %v3684_v6 = vmul.f32 1.442695, %v3666_v2  ;;  %v3635_v9 = vpop.xlane.xlu1 %3634 }
 0xd42   : > { %v3633_v25 = vpop.xlane.xlu0 %3632  ;;  %v3665_v51 = vsub.f32 %v3572_v17, %v3635_v9 }
 0xd43   : > { %5668 = vpow2.f32 %v3684_v6  ;;  %v3664_v40 = vsub.f32 %v3569_v56, %v3633_v25 }
 0xd44   : > { %v3682_v13 = vmul.f32 1.442695, %v3665_v51 }
 0xd45   : > { %v3680_v7 = vmul.f32 1.442695, %v3664_v40 }
 0xd46   : > { %v3639_v43 = vpop.xlane.xlu0 %3638 }
 0xd47   : > { %5670 = vpow2.f32 %v3680_v7  ;;  %v3667_v31 = vsub.f32 %v5058_v5, %v3639_v43 }
 0xd48   : > { %v3647_v37 = vpop.xlane.xlu1 %3646 }
 0xd49   : > { %v3686_v60 = vmul.f32 1.442695, %v3667_v31  ;;  %v3671_v2 = vsub.f32 %v5062_v35, %v3647_v37 }
 0xd4a   : > { %v3645_v24 = vpop.xlane.xlu0 %3644 }
 0xd4b   : > { %5672 = vpow2.f32 %v3686_v60  ;;  %v3670_v21 = vsub.f32 %v5061_v3, %v3645_v24  ;;  %v3694_v60 = vmul.f32 1.442695, %v3671_v2 }
 0xd4c   : > { %v3643_v26 = vpop.xlane.xlu1 %3642  ;;  %5674 = vpow2.f32 %v3682_v13 }
 0xd4d   : > { %v8303_v36 = vpop.eup %5668  ;;  %v3692_v33 = vmul.f32 1.442695, %v3670_v21  ;;  %v3669_v45 = vsub.f32 %v3588_v30, %v3643_v26 }
 0xd4e   : > { %3716 = vadd.xlane.f32.xlu1 %v8303_v36  ;;  %v3641_v56 = vpop.xlane.xlu0 %3640 }
 0xd4f   : > { %5676 = vpow2.f32 %v3692_v33  ;;  %v3690_v17 = vmul.f32 1.442695, %v3669_v45  ;;  %v3668_v6 = vsub.f32 %v3585_v4, %v3641_v56 }
 0xd50   : > { %v3655_v9 = vpop.xlane.xlu1 %3654 }
 0xd51   : > { %v8306_v5 = vpop.eup %5670  ;;  %v3688_v25 = vmul.f32 1.442695, %v3668_v6  ;;  %5678 = vpow2.f32 %v3690_v17  ;;  %v3675_v13 = vsub.f32 %v8278_v46, %v3655_v9 }
 0xd52   : > { %3712 = vadd.xlane.f32.xlu1 %v8306_v5  ;;  %v3653_v24 = vpop.xlane.xlu0 %3652 }
 0xd53   : > { %5680 = vpow2.f32 %v3688_v25  ;;  %v3674_v21 = vsub.f32 %v5065_v11, %v3653_v24  ;;  %v3702_v43 = vmul.f32 1.442695, %v3675_v13  ;;  %v8703_v13 = vpack.c.bf16 %v8010_v23, %v8006_v53 }
 0xd54   : > { %5682 = vpow2.f32 %v3694_v60  ;;  %v3651_v4 = vpop.xlane.xlu1 %3650  ;;  %v8704_v53 = vpack.c.bf16 %v8022_v12, %v8018_v58 }
 0xd55   : > { %v8309_v26 = vpop.eup %5672  ;;  %v3700_v3 = vmul.f32 1.442695, %v3674_v21  ;;  %v3673_v11 = vsub.f32 %v8281_v14, %v3651_v4 }
 0xd56   : > { %3718 = vadd.xlane.f32.xlu1 %v8309_v26  ;;  %v3649_v35 = vpop.xlane.xlu0 %3648  ;;  %v8314_v40 = vpop.eup %5674 }
 0xd57   : > { %v3672_v30 = vsub.f32 %v8276_v47, %v3649_v35  ;;  %5684 = vpow2.f32 %v3700_v3  ;;  %v3698_v45 = vmul.f32 1.442695, %v3673_v11 }
 0xd58   : > { %v3793_v25 = vpop.permute.xlu1 %3792 }
 0xd59   : > { %v8316_v7 = vpop.eup %5676  ;;  %v3696_v51 = vmul.f32 1.442695, %v3672_v30 }
 0xd5a   : > { %3714 = vadd.xlane.f32.xlu1 %v8314_v40  ;;  %3724 = vadd.xlane.f32.xlu0 %v8316_v7  ;;  %v3661_v46 = vpop.xlane.xlu0 %3660 }
 0xd5b   : > { %5686 = vpow2.f32 %v3696_v51  ;;  %v3678_v31 = vsub.f32 %v8284_v54, %v3661_v46  ;;  %v8322_v37 = vpop.eup %5678 }
 0xd5c   : > { %5688 = vpow2.f32 %v3702_v43 }
 0xd5d   : > { %v8324_v47 = vpop.eup %5680  ;;  %v3708_v33 = vmul.f32 1.442695, %v3678_v31 }
 0xd5e   : > { %3722 = vadd.xlane.f32.xlu1 %v8322_v37  ;;  %3720 = vadd.xlane.f32.xlu0 %v8324_v47  ;;  %v3657_v14 = vpop.xlane.xlu0 %3656  ;;  %v8329_v2 = vpop.eup %5682 }
 0xd5f   : > { %5690 = vpow2.f32 %v3708_v33  ;;  %v3676_v56 = vsub.f32 %v8287_v39, %v3657_v14 }
 0xd60   : > { %5692 = vpow2.f32 %v3698_v45 }
 0xd61   : > { %v3704_v17 = vmul.f32 1.442695, %v3676_v56  ;;  %v8332_v6 = vpop.eup %5684 }
 0xd62   : > { %3726 = vadd.xlane.f32.xlu0 %v8329_v2  ;;  %v3791_v54 = vpop.permute.xlu0 %3790 }
 0xd63   : > { %5694 = vpow2.f32 %v3704_v17  ;;  %5077 = vmatprep.subr.bf16.mxu1 %v3791_v54 }
 0xd64   : > { %5078 = vmatpush3.bf16.msra.mxu1 %v3791_v54 }
 0xd65   : > { %v8334_v9 = vpop.eup %5686  ;;  %5079 = vmatprep.subr.bf16.mxu1 %v3793_v25 }
 0xd66   : > { %3732 = vadd.xlane.f32.xlu0 %v8332_v6  ;;  %3728 = vadd.xlane.f32.xlu1 %v8334_v9  ;;  %v8338_v39 = vpop.eup %5688 }
 0xd68   : > { %5080 = vmatpush3.bf16.msra.mxu1 %v3793_v25 }
 0xd69   : > { %v8340_v24 = vpop.eup %5690 }
 0xd6a   : > { %3734 = vadd.xlane.f32.xlu0 %v8338_v39  ;;  %3740 = vadd.xlane.f32.xlu1 %v8340_v24  ;;  %v8344_v60 = vpop.eup %5692 }
 0xd6d   : > { %v8346_v21 = vpop.eup %5694 }
 0xd6e   : > { %3730 = vadd.xlane.f32.xlu0 %v8344_v60  ;;  %3736 = vadd.xlane.f32.xlu1 %v8346_v21 }
 0xd7f   : > { %3798 = vrot.lane.b32.xlu1 %v7601_v8, %s6281_s2 }
 0xd83   : > { %2925 = vrot.lane.b32.xlu1 %v8703_v13, %s6281_s2 }
 0xd84   : > { %3796 = vrot.lane.b32.xlu0 %v7604_v44, %s6281_s2 }
 0xd87   : > { %3422 = vrot.lane.b32.xlu1 %v3406_v32, %s6280_s16  ;;  %v8709_v32 = vld [vmem:[#allocation45_spill] sm:$0xff] }
 0xd88   : > { %v8711_v49 = vpack.c.bf16 %v8709_v32, %v8710_v63 }
 0xd89   : > { %v3663_v3 = vpop.xlane.xlu1 %3662 }
 0xd8a   : > { %v3679_v62 = vsub.f32 %v8289_v42, %v3663_v3 }
 0xd8b   : > { %3424 = vrot.lane.b32.xlu1 %v3407_v41, %s6280_s16 }
 0xd8c   : > { %v3710_v58 = vmul.f32 1.442695, %v3679_v62 }
 0xd8d   : > { %v3659_v8 = vpop.xlane.xlu1 %3658 }
 0xd8e   : > { %v3677_v23 = vsub.f32 %v8291_v48, %v3659_v8 }
 0xd8f   : > { %2929 = vrot.lane.b32.xlu1 %v8704_v53, %s6281_s2 }
 0xd90   : > { %v3706_v61 = vmul.f32 1.442695, %v3677_v23 }
 0xd91   : > { %v3795_v44 = vpop.permute.xlu1 %3794 }
 0xd92   : > { %5081 = vmatprep.subr.bf16.mxu1 %v3795_v44  ;;  %5696 = vpow2.f32 %v3706_v61 }
 0xd93   : > { %3428 = vrot.lane.b32.xlu1 %v3409_v55, %s6280_s16  ;;  %5082 = vmatpush3.bf16.msra.mxu1 %v3795_v44  ;;  %5698 = vpow2.f32 %v3710_v58 }
 0xd97   : > { %2933 = vrot.lane.b32.xlu1 %v8705_v59, %s6281_s2 }
 0xd9c   : > { %v8380_v12 = vpop.eup %5696 }
 0xd9d   : > { %v8383_v41 = vpop.eup %5698 }
 0xda3   : > { %3738 = vadd.xlane.f32.xlu0 %v8380_v12 }
 0xda7   : > { %3742 = vadd.xlane.f32.xlu0 %v8383_v41 }
 0xdbd   : > { %2923 = vrot.lane.b32.xlu0 %v8706_v10, %s6281_s2 }
 0xdc1   : > { %2927 = vrot.lane.b32.xlu0 %v8707_v38, %s6281_s2 }
 0xdc5   : > { %3426 = vrot.lane.b32.xlu0 %v8708_v57, %s6280_s16 }
 0xdc9   : > { %2931 = vrot.lane.b32.xlu0 %v8711_v49, %s6281_s2 }
 0xddb   : > { %v3717_v55 = vpop.xlane.xlu1 %3716 }
 0xddf   : > { %v3713_v42 = vpop.xlane.xlu1 %3712 }
 0xde0   : > { %5700 = vrcp.f32 %v3713_v42 }
 0xde3   : > { %v3719_v48 = vpop.xlane.xlu1 %3718 }
 0xde7   : > { %v3715_v27 = vpop.xlane.xlu1 %3714  ;;  %v3725_v16 = vpop.xlane.xlu0 %3724 }
 0xde8   : > { %5702 = vrcp.f32 %v3715_v27 }
 0xde9   : > { %5704 = vrcp.f32 %v3719_v48 }
 0xdea   : > { %v5701_v4 = vpop.eup %5700 }
 0xdeb   : > { %v3721_v35 = vpop.xlane.xlu0 %3720  ;;  %v3723_v18 = vpop.xlane.xlu1 %3722  ;;  %v3760_v50 = vmul.f32 %v5701_v4, %v8306_v5 }
 0xdec   : > { %5706 = vrcp.f32 %v3723_v18 }
 0xded   : > { %5708 = vrcp.f32 %v3721_v35 }
 0xdee   : > { %5710 = vrcp.f32 %v3717_v55 }
 0xdef   : > { %v3727_v22 = vpop.xlane.xlu0 %3726 }
 0xdf0   : > { %5712 = vrcp.f32 %v3727_v22 }
 0xdf2   : > { %v5703_v30 = vpop.eup %5702 }
 0xdf3   : > { %v3729_v51 = vpop.xlane.xlu1 %3728  ;;  %v3733_v1 = vpop.xlane.xlu0 %3732  ;;  %v3761_v43 = vmul.f32 %v5703_v30, %v8314_v40 }
 0xdf4   : > { %v5705_v14 = vpop.eup %5704 }
 0xdf5   : > { %v3776_v11 = vpack.c.bf16 %v3761_v43, %v3760_v50  ;;  %v3763_v25 = vmul.f32 %v5705_v14, %v8309_v26  ;;  %v5379_v14 = vld [vmem:[#allocation24 + $0x38] sm:$0xff]  }
 0xdf6   : > { %v5707_v56 = vpop.eup %5706 }
 0xdf7   : > { %5087 = vmatprep.mubr.bf16.mxu1 %v3776_v11  ;;  %v3741_v46 = vpop.xlane.xlu1 %3740  ;;  %v3735_v31 = vpop.xlane.xlu0 %3734  ;;  %v3765_v8 = vmul.f32 %v5707_v56, %v8322_v37 }
 0xdf8   : > { %v5709_v5 = vpop.eup %5708 }
 0xdf9   : > { %v5711_v40 = vpop.eup %5710  ;;  %v3764_v3 = vmul.f32 %v5709_v5, %v8324_v47 }
 0xdfa   : > { %v3762_v53 = vmul.f32 %v5711_v40, %v8303_v36  ;;  %v5713_v44 = vpop.eup %5712 }
 0xdfb   : > { %v3737_v33 = vpop.xlane.xlu1 %3736  ;;  %v3731_v45 = vpop.xlane.xlu0 %3730  ;;  %v3778_v61 = vpack.c.bf16 %v3765_v8, %v3764_v3  ;;  %v3767_v47 = vmul.f32 %v5713_v44, %v8329_v2  ;;  %v8712_v3 = vpack.c.bf16 %v8256_v34, %v8252_v15 }
 0xdfc   : > { %5714 = vrcp.f32 %v3731_v45  ;;  %v3777_v23 = vpack.c.bf16 %v3763_v25, %v3762_v53  ;;  %v5378_v45 = vld [vmem:[#allocation24 + $0x30] sm:$0xff]   ;;  %v8713_v53 = vpack.c.bf16 %v8260_v28, %v8254_v20 }
 0xdfd   : > { %5716 = vrcp.f32 %v3725_v16 }
 0xdfe   : > { %5718 = vrcp.f32 %v3729_v51 }
 0xdff   : > { %v3799_v17 = vpop.permute.xlu1 %3798  ;;  %v3797_v54 = vpop.permute.xlu0 %3796  ;;  %5720 = vrcp.f32 %v3735_v31  ;;  %v5374_v31 = vld [vmem:[#allocation24 + $0x10] sm:$0xff]  }
 0xe00   : > { %5083 = vmatprep.subr.bf16.mxu1 %v3797_v54  ;;  %5722 = vrcp.f32 %v3733_v1 }
 0xe01   : > { %5084 = vmatpush3.bf16.msra.mxu1 %v3797_v54  ;;  %5724 = vrcp.f32 %v3737_v33  ;;  %v5375_v33 = vld [vmem:[#allocation24 + $0x18] sm:$0xff]  }
 0xe02   : > { %5085 = vmatprep.subr.bf16.mxu1 %v3799_v17 }
 0xe03   : > { %v2926_v13 = vpop.permute.xlu1 %2925 }
 0xe04   : > { %2949 = vst.msk [vmem:[#allocation2 + $0x8] sm:$0xff] %vm2947_vm1, %v2926_v13 }
 0xe05   : > { %5086 = vmatpush3.bf16.msra.mxu1 %v3799_v17 }
 0xe06   : > { %v5715_v59 = vpop.eup %5714 }
 0xe07   : > { %v3423_v62 = vpop.permute.xlu1 %3422  ;;  %v5717_v26 = vpop.eup %5716  ;;  %v3769_v36 = vmul.f32 %v5715_v59, %v8344_v60 }
 0xe08   : > { %5088 = vmatmul.mubr.bf16.vlgmr.msra.gmra.mrb[64].mxu1 %v3777_v23  ;;  %v5719_v58 = vpop.eup %5718  ;;  %v3766_v10 = vmul.f32 %v5717_v26, %v8316_v7  ;;  %v8714_v26 = vld [vmem:[#allocation48_spill] sm:$0xff] }
 0xe09   : > { %5091 = vmatprep.mubr.bf16.mxu1 %v3778_v61  ;;  %v3768_v38 = vmul.f32 %v5719_v58, %v8334_v9  ;;  %v5721_v32 = vpop.eup %5720  ;;  %v8715_v58 = vld [vmem:[#allocation46_spill] sm:$0xff] }
 0xe0a   : > { %v3779_v57 = vpack.c.bf16 %v3767_v47, %v3766_v10  ;;  %v5723_v55 = vpop.eup %5722  ;;  %v3771_v2 = vmul.f32 %v5721_v32, %v8338_v39  ;;  %v8716_v15 = vpack.c.bf16 %v8714_v26, %v8715_v58  ;;  %v8717_v47 = vld [vmem:[#allocation49_spill] sm:$0xff]  ;;  %v8721_v32 = vpack.c.bf16 %v8272_v0, %v8266_v19 }
 0xe0b   : > { %v3425_v37 = vpop.permute.xlu1 %3424  ;;  %v3780_v49 = vpack.c.bf16 %v3769_v36, %v3768_v38  ;;  %v3770_v60 = vmul.f32 %v5723_v55, %v8332_v6  ;;  %v5725_v35 = vpop.eup %5724  ;;  %v4137_v58 = vld [vmem:[%s6880_s29 + $0x38] sm:$0xff] }
 0xe0c   : > { %3448 = vst.msk [vmem:[#allocation2 + $0x8] sm:$0xff] %vm3446_vm2, %v3425_v37  ;;  %v3772_v6 = vmul.f32 %v5725_v35, %v8346_v21  ;;  %v5372_v21 = vld [vmem:[#allocation24] sm:$0xff]  }
 0xe0d   : > { %v3781_v48 = vpack.c.bf16 %v3771_v2, %v3770_v60  ;;  %5103 = vmatprep.subr.bf16.mxu1 %v5372_v21  ;;  %v8718_v37 = vld [vmem:[#allocation47_spill] sm:$0xff] }
 0xe0e   : > { %5104 = vmatpush3.bf16.msra.mxu1 %v5372_v21  ;;  %v8719_v20 = vpack.c.bf16 %v8717_v47, %v8718_v37  ;;  %v8474_v21 = vld [vmem:[#allocation26] ss:$0 sm:$0xff] }
 0xe0f   : > { %v2930_v63 = vpop.permute.xlu1 %2929  ;;  %v4135_v37 = vld [vmem:[%s6880_s29 + $0x28] sm:$0xff] }
 0xe10   : > { %2951 = vst.msk [vmem:[#allocation2 + $0x18] sm:$0xff] %vm2947_vm1, %v2930_v63  ;;  %5092 = vmatmul.mubr.bf16.gmra.mrb[68].mxu1 %v3779_v57  ;;  %v8720_v57 = vpack.c.bf16 %v8268_v29, %v8264_v52 }
 0xe11   : > { %5095 = vmatprep.mubr.bf16.mxu1 %v3780_v49 }
 0xe13   : > { %v3429_v42 = vpop.permute.xlu1 %3428 }
 0xe14   : > { %3450 = vst.msk [vmem:[#allocation2 + $0x18] sm:$0xff] %vm3446_vm2, %v3429_v42 }
 0xe17   : > { %v2934_v7 = vpop.permute.xlu1 %2933 }
 0xe18   : > { %2953 = vst.msk [vmem:[#allocation2 + $0x28] sm:$0xff] %vm2947_vm1, %v2934_v7  ;;  %5096 = vmatmul.mubr.bf16.gmra.mrb[72].mxu1 %v3781_v48 }
 0xe30   : > { %v3739_v9 = vpop.xlane.xlu0 %3738 }
 0xe31   : > { %5726 = vrcp.f32 %v3739_v9 }
 0xe32   : > { %5728 = vrcp.f32 %v3741_v46 }
 0xe34   : > { %v3743_v27 = vpop.xlane.xlu0 %3742 }
 0xe35   : > { %5730 = vrcp.f32 %v3743_v27 }
 0xe38   : > { %v2924_v16 = vpop.permute.xlu0 %2923 }
 0xe39   : > { %2948 = vst.msk [vmem:[#allocation2] sm:$0xff] %vm2947_vm1, %v2924_v16 }
 0xe3a   : > { %3447 = vst.msk [vmem:[#allocation2] sm:$0xff] %vm3446_vm2, %v3423_v62 }
 0xe3b   : > { %v5727_v39 = vpop.eup %5726 }
 0xe3c   : > { %v2928_v18 = vpop.permute.xlu0 %2927  ;;  %v3773_v22 = vmul.f32 %v5727_v39, %v8380_v12  ;;  %v5729_v4 = vpop.eup %5728  ;;  %v5373_v12 = vld [vmem:[#allocation24 + $0x8] sm:$0xff]  }
 0xe3d   : > { %2950 = vst.msk [vmem:[#allocation2 + $0x10] sm:$0xff] %vm2947_vm1, %v2928_v18  ;;  %v3774_v50 = vmul.f32 %v5729_v4, %v8340_v24  ;;  %5105 = vmatprep.subr.bf16.mxu1 %v5373_v12  ;;  %v5376_v24 = vld [vmem:[#allocation24 + $0x20] sm:$0xff]  }
 0xe3e   : > { %v3782_v30 = vpack.c.bf16 %v3773_v22, %v3772_v6  ;;  %5106 = vmatpush3.bf16.msra.mxu1 %v5373_v12 }
 0xe3f   : > { %v5731_v51 = vpop.eup %5730  ;;  %5107 = vmatprep.subr.bf16.mxu1 %v5374_v31 }
 0xe40   : > { %5099 = vmatprep.mubr.bf16.mxu1 %v3782_v30  ;;  %v3427_v1 = vpop.permute.xlu0 %3426  ;;  %v3775_v43 = vmul.f32 %v5731_v51, %v8383_v41  ;;  %v5377_v41 = vld [vmem:[#allocation24 + $0x28] sm:$0xff]  }
 0xe41   : > { %3449 = vst.msk [vmem:[#allocation2 + $0x10] sm:$0xff] %vm3446_vm2, %v3427_v1 }
 0xe42   : > { %v3783_v11 = vpack.c.bf16 %v3775_v43, %v3774_v50  ;;  %5108 = vmatpush3.bf16.msra.mxu1 %v5374_v31  ;;  %v4132_v31 = vld [vmem:[%s6880_s29 + $0x10] sm:$0xff] }
 0xe43   : > { %5109 = vmatprep.subr.bf16.mxu1 %v5375_v33 }
 0xe44   : > { %5100 = vmatmul.mubr.bf16.gmra.mrb[76].mxu1 %v3783_v11  ;;  %v2932_v46 = vpop.permute.xlu0 %2931 }
 0xe45   : > { %2952 = vst.msk [vmem:[#allocation2 + $0x20] sm:$0xff] %vm2947_vm1, %v2932_v46 }
 0xe46   : > { %5110 = vmatpush3.bf16.msra.mxu1 %v5375_v33 }
 0xe47   : > { %5111 = vmatprep.subr.bf16.mxu1 %v5376_v24 }
 0xe4a   : > { %5112 = vmatpush3.bf16.msra.mxu1 %v5376_v24 }
 0xe4b   : > { %5113 = vmatprep.subr.bf16.mxu1 %v5377_v41 }
 0xe4e   : > { %5114 = vmatpush3.bf16.msra.mxu1 %v5377_v41  ;;  %v4130_v41 = vld [vmem:[%s6880_s29] sm:$0xff] }
 0xe4f   : > { %5115 = vmatprep.subr.bf16.mxu1 %v5378_v45 }
 0xe52   : > { %5116 = vmatpush3.bf16.msra.mxu1 %v5378_v45 }
 0xe53   : > { %5117 = vmatprep.subr.bf16.mxu1 %v5379_v14 }
 0xe56   : > { %5118 = vmatpush3.bf16.msra.mxu1 %v5379_v14 }
 0xedb   : > { %v5089_v56 = vpop.f32.mrb[64].mxu1 }
 0xedc   : > { %v3842_v17 = vpop.f32.mrb[65].mxu1 }
 0xedd   : > { %v5090_v54 = vpop.f32.mrb[66].mxu1 }
 0xede   : > { %v3906_v5 = vpack.c.bf16 %v5090_v54, %v5089_v56  ;;  %v3845_v40 = vpop.f32.mrb[67].mxu1  ;;  %v4133_v56 = vld [vmem:[%s6880_s29 + $0x18] sm:$0xff] }
 0xedf   : > { %v3905_v25 = vpack.c.bf16 %v3845_v40, %v3842_v17  ;;  %v4131_v40 = vld [vmem:[%s6880_s29 + $0x8] sm:$0xff] }
 0xee0   : > { %3923 = vrot.lane.b32.xlu1 %v3906_v5, %s6279_s26 }
 0xee1   : > { %3921 = vrot.lane.b32.xlu0 %v3905_v25, %s6279_s26 }
 0xee3   : > { %v5093_v13 = vpop.f32.mrb[68].mxu1 }
 0xee4   : > { %3432 = vrot.lane.b32.xlu1 %v8712_v3, %s6280_s16  ;;  %v3858_v8 = vpop.f32.mrb[69].mxu1 }
 0xee5   : > { %3430 = vrot.lane.b32.xlu0 %v8713_v53, %s6280_s16  ;;  %v5094_v23 = vpop.f32.mrb[70].mxu1 }
 0xee6   : > { %v3908_v44 = vpack.c.bf16 %v5094_v23, %v5093_v13  ;;  %v3861_v62 = vpop.f32.mrb[71].mxu1  ;;  %v4136_v23 = vld [vmem:[%s6880_s29 + $0x30] sm:$0xff] }
 0xee7   : > { %v3907_v61 = vpack.c.bf16 %v3861_v62, %v3858_v8 }
 0xee8   : > { %3927 = vrot.lane.b32.xlu1 %v3908_v44, %s6279_s26 }
 0xee9   : > { %3925 = vrot.lane.b32.xlu0 %v3907_v61, %s6279_s26  ;;  %v4134_v61 = vld [vmem:[%s6880_s29 + $0x20] sm:$0xff] }
 0xeeb   : > { %v5097_v59 = vpop.f32.mrb[72].mxu1 }
 0xeec   : > { %2937 = vrot.lane.b32.xlu1 %v8716_v15, %s6281_s2  ;;  %v3874_v34 = vpop.f32.mrb[73].mxu1 }
 0xeed   : > { %2935 = vrot.lane.b32.xlu0 %v8719_v20, %s6281_s2  ;;  %v5098_v28 = vpop.f32.mrb[74].mxu1 }
 0xeee   : > { %v3910_v36 = vpack.c.bf16 %v5098_v28, %v5097_v59  ;;  %v3877_v10 = vpop.f32.mrb[75].mxu1 }
 0xeef   : > { %v3909_v38 = vpack.c.bf16 %v3877_v10, %v3874_v34 }
 0xef0   : > { %3931 = vrot.lane.b32.xlu1 %v3910_v36, %s6279_s26 }
 0xef1   : > { %3929 = vrot.lane.b32.xlu0 %v3909_v38, %s6279_s26 }
 0xef4   : > { %3436 = vrot.lane.b32.xlu1 %v8720_v57, %s6280_s16  ;;  %v4140_v57 = vld [vmem:[%s6880_s29 + $0x50] sm:$0xff] }
 0xef5   : > { %3434 = vrot.lane.b32.xlu0 %v8721_v32, %s6280_s16 }
 0xf17   : > { %v5101_v63 = vpop.f32.mrb[76].mxu1 }
 0xf18   : > { %v3890_v49 = vpop.f32.mrb[77].mxu1 }
 0xf19   : > { %v5102_v55 = vpop.f32.mrb[78].mxu1 }
 0xf1a   : > { %v3912_v2 = vpack.c.bf16 %v5102_v55, %v5101_v63  ;;  %v3893_v42 = vpop.f32.mrb[79].mxu1 }
 0xf1b   : > { %v3911_v60 = vpack.c.bf16 %v3893_v42, %v3890_v49  ;;  %v4138_v49 = vld [vmem:[%s6880_s29 + $0x40] sm:$0xff]  ;;  %v4141_v42 = vld [vmem:[%s6880_s29 + $0x58] sm:$0xff] }
 0xf1c   : > { %3935 = vrot.lane.b32.xlu1 %v3912_v2, %s6279_s26 }
 0xf1d   : > { %3933 = vrot.lane.b32.xlu0 %v3911_v60, %s6279_s26 }
 0xf52   : > { %v3924_v48 = vpop.permute.xlu1 %3923 }
 0xf53   : > { %3947 = vst.msk [vmem:[#allocation2 + $0x8] sm:$0xff] %vm3945_vm3, %v3924_v48  ;;  %v3922_v52 = vpop.permute.xlu0 %3921 }
 0xf54   : > { %3946 = vst.msk [vmem:[#allocation2] sm:$0xff] %vm3945_vm3, %v3922_v52 }
 0xf56   : > { %v3433_v29 = vpop.permute.xlu1 %3432 }
 0xf57   : > { %3452 = vst.msk [vmem:[#allocation2 + $0x28] sm:$0xff] %vm3446_vm2, %v3433_v29  ;;  %v3431_v19 = vpop.permute.xlu0 %3430  ;;  %v4139_v29 = vld [vmem:[%s6880_s29 + $0x48] sm:$0xff] }
 0xf58   : > { %3451 = vst.msk [vmem:[#allocation2 + $0x20] sm:$0xff] %vm3446_vm2, %v3431_v19 }
 0xf5a   : > { %v3928_v0 = vpop.permute.xlu1 %3927  ;;  %v3955_v27 = vld [vmem:[#allocation2 + $0x8] sm:$0xff] }
 0xf5b   : > { %3949 = vst.msk [vmem:[#allocation2 + $0x18] sm:$0xff] %vm3945_vm3, %v3928_v0  ;;  %v3926_v7 = vpop.permute.xlu0 %3925  ;;  %v3954_v9 = vld [vmem:[#allocation2] sm:$0xff] }
 0xf5c   : > { %3948 = vst.msk [vmem:[#allocation2 + $0x10] sm:$0xff] %vm3945_vm3, %v3926_v7  ;;  %5119 = vmatprep.mubr.bf16.mxu1 %v3954_v9 }
 0xf5d   : > { %5120 = vmatmul.mubr.bf16.vlgmr.msra.gmra.mrb[80].mxu1 %v3955_v27 }
 0xf5e   : > { %v2938_v16 = vpop.permute.xlu1 %2937 }
 0xf5f   : > { %2955 = vst.msk [vmem:[#allocation2 + $0x38] sm:$0xff] %vm2947_vm1, %v2938_v16  ;;  %v2936_v35 = vpop.permute.xlu0 %2935  ;;  %v4144_v16 = vld [vmem:[%s6880_s29 + $0x70] sm:$0xff] }
 0xf60   : > { %2954 = vst.msk [vmem:[#allocation2 + $0x30] sm:$0xff] %vm2947_vm1, %v2936_v35 }
 0xf62   : > { %v3932_v39 = vpop.permute.xlu1 %3931  ;;  %v3957_v22 = vld [vmem:[#allocation2 + $0x18] sm:$0xff] }
 0xf63   : > { %3951 = vst.msk [vmem:[#allocation2 + $0x28] sm:$0xff] %vm3945_vm3, %v3932_v39  ;;  %v3930_v18 = vpop.permute.xlu0 %3929  ;;  %v3956_v6 = vld [vmem:[#allocation2 + $0x10] sm:$0xff] }
 0xf64   : > { %3950 = vst.msk [vmem:[#allocation2 + $0x20] sm:$0xff] %vm3945_vm3, %v3930_v18  ;;  %5123 = vmatprep.mubr.bf16.mxu1 %v3956_v6  ;;  %v4142_v18 = vld [vmem:[%s6880_s29 + $0x60] sm:$0xff] }
 0xf65   : > { %5124 = vmatmul.mubr.bf16.gmra.mrb[84].mxu1 %v3957_v22 }
 0xf66   : > { %v3437_v4 = vpop.permute.xlu1 %3436 }
 0xf67   : > { %3454 = vst.msk [vmem:[#allocation2 + $0x38] sm:$0xff] %vm3446_vm2, %v3437_v4  ;;  %v3435_v30 = vpop.permute.xlu0 %3434  ;;  %v4145_v4 = vld [vmem:[%s6880_s29 + $0x78] sm:$0xff] }
 0xf68   : > { %3453 = vst.msk [vmem:[#allocation2 + $0x30] sm:$0xff] %vm3446_vm2, %v3435_v30 }
 0xf6a   : > { %v3959_v1 = vld [vmem:[#allocation2 + $0x28] sm:$0xff] }
 0xf6b   : > { %v3958_v51 = vld [vmem:[#allocation2 + $0x20] sm:$0xff] }
 0xf6c   : > { %5127 = vmatprep.mubr.bf16.mxu1 %v3958_v51 }
 0xf6d   : > { %5128 = vmatmul.mubr.bf16.gmra.mrb[88].mxu1 %v3959_v1 }
 0xf8e   : > { %v3936_v50 = vpop.permute.xlu1 %3935 }
 0xf8f   : > { %3953 = vst.msk [vmem:[#allocation2 + $0x38] sm:$0xff] %vm3945_vm3, %v3936_v50  ;;  %v3934_v43 = vpop.permute.xlu0 %3933  ;;  %v4143_v50 = vld [vmem:[%s6880_s29 + $0x68] sm:$0xff] }
 0xf90   : > { %3952 = vst.msk [vmem:[#allocation2 + $0x30] sm:$0xff] %vm3945_vm3, %v3934_v43 }
 0xf96   : > { %v3961_v46 = vld [vmem:[#allocation2 + $0x38] sm:$0xff] }
 0xf97   : > { %v3960_v11 = vld [vmem:[#allocation2 + $0x30] sm:$0xff] }
 0xf98   : > { %5131 = vmatprep.mubr.bf16.mxu1 %v3960_v11 }
 0xf99   : > { %5132 = vmatmul.mubr.bf16.gmra.mrb[92].mxu1 %v3961_v46 }
0x1030   : > { %v5121_v12 = vpop.f32.mrb[80].mxu1 }
0x1031   : > { %v4076_v33 = vadd.f32 %v5121_v12, %v8474_v21  ;;  %v4067_v24 = vpop.f32.mrb[81].mxu1 }
0x1032   : > { %v4068_v45 = vadd.f32 %v8474_v21, %v4067_v24  ;;  %v5122_v14 = vpop.f32.mrb[82].mxu1 }
0x1033   : > { %v4148_v17 = vadd.f32 %v4132_v31, %v4076_v33  ;;  %v4079_v54 = vadd.f32 %v5122_v14, %v8474_v21  ;;  %v4070_v5 = vpop.f32.mrb[83].mxu1 }
0x1034   : > { %v4146_v25 = vadd.f32 %v4130_v41, %v4068_v45  ;;  %v4071_v13 = vadd.f32 %v8474_v21, %v4070_v5 }
0x1035   : > { %4164 = vst [vmem:[%s8485_s0 + $0x10] sm:$0xff] %v4148_v17  ;;  %v4149_v3 = vadd.f32 %v4133_v56, %v4079_v54 }
0x1036   : > { %4162 = vst [vmem:[%s8485_s0] sm:$0xff] %v4146_v25  ;;  %v4147_v8 = vadd.f32 %v4131_v40, %v4071_v13 }
0x1037   : > { %4165 = vst [vmem:[%s8485_s0 + $0x18] sm:$0xff] %v4149_v3 }
0x1038   : > { %4163 = vst [vmem:[%s8485_s0 + $0x8] sm:$0xff] %v4147_v8  ;;  %v5125_v53 = vpop.f32.mrb[84].mxu1 }
0x1039   : > { %v4092_v44 = vadd.f32 %v5125_v53, %v8474_v21  ;;  %v4083_v62 = vpop.f32.mrb[85].mxu1 }
0x103a   : > { %v4084_v59 = vadd.f32 %v8474_v21, %v4083_v62  ;;  %v5126_v26 = vpop.f32.mrb[86].mxu1 }
0x103b   : > { %v4152_v15 = vadd.f32 %v4136_v23, %v4092_v44  ;;  %v4095_v34 = vadd.f32 %v5126_v26, %v8474_v21  ;;  %v4086_v47 = vpop.f32.mrb[87].mxu1 }
0x103c   : > { %v4150_v20 = vadd.f32 %v4134_v61, %v4084_v59  ;;  %v4087_v28 = vadd.f32 %v8474_v21, %v4086_v47 }
0x103d   : > { %4168 = vst [vmem:[%s8485_s0 + $0x30] sm:$0xff] %v4152_v15  ;;  %v4153_v36 = vadd.f32 %v4137_v58, %v4095_v34 }
0x103e   : > { %4166 = vst [vmem:[%s8485_s0 + $0x20] sm:$0xff] %v4150_v20  ;;  %v4151_v10 = vadd.f32 %v4135_v37, %v4087_v28 }
0x103f   : > { %4169 = vst [vmem:[%s8485_s0 + $0x38] sm:$0xff] %v4153_v36 }
0x1040   : > { %4167 = vst [vmem:[%s8485_s0 + $0x28] sm:$0xff] %v4151_v10  ;;  %v5129_v38 = vpop.f32.mrb[88].mxu1 }
0x1041   : > { %v4108_v32 = vadd.f32 %v5129_v38, %v8474_v21  ;;  %v4099_v63 = vpop.f32.mrb[89].mxu1 }
0x1042   : > { %v4100_v55 = vadd.f32 %v8474_v21, %v4099_v63  ;;  %v5130_v2 = vpop.f32.mrb[90].mxu1 }
0x1043   : > { %v4156_v60 = vadd.f32 %v4140_v57, %v4108_v32  ;;  %v4111_v48 = vadd.f32 %v5130_v2, %v8474_v21  ;;  %v4102_v52 = vpop.f32.mrb[91].mxu1 }
0x1044   : > { %v4154_v19 = vadd.f32 %v4138_v49, %v4100_v55  ;;  %v4103_v0 = vadd.f32 %v8474_v21, %v4102_v52 }
0x1045   : > { %4172 = vst [vmem:[%s8485_s0 + $0x50] sm:$0xff] %v4156_v60  ;;  %v4157_v7 = vadd.f32 %v4141_v42, %v4111_v48 }
0x1046   : > { %4170 = vst [vmem:[%s8485_s0 + $0x40] sm:$0xff] %v4154_v19  ;;  %v4155_v9 = vadd.f32 %v4139_v29, %v4103_v0 }
0x1047   : > { %4173 = vst [vmem:[%s8485_s0 + $0x58] sm:$0xff] %v4157_v7 }
0x1048   : > { %4171 = vst [vmem:[%s8485_s0 + $0x48] sm:$0xff] %v4155_v9 }
0x106c   : > { %v5133_v27 = vpop.f32.mrb[92].mxu1 }
0x106d   : > { %v4124_v35 = vadd.f32 %v5133_v27, %v8474_v21  ;;  %v4115_v39 = vpop.f32.mrb[93].mxu1 }
0x106e   : > { %v4116_v6 = vadd.f32 %v8474_v21, %v4115_v39  ;;  %v5134_v22 = vpop.f32.mrb[94].mxu1 }
0x106f   : > { %v4160_v30 = vadd.f32 %v4144_v16, %v4124_v35  ;;  %v4127_v51 = vadd.f32 %v5134_v22, %v8474_v21  ;;  %v4118_v1 = vpop.f32.mrb[95].mxu1 }
0x1070   : > { %v4158_v43 = vadd.f32 %v4142_v18, %v4116_v6  ;;  %v4119_v11 = vadd.f32 %v8474_v21, %v4118_v1 }
0x1071   : > { %4176 = vst [vmem:[%s8485_s0 + $0x70] sm:$0xff] %v4160_v30  ;;  %v4161_v46 = vadd.f32 %v4145_v4, %v4127_v51 }
0x1072   : > { %4174 = vst [vmem:[%s8485_s0 + $0x60] sm:$0xff] %v4158_v43  ;;  %v4159_v12 = vadd.f32 %v4143_v50, %v4119_v11 }
0x1073   : > { %4177 = vst [vmem:[%s8485_s0 + $0x78] sm:$0xff] %v4161_v46 }
0x1074   : > { %4175 = vst [vmem:[%s8485_s0 + $0x68] sm:$0xff] %v4159_v12 }
0x1075   : > { %6173 = shalt.err (!%p6170_p1)
}
0x1076   : > { %s6174_s7 = scalar_lea.hbm %s8529_s23, 2048  ;;  %s6178_s26 = scalar_lea.hbm %s8723_s27, 4096 }
0x1077   : > { %p6175_p10 = scmp.ne.s32.totalorder %s8529_s23, %s6174_s7  ;;  %p6179_p3 = scmp.lt.u32.totalorder %s8529_s23, %s8723_s27 }
0x1078   : > { %p6180_p5 = scmp.lt.u32.totalorder %s6178_s26, %s6174_s7  ;;  %p6182_p13 = scmp.lt.u32.totalorder %s6174_s7, %s8529_s23 }
0x1079   : > { %p6176_p11 = pnand %p6175_p10, %p8724_p0 }
0x107a   : > { %p6181_p9 = por %p6180_p5, %p6179_p3 }
0x107b   : > { %p6177_p2 = pneg %p6176_p11 }
0x107c   : > { %p6183_p7 = por %p6182_p13, %p6181_p9 }
0x107e   : > { %p6184_p8 = pnand %p6183_p7, %p6177_p2 }
0x1080   : > { %6187 = shalt.err (!%p6184_p8)
}
0x1081   : > { %s6283_s0 = smov 128   ;;  %s6284_s22 = smov 8  }
0x1082   : > { %5219 = dma.vmem_to_hbm [thread:$0]  (%p8724_p0), %s8531_s15, 2048, %s8529_s23, %s4179_s24, %s6283_s0, %s6283_s0, %s6284_s22  }
0x1083 PF: > { %s8725_s4 = sld [smem:[#allocation38_spill]]  ;;  %s8726_s9 = sld [smem:[#allocation43_spill]] }
0x1084   : > { %p8728_p12 = scmp.ge.s32.totalorder %s6258_s21, 2 }
0x1089   : > { %s4207_s5 = sand.u32 1, %s8725_s4   ;;  %p8727_p6 = scmp.ne.s32.totalorder %s8726_s9, 0 }
0x108a   : > { %s4208_s17 = scalar_lea.sflag [#allocation5], %s4207_s5 }
0x108b   : > { %p5269_p4 = pnand %p8728_p12, %p8727_p6 }
0x108d   : > { %6241 = dma.done.wait (!%p5269_p4), %s4208_s17, 2048  }
0x108e   : > { %6243 = vsyncadd (!%p5269_p4), %s4208_s17, 4294965248  ;;  %s8729_s21 = sld [smem:[#allocation40_spill]]  ;;  %s8730_s30 = sld [smem:[#allocation41_spill]] }
0x108f   : > { %s8731_s18 = smov %s6250_s19  ;;  %s8732_s19 = smov %s6254_s20 }
0x1094   : > { %p39_p1 = scmp.ge.s32.totalorder %s8729_s21, 4   ;;  %s8733_s20 = smov %s8730_s30 }
0x1096   :  { %41 = sbr.rel (!%p39_p1) target bundleno = 27 (0x1b), region = 206 }
0x109d   :  { %4213 = vsyncpa [#allocation4], 1 }
0x109e   :  { %4215 = vsyncpa [#allocation4 + $0x1], 1 }
0x109f   :  { %4216 = vsyncpa [#allocation7], 1 }
0x10a0   :  { %4218 = vsyncpa [#allocation7 + $0x1], 1 }
0x10a1   :  { %4219 = vsyncpa [#allocation10], 1 }
0x10a2   :  { %4221 = vsyncpa [#allocation10 + $0x1], 1 }
0x10a3   :  { %4222 = vsyncpa [#allocation13], 1 }
0x10a4   :  { %4223 = vsyncpa [#allocation16], 1 }
0x10a5   :  { %4224 = vsyncpa [#allocation19], 1 }
0x10a6   :  { %4225 = vsyncpa [#allocation22], 1 }
0x10a7   :  { %4226 = vsyncpa [#allocation25], 1 }
0x10a8   :  { %4227 = vsyncpa [#allocation5], 1 }
0x10a9   :  { %4229 = vsyncpa [#allocation5 + $0x1], 1 }

</bundles_post_ra>
